<compile_context>
chip_gen: v7x
topology: tpu7x:2x2x1
jax: 0.10.0
libtpu: 0.0.40
codegen_flags: <defaults>
</compile_context>

<pallas_src>
import functools

import jax
import jax.numpy as jnp
from jax.experimental import pallas as pl
from jax.experimental.pallas import tpu as pltpu


# ----------------------------------------------------------------------------
# Fused kernel: the whole ChannelTransformerBlock for one batch element,
# everything in channel-major (channels, H*W) layout.
# ----------------------------------------------------------------------------

def block_kernel(x_ref, hw_h_ref, hw_w_ref, temp_ref, bias_ref,
                 ln1_w_ref, ln1_b_ref, w_qkv_ref, w_qkv_dw_ref, w_proj_ref,
                 ln2_w_ref, ln2_b_ref, w_pin_ref, w_pin_dw_ref, w_pout_ref,
                 o_ref, *, H, W):
    C, HW = x_ref.shape
    hidden = w_pout_ref.shape[1]
    f32 = jnp.float32

    def mm(a, b):
        # f32 operands, f32 accumulation (interpreter-safe; MXU on real TPU).
        return jax.lax.dot_general(a, b, (((1,), (0,)), ((), ())),
                                   preferred_element_type=f32)

    def layernorm(x, w_ref, b_ref):
        # WithBias_LayerNorm over channels (sublane axis), biased var, eps=1e-5.
        # Single fused pass: E[x] and E[x^2] together.
        s1 = jnp.sum(x, axis=0, keepdims=True)
        s2 = jnp.sum(x * x, axis=0, keepdims=True)
        mu = s1 * (1.0 / C)
        var = s2 * (1.0 / C) - mu * mu
        return (x - mu) * jax.lax.rsqrt(var + 1e-5) * w_ref[...] + b_ref[...]

    # Per-lane spatial indices (precomputed in the wrapper, shape (1, HW)).
    hw_h = hw_h_ref[...]
    hw_w = hw_w_ref[...]

    def dwconv3x3(x, w_ref):
        # Depthwise 3x3, stride 1, zero padding.  x: (Cd, HW), w_ref: (Cd, 9).
        # 9 shifted taps along the flattened HW lane axis + boundary masks,
        # fused multiply-add per tap.  No padded scratch buffer.
        w = w_ref[...]
        acc = jnp.zeros_like(x)
        tap = 0
        for dh in (-1, 0, 1):
            for dw in (-1, 0, 1):
                shift = dh * W + dw
                shifted = x if shift == 0 else jnp.roll(x, -shift, axis=1)
                valid = None
                if dh == -1:
                    valid = hw_h >= 1
                elif dh == 1:
                    valid = hw_h <= H - 2
                if dw == -1:
                    cw = hw_w >= 1
                    valid = cw if valid is None else (valid & cw)
                elif dw == 1:
                    cw = hw_w <= W - 2
                    valid = cw if valid is None else (valid & cw)
                term = shifted if valid is None else jnp.where(valid, shifted, 0.0)
                acc = acc + term * w[:, tap:tap + 1]
                tap += 1
        return acc

    def erf_approx(z):
        # Abramowitz & Stegun 7.1.26 (|err| < 1.5e-7) -- only exp/abs/select,
        # guaranteed to lower on every TPU generation and in interpret mode.
        a1c, a2c, a3c, a4c, a5c, pc = (0.254829592, -0.284496736, 1.421413741,
                                       -1.453152027, 1.061405429, 0.3275911)
        za = jnp.abs(z)
        t = 1.0 / (1.0 + pc * za)
        poly = ((((a5c * t + a4c) * t + a3c) * t + a2c) * t + a1c) * t
        r = 1.0 - poly * jnp.exp(-za * za)
        return jnp.where(z >= 0.0, r, -r)

    x2d = x_ref[...].astype(f32)                                   # (C, HW)

    # ---------------- x = x + Attention(norm1(x)) ----------------
    n1 = layernorm(x2d, ln1_w_ref, ln1_b_ref)
    qkv = mm(w_qkv_ref[...], n1)                                   # (3C, HW)
    qkv = dwconv3x3(qkv, w_qkv_dw_ref)                             # (3C, HW)
    q = qkv[:C, :]
    k = qkv[C:2 * C, :]
    v = qkv[2 * C:, :]

    # F.normalize(dim=-1): x * rsqrt(max(||x||^2, 1e-24)) along the lane axis.
    qn = q * jax.lax.rsqrt(jnp.maximum(jnp.sum(q * q, axis=1, keepdims=True), 1e-24))
    kn = k * jax.lax.rsqrt(jnp.maximum(jnp.sum(k * k, axis=1, keepdims=True), 1e-24))
    # Per-head temperature folded into the (normalized) query rows.
    qn = qn * temp_ref[...]                                        # (C, 1) scale

    # Block-diagonal channel attention: one full gram matmul, cross-head blocks
    # masked with an additive -1e30 bias before the softmax.
    gram = jax.lax.dot_general(qn, kn, (((1,), (1,)), ((), ())),
                               preferred_element_type=f32)         # (C, C)
    logits = gram + bias_ref[...]
    logits = logits - jnp.max(logits, axis=-1, keepdims=True)
    e = jnp.exp(logits)
    probs = e / jnp.sum(e, axis=-1, keepdims=True)                 # block-diag
    attn_out = mm(probs, v)                                        # (C, HW)
    x1 = x2d + mm(w_proj_ref[...], attn_out)                       # residual

    # ---------------- x = x + FFN(norm2(x)) ----------------
    n2 = layernorm(x1, ln2_w_ref, ln2_b_ref)
    pin = mm(w_pin_ref[...], n2)                                   # (2*hidden, HW)
    pin = dwconv3x3(pin, w_pin_dw_ref)
    a1 = pin[:hidden, :]
    a2 = pin[hidden:, :]
    gelu = 0.5 * a1 * (1.0 + erf_approx(a1 * 0.7071067811865476))  # exact GELU
    out = x1 + mm(w_pout_ref[...], gelu * a2)                      # residual

    o_ref[...] = out.astype(o_ref.dtype)


# ----------------------------------------------------------------------------
# pallas_call wrapper (channel-major, no NCHW<->NHWC transposes)
# ----------------------------------------------------------------------------

def channel_transformer_block_pallas(x_nchw, p):
    B, C, H, W = x_nchw.shape
    HW = H * W
    heads = p['temperature'].shape[0]
    c_head = C // heads
    hidden = p['w_pout'].shape[1]

    x2 = x_nchw.reshape(B, C, HW)                  # free reshape of NCHW

    # Tiny precomputed helpers (avoid in-kernel vector int div/mod):
    hw_idx = jnp.arange(HW, dtype=jnp.int32)
    hw_h = (hw_idx // W).reshape(1, HW)
    hw_w = (hw_idx % W).reshape(1, HW)
    head_id = jnp.repeat(jnp.arange(heads, dtype=jnp.int32), c_head)     # (C,)
    temp_rows = jnp.repeat(p['temperature'].astype(jnp.float32),
                           c_head).reshape(C, 1)
    attn_bias = jnp.where(head_id[:, None] == head_id[None, :],
                          0.0, -1e30).astype(jnp.float32)                # (C, C)

    def full(shape):
        n = len(shape)
        return pl.BlockSpec(shape, lambda b, _n=n: (0,) * _n)

    out = pl.pallas_call(
        functools.partial(block_kernel, H=H, W=W),
        out_shape=jax.ShapeDtypeStruct((B, C, HW), x_nchw.dtype),
        grid=(B,),
        in_specs=[
            pl.BlockSpec((None, C, HW), lambda b: (b, 0, 0)),  # x (channel-major)
            full((1, HW)), full((1, HW)),                      # per-lane h / w idx
            full((C, 1)),                                      # per-row temperature
            full((C, C)),                                      # block-diag attn bias
            full((C, 1)), full((C, 1)),                        # ln1 w / b
            full((3 * C, C)),                                  # qkv 1x1
            full((3 * C, 9)),                                  # qkv dwconv taps
            full((C, C)),                                      # attn project_out
            full((C, 1)), full((C, 1)),                        # ln2 w / b
            full((2 * hidden, C)),                             # ffn project_in
            full((2 * hidden, 9)),                             # ffn dwconv taps
            full((C, hidden)),                                 # ffn project_out
        ],
        out_specs=pl.BlockSpec((None, C, HW), lambda b: (b, 0, 0)),
        compiler_params=pltpu.CompilerParams(
            dimension_semantics=("parallel",),
            vmem_limit_bytes=64 * 1024 * 1024),
    )(x2, hw_h, hw_w, temp_rows, attn_bias,
      p['ln1_w'].reshape(C, 1), p['ln1_b'].reshape(C, 1),
      p['w_qkv'], p['w_qkv_dw'].reshape(3 * C, 9), p['w_proj'],
      p['ln2_w'].reshape(C, 1), p['ln2_b'].reshape(C, 1),
      p['w_pin'], p['w_pin_dw'].reshape(2 * hidden, 9), p['w_pout'])

    return out.reshape(B, C, H, W)


# ----------------------------------------------------------------------------
# Pure-JAX float32 reference (correctness check only, PyTorch semantics)
# ----------------------------------------------------------------------------

def channel_transformer_block_ref(x, p):
    B, C, H, W = x.shape
    heads = p['temperature'].shape[0]
    hidden = p['w_pout'].shape[1]
    c_head = C // heads

    def conv1x1(t, w):                       # w: (Cout, Cin)
        return jnp.einsum('oc,bchw->bohw', w, t)

    def dwconv(t, w):                        # w: (Cd, 3, 3), depthwise, pad=1
        tp = jnp.pad(t, ((0, 0), (0, 0), (1, 1), (1, 1)))
        acc = jnp.zeros_like(t)
        for kh in range(3):
            for kw in range(3):
                acc = acc + tp[:, :, kh:kh + H, kw:kw + W] * w[None, :, kh, kw, None, None]
        return acc

    def ln(t, w, b):                         # channel LayerNorm per pixel
        mu = jnp.mean(t, axis=1, keepdims=True)
        var = jnp.mean((t - mu) ** 2, axis=1, keepdims=True)
        return (t - mu) / jnp.sqrt(var + 1e-5) * w[None, :, None, None] + b[None, :, None, None]

    # Attention
    n1 = ln(x, p['ln1_w'], p['ln1_b'])
    qkv = dwconv(conv1x1(n1, p['w_qkv']), p['w_qkv_dw'])
    q, k, v = jnp.split(qkv, 3, axis=1)

    def to_heads(t):                         # 'b (head c) h w -> b head c (h w)'
        return t.reshape(B, heads, c_head, H * W)

    q, k, v = to_heads(q), to_heads(k), to_heads(v)
    q = q / jnp.maximum(jnp.sqrt(jnp.sum(q * q, -1, keepdims=True)), 1e-12)
    k = k / jnp.maximum(jnp.sqrt(jnp.sum(k * k, -1, keepdims=True)), 1e-12)
    attn = jnp.einsum('bhcn,bhdn->bhcd', q, k) * p['temperature'][None, :, None, None]
    attn = jax.nn.softmax(attn, axis=-1)
    ao = jnp.einsum('bhcd,bhdn->bhcn', attn, v).reshape(B, C, H, W)
    x1 = x + conv1x1(ao, p['w_proj'])

    # FFN
    n2 = ln(x1, p['ln2_w'], p['ln2_b'])
    pin = dwconv(conv1x1(n2, p['w_pin']), p['w_pin_dw'])
    a1, a2 = pin[:, :hidden], pin[:, hidden:]
    g = 0.5 * a1 * (1.0 + jax.lax.erf(a1 * 0.7071067811865476))
    return x1 + conv1x1(g * a2, p['w_pout'])


# ----------------------------------------------------------------------------
# Main
# ----------------------------------------------------------------------------

if __name__ == "__main__":
    B, C, H, W = 2, 8, 16, 16
    num_heads = 2
    ffn_expansion_factor = 2.0
    hidden = int(C * ffn_expansion_factor)
    # bias=False convs, LayerNorm_type='WithBias'

    key = jax.random.PRNGKey(0)
    ks = jax.random.split(key, 12)

    def rnd(k, shape, scale=0.1):
        return scale * jax.random.normal(k, shape, jnp.float32)

    params = dict(
        ln1_w=1.0 + rnd(ks[0], (C,), 0.05), ln1_b=rnd(ks[1], (C,), 0.05),
        ln2_w=1.0 + rnd(ks[2], (C,), 0.05), ln2_b=rnd(ks[3], (C,), 0.05),
        temperature=1.0 + rnd(ks[4], (num_heads,), 0.1),
        # 1x1 conv weights in PyTorch (Cout, Cin) layout (kernel dims squeezed)
        w_qkv=rnd(ks[5], (3 * C, C)),
        w_qkv_dw=rnd(ks[6], (3 * C, 3, 3)),       # depthwise (channel, kh, kw)
        w_proj=rnd(ks[7], (C, C)),
        w_pin=rnd(ks[8], (2 * hidden, C)),
        w_pin_dw=rnd(ks[9], (2 * hidden, 3, 3)),
        w_pout=rnd(ks[10], (C, hidden)),
    )
    x = jax.random.normal(ks[11], (B, C, H, W), jnp.float32)

    out = jax.block_until_ready(jax.jit(channel_transformer_block_pallas)(x, params))
    ref = jax.block_until_ready(jax.jit(channel_transformer_block_ref)(x, params))

    assert out.shape == (B, C, H, W) and out.dtype == jnp.float32
    max_err = float(jnp.max(jnp.abs(out - ref)))
    assert max_err < 2e-2, f"mismatch vs reference: {max_err}"

    print("KERNEL_OK")
</pallas_src>

<mosaic_0001>
module attributes {stable_mosaic.version = 11 : i64} {
  func.func @block_kernel(%arg0: i32, %arg1: memref<1x8x256xf32, #tpu.memory_space<vmem>>, %arg2: memref<1x256xi32, #tpu.memory_space<vmem>>, %arg3: memref<1x256xi32, #tpu.memory_space<vmem>>, %arg4: memref<8x1xf32, #tpu.memory_space<vmem>>, %arg5: memref<8x8xf32, #tpu.memory_space<vmem>>, %arg6: memref<8x1xf32, #tpu.memory_space<vmem>>, %arg7: memref<8x1xf32, #tpu.memory_space<vmem>>, %arg8: memref<24x8xf32, #tpu.memory_space<vmem>>, %arg9: memref<24x9xf32, #tpu.memory_space<vmem>>, %arg10: memref<8x8xf32, #tpu.memory_space<vmem>>, %arg11: memref<8x1xf32, #tpu.memory_space<vmem>>, %arg12: memref<8x1xf32, #tpu.memory_space<vmem>>, %arg13: memref<32x8xf32, #tpu.memory_space<vmem>>, %arg14: memref<32x9xf32, #tpu.memory_space<vmem>>, %arg15: memref<8x16xf32, #tpu.memory_space<vmem>>, %arg16: memref<1x8x256xf32, #tpu.memory_space<vmem>>) attributes {dimension_semantics = [#tpu.dimension_semantics<parallel>], iteration_bounds = array<i64: 2>, scalar_prefetch = 0 : i64, scratch_operands = 0 : i64, tpu.core_type = #tpu.core_type<tc>, window_params = [{transform_indices = @transform_0, window_bounds = array<i64: 1, 8, 256>}, {pipeline_mode = #tpu.pipeline_mode<synchronous>, transform_indices = @transform_1, window_bounds = array<i64: 1, 256>}, {pipeline_mode = #tpu.pipeline_mode<synchronous>, transform_indices = @transform_2, window_bounds = array<i64: 1, 256>}, {pipeline_mode = #tpu.pipeline_mode<synchronous>, transform_indices = @transform_3, window_bounds = array<i64: 8, 1>}, {pipeline_mode = #tpu.pipeline_mode<synchronous>, transform_indices = @transform_4, window_bounds = array<i64: 8, 8>}, {pipeline_mode = #tpu.pipeline_mode<synchronous>, transform_indices = @transform_5, window_bounds = array<i64: 8, 1>}, {pipeline_mode = #tpu.pipeline_mode<synchronous>, transform_indices = @transform_6, window_bounds = array<i64: 8, 1>}, {pipeline_mode = #tpu.pipeline_mode<synchronous>, transform_indices = @transform_7, window_bounds = array<i64: 24, 8>}, {pipeline_mode = #tpu.pipeline_mode<synchronous>, transform_indices = @transform_8, window_bounds = array<i64: 24, 9>}, {pipeline_mode = #tpu.pipeline_mode<synchronous>, transform_indices = @transform_9, window_bounds = array<i64: 8, 8>}, {pipeline_mode = #tpu.pipeline_mode<synchronous>, transform_indices = @transform_10, window_bounds = array<i64: 8, 1>}, {pipeline_mode = #tpu.pipeline_mode<synchronous>, transform_indices = @transform_11, window_bounds = array<i64: 8, 1>}, {pipeline_mode = #tpu.pipeline_mode<synchronous>, transform_indices = @transform_12, window_bounds = array<i64: 32, 8>}, {pipeline_mode = #tpu.pipeline_mode<synchronous>, transform_indices = @transform_13, window_bounds = array<i64: 32, 9>}, {pipeline_mode = #tpu.pipeline_mode<synchronous>, transform_indices = @transform_14, window_bounds = array<i64: 8, 16>}, {transform_indices = @transform_15, window_bounds = array<i64: 1, 8, 256>}]} {
    %c0 = arith.constant 0 : index
    %c0_0 = arith.constant 0 : index
    %0 = vector.load %arg2[%c0, %c0_0] : memref<1x256xi32, #tpu.memory_space<vmem>>, vector<1x256xi32>
    %c0_1 = arith.constant 0 : index
    %c0_2 = arith.constant 0 : index
    %1 = vector.load %arg3[%c0_1, %c0_2] : memref<1x256xi32, #tpu.memory_space<vmem>>, vector<1x256xi32>
    %c0_3 = arith.constant 0 : index
    %c0_4 = arith.constant 0 : index
    %c0_5 = arith.constant 0 : index
    %2 = vector.load %arg1[%c0_3, %c0_4, %c0_5] : memref<1x8x256xf32, #tpu.memory_space<vmem>>, vector<1x8x256xf32>
    %3 = vector.shape_cast %2 : vector<1x8x256xf32> to vector<8x256xf32>
    %cst = arith.constant dense<0.000000e+00> : vector<256xf32>
    %4 = vector.multi_reduction <add>, %3, %cst [0] : vector<8x256xf32> to vector<256xf32>
    %5 = vector.shape_cast %4 : vector<256xf32> to vector<1x256xf32>
    %6 = arith.mulf %3, %3 : vector<8x256xf32>
    %cst_6 = arith.constant dense<0.000000e+00> : vector<256xf32>
    %7 = vector.multi_reduction <add>, %6, %cst_6 [0] : vector<8x256xf32> to vector<256xf32>
    %8 = vector.shape_cast %7 : vector<256xf32> to vector<1x256xf32>
    %cst_7 = arith.constant 1.250000e-01 : f32
    %9 = vector.broadcast %cst_7 : f32 to vector<1x256xf32>
    %10 = arith.mulf %5, %9 : vector<1x256xf32>
    %cst_8 = arith.constant 1.250000e-01 : f32
    %11 = vector.broadcast %cst_8 : f32 to vector<1x256xf32>
    %12 = arith.mulf %8, %11 : vector<1x256xf32>
    %13 = arith.mulf %10, %10 : vector<1x256xf32>
    %14 = arith.subf %12, %13 : vector<1x256xf32>
    %15 = vector.broadcast %10 : vector<1x256xf32> to vector<8x256xf32>
    %16 = arith.subf %3, %15 : vector<8x256xf32>
    %cst_9 = arith.constant 9.99999974E-6 : f32
    %17 = vector.broadcast %cst_9 : f32 to vector<1x256xf32>
    %18 = arith.addf %14, %17 : vector<1x256xf32>
    %19 = math.rsqrt %18 : vector<1x256xf32>
    %20 = vector.broadcast %19 : vector<1x256xf32> to vector<8x256xf32>
    %21 = arith.mulf %16, %20 : vector<8x256xf32>
    %c0_10 = arith.constant 0 : index
    %c0_11 = arith.constant 0 : index
    %22 = vector.load %arg6[%c0_10, %c0_11] : memref<8x1xf32, #tpu.memory_space<vmem>>, vector<8x1xf32>
    %23 = vector.broadcast %22 : vector<8x1xf32> to vector<8x256xf32>
    %24 = arith.mulf %21, %23 : vector<8x256xf32>
    %c0_12 = arith.constant 0 : index
    %c0_13 = arith.constant 0 : index
    %25 = vector.load %arg7[%c0_12, %c0_13] : memref<8x1xf32, #tpu.memory_space<vmem>>, vector<8x1xf32>
    %26 = vector.broadcast %25 : vector<8x1xf32> to vector<8x256xf32>
    %27 = arith.addf %24, %26 : vector<8x256xf32>
    %c0_14 = arith.constant 0 : index
    %c0_15 = arith.constant 0 : index
    %28 = vector.load %arg8[%c0_14, %c0_15] : memref<24x8xf32, #tpu.memory_space<vmem>>, vector<24x8xf32>
    %cst_16 = arith.constant dense<0.000000e+00> : vector<24x256xf32>
    %29 = tpu.matmul %28, %27, %cst_16 {dimension_numbers = #tpu.dot_dimension_numbers<[1], [0], [0], [1], [0, 0, 1, 1], [], []>} : vector<24x8xf32>, vector<8x256xf32>, vector<24x256xf32> -> vector<24x256xf32>
    %c0_17 = arith.constant 0 : index
    %c0_18 = arith.constant 0 : index
    %30 = vector.load %arg9[%c0_17, %c0_18] : memref<24x9xf32, #tpu.memory_space<vmem>>, vector<24x9xf32>
    %cst_19 = arith.constant 0.000000e+00 : f32
    %31 = vector.broadcast %cst_19 : f32 to vector<24x256xf32>
    %32 = vector.extract_strided_slice %29 {offsets = [0, 239], sizes = [24, 17], strides = [1, 1]} : vector<24x256xf32> to vector<24x17xf32>
    %33 = vector.extract_strided_slice %29 {offsets = [0, 0], sizes = [24, 239], strides = [1, 1]} : vector<24x256xf32> to vector<24x239xf32>
    %34 = tpu.concatenate %32, %33 in 1 : vector<24x17xf32>, vector<24x239xf32> -> vector<24x256xf32>
    %c1_i32 = arith.constant 1 : i32
    %35 = vector.broadcast %c1_i32 : i32 to vector<1x256xi32>
    %36 = arith.cmpi sge, %0, %35 : vector<1x256xi32>
    %c1_i32_20 = arith.constant 1 : i32
    %37 = vector.broadcast %c1_i32_20 : i32 to vector<1x256xi32>
    %38 = arith.cmpi sge, %1, %37 : vector<1x256xi32>
    %39 = arith.andi %36, %38 : vector<1x256xi1>
    %cst_21 = arith.constant 0.000000e+00 : f32
    %40 = vector.shape_cast %39 : vector<1x256xi1> to vector<1x256xi1>
    %41 = vector.broadcast %40 : vector<1x256xi1> to vector<24x256xi1>
    %42 = vector.broadcast %cst_21 : f32 to vector<24x256xf32>
    %43 = arith.select %41, %34, %42 : vector<24x256xi1>, vector<24x256xf32>
    %44 = vector.extract_strided_slice %30 {offsets = [0, 0], sizes = [24, 1], strides = [1, 1]} : vector<24x9xf32> to vector<24x1xf32>
    %45 = vector.broadcast %44 : vector<24x1xf32> to vector<24x256xf32>
    %46 = arith.mulf %43, %45 : vector<24x256xf32>
    %47 = arith.addf %31, %46 : vector<24x256xf32>
    %48 = vector.extract_strided_slice %29 {offsets = [0, 240], sizes = [24, 16], strides = [1, 1]} : vector<24x256xf32> to vector<24x16xf32>
    %49 = vector.extract_strided_slice %29 {offsets = [0, 0], sizes = [24, 240], strides = [1, 1]} : vector<24x256xf32> to vector<24x240xf32>
    %50 = tpu.concatenate %48, %49 in 1 : vector<24x16xf32>, vector<24x240xf32> -> vector<24x256xf32>
    %c1_i32_22 = arith.constant 1 : i32
    %51 = vector.broadcast %c1_i32_22 : i32 to vector<1x256xi32>
    %52 = arith.cmpi sge, %0, %51 : vector<1x256xi32>
    %cst_23 = arith.constant 0.000000e+00 : f32
    %53 = vector.shape_cast %52 : vector<1x256xi1> to vector<1x256xi1>
    %54 = vector.broadcast %53 : vector<1x256xi1> to vector<24x256xi1>
    %55 = vector.broadcast %cst_23 : f32 to vector<24x256xf32>
    %56 = arith.select %54, %50, %55 : vector<24x256xi1>, vector<24x256xf32>
    %57 = vector.extract_strided_slice %30 {offsets = [0, 1], sizes = [24, 1], strides = [1, 1]} : vector<24x9xf32> to vector<24x1xf32>
    %58 = vector.broadcast %57 : vector<24x1xf32> to vector<24x256xf32>
    %59 = arith.mulf %56, %58 : vector<24x256xf32>
    %60 = arith.addf %47, %59 : vector<24x256xf32>
    %61 = vector.extract_strided_slice %29 {offsets = [0, 241], sizes = [24, 15], strides = [1, 1]} : vector<24x256xf32> to vector<24x15xf32>
    %62 = vector.extract_strided_slice %29 {offsets = [0, 0], sizes = [24, 241], strides = [1, 1]} : vector<24x256xf32> to vector<24x241xf32>
    %63 = tpu.concatenate %61, %62 in 1 : vector<24x15xf32>, vector<24x241xf32> -> vector<24x256xf32>
    %c1_i32_24 = arith.constant 1 : i32
    %64 = vector.broadcast %c1_i32_24 : i32 to vector<1x256xi32>
    %65 = arith.cmpi sge, %0, %64 : vector<1x256xi32>
    %c14_i32 = arith.constant 14 : i32
    %66 = vector.broadcast %c14_i32 : i32 to vector<1x256xi32>
    %67 = arith.cmpi sle, %1, %66 : vector<1x256xi32>
    %68 = arith.andi %65, %67 : vector<1x256xi1>
    %cst_25 = arith.constant 0.000000e+00 : f32
    %69 = vector.shape_cast %68 : vector<1x256xi1> to vector<1x256xi1>
    %70 = vector.broadcast %69 : vector<1x256xi1> to vector<24x256xi1>
    %71 = vector.broadcast %cst_25 : f32 to vector<24x256xf32>
    %72 = arith.select %70, %63, %71 : vector<24x256xi1>, vector<24x256xf32>
    %73 = vector.extract_strided_slice %30 {offsets = [0, 2], sizes = [24, 1], strides = [1, 1]} : vector<24x9xf32> to vector<24x1xf32>
    %74 = vector.broadcast %73 : vector<24x1xf32> to vector<24x256xf32>
    %75 = arith.mulf %72, %74 : vector<24x256xf32>
    %76 = arith.addf %60, %75 : vector<24x256xf32>
    %77 = vector.extract_strided_slice %29 {offsets = [0, 255], sizes = [24, 1], strides = [1, 1]} : vector<24x256xf32> to vector<24x1xf32>
    %78 = vector.extract_strided_slice %29 {offsets = [0, 0], sizes = [24, 255], strides = [1, 1]} : vector<24x256xf32> to vector<24x255xf32>
    %79 = tpu.concatenate %77, %78 in 1 : vector<24x1xf32>, vector<24x255xf32> -> vector<24x256xf32>
    %c1_i32_26 = arith.constant 1 : i32
    %80 = vector.broadcast %c1_i32_26 : i32 to vector<1x256xi32>
    %81 = arith.cmpi sge, %1, %80 : vector<1x256xi32>
    %cst_27 = arith.constant 0.000000e+00 : f32
    %82 = vector.shape_cast %81 : vector<1x256xi1> to vector<1x256xi1>
    %83 = vector.broadcast %82 : vector<1x256xi1> to vector<24x256xi1>
    %84 = vector.broadcast %cst_27 : f32 to vector<24x256xf32>
    %85 = arith.select %83, %79, %84 : vector<24x256xi1>, vector<24x256xf32>
    %86 = vector.extract_strided_slice %30 {offsets = [0, 3], sizes = [24, 1], strides = [1, 1]} : vector<24x9xf32> to vector<24x1xf32>
    %87 = vector.broadcast %86 : vector<24x1xf32> to vector<24x256xf32>
    %88 = arith.mulf %85, %87 : vector<24x256xf32>
    %89 = arith.addf %76, %88 : vector<24x256xf32>
    %90 = vector.extract_strided_slice %30 {offsets = [0, 4], sizes = [24, 1], strides = [1, 1]} : vector<24x9xf32> to vector<24x1xf32>
    %91 = vector.broadcast %90 : vector<24x1xf32> to vector<24x256xf32>
    %92 = arith.mulf %29, %91 : vector<24x256xf32>
    %93 = arith.addf %89, %92 : vector<24x256xf32>
    %94 = vector.extract_strided_slice %29 {offsets = [0, 1], sizes = [24, 255], strides = [1, 1]} : vector<24x256xf32> to vector<24x255xf32>
    %95 = vector.extract_strided_slice %29 {offsets = [0, 0], sizes = [24, 1], strides = [1, 1]} : vector<24x256xf32> to vector<24x1xf32>
    %96 = tpu.concatenate %94, %95 in 1 : vector<24x255xf32>, vector<24x1xf32> -> vector<24x256xf32>
    %c14_i32_28 = arith.constant 14 : i32
    %97 = vector.broadcast %c14_i32_28 : i32 to vector<1x256xi32>
    %98 = arith.cmpi sle, %1, %97 : vector<1x256xi32>
    %cst_29 = arith.constant 0.000000e+00 : f32
    %99 = vector.shape_cast %98 : vector<1x256xi1> to vector<1x256xi1>
    %100 = vector.broadcast %99 : vector<1x256xi1> to vector<24x256xi1>
    %101 = vector.broadcast %cst_29 : f32 to vector<24x256xf32>
    %102 = arith.select %100, %96, %101 : vector<24x256xi1>, vector<24x256xf32>
    %103 = vector.extract_strided_slice %30 {offsets = [0, 5], sizes = [24, 1], strides = [1, 1]} : vector<24x9xf32> to vector<24x1xf32>
    %104 = vector.broadcast %103 : vector<24x1xf32> to vector<24x256xf32>
    %105 = arith.mulf %102, %104 : vector<24x256xf32>
    %106 = arith.addf %93, %105 : vector<24x256xf32>
    %107 = vector.extract_strided_slice %29 {offsets = [0, 15], sizes = [24, 241], strides = [1, 1]} : vector<24x256xf32> to vector<24x241xf32>
    %108 = vector.extract_strided_slice %29 {offsets = [0, 0], sizes = [24, 15], strides = [1, 1]} : vector<24x256xf32> to vector<24x15xf32>
    %109 = tpu.concatenate %107, %108 in 1 : vector<24x241xf32>, vector<24x15xf32> -> vector<24x256xf32>
    %c14_i32_30 = arith.constant 14 : i32
    %110 = vector.broadcast %c14_i32_30 : i32 to vector<1x256xi32>
    %111 = arith.cmpi sle, %0, %110 : vector<1x256xi32>
    %c1_i32_31 = arith.constant 1 : i32
    %112 = vector.broadcast %c1_i32_31 : i32 to vector<1x256xi32>
    %113 = arith.cmpi sge, %1, %112 : vector<1x256xi32>
    %114 = arith.andi %111, %113 : vector<1x256xi1>
    %cst_32 = arith.constant 0.000000e+00 : f32
    %115 = vector.shape_cast %114 : vector<1x256xi1> to vector<1x256xi1>
    %116 = vector.broadcast %115 : vector<1x256xi1> to vector<24x256xi1>
    %117 = vector.broadcast %cst_32 : f32 to vector<24x256xf32>
    %118 = arith.select %116, %109, %117 : vector<24x256xi1>, vector<24x256xf32>
    %119 = vector.extract_strided_slice %30 {offsets = [0, 6], sizes = [24, 1], strides = [1, 1]} : vector<24x9xf32> to vector<24x1xf32>
    %120 = vector.broadcast %119 : vector<24x1xf32> to vector<24x256xf32>
    %121 = arith.mulf %118, %120 : vector<24x256xf32>
    %122 = arith.addf %106, %121 : vector<24x256xf32>
    %123 = vector.extract_strided_slice %29 {offsets = [0, 16], sizes = [24, 240], strides = [1, 1]} : vector<24x256xf32> to vector<24x240xf32>
    %124 = vector.extract_strided_slice %29 {offsets = [0, 0], sizes = [24, 16], strides = [1, 1]} : vector<24x256xf32> to vector<24x16xf32>
    %125 = tpu.concatenate %123, %124 in 1 : vector<24x240xf32>, vector<24x16xf32> -> vector<24x256xf32>
    %c14_i32_33 = arith.constant 14 : i32
    %126 = vector.broadcast %c14_i32_33 : i32 to vector<1x256xi32>
    %127 = arith.cmpi sle, %0, %126 : vector<1x256xi32>
    %cst_34 = arith.constant 0.000000e+00 : f32
    %128 = vector.shape_cast %127 : vector<1x256xi1> to vector<1x256xi1>
    %129 = vector.broadcast %128 : vector<1x256xi1> to vector<24x256xi1>
    %130 = vector.broadcast %cst_34 : f32 to vector<24x256xf32>
    %131 = arith.select %129, %125, %130 : vector<24x256xi1>, vector<24x256xf32>
    %132 = vector.extract_strided_slice %30 {offsets = [0, 7], sizes = [24, 1], strides = [1, 1]} : vector<24x9xf32> to vector<24x1xf32>
    %133 = vector.broadcast %132 : vector<24x1xf32> to vector<24x256xf32>
    %134 = arith.mulf %131, %133 : vector<24x256xf32>
    %135 = arith.addf %122, %134 : vector<24x256xf32>
    %136 = vector.extract_strided_slice %29 {offsets = [0, 17], sizes = [24, 239], strides = [1, 1]} : vector<24x256xf32> to vector<24x239xf32>
    %137 = vector.extract_strided_slice %29 {offsets = [0, 0], sizes = [24, 17], strides = [1, 1]} : vector<24x256xf32> to vector<24x17xf32>
    %138 = tpu.concatenate %136, %137 in 1 : vector<24x239xf32>, vector<24x17xf32> -> vector<24x256xf32>
    %c14_i32_35 = arith.constant 14 : i32
    %139 = vector.broadcast %c14_i32_35 : i32 to vector<1x256xi32>
    %140 = arith.cmpi sle, %0, %139 : vector<1x256xi32>
    %c14_i32_36 = arith.constant 14 : i32
    %141 = vector.broadcast %c14_i32_36 : i32 to vector<1x256xi32>
    %142 = arith.cmpi sle, %1, %141 : vector<1x256xi32>
    %143 = arith.andi %140, %142 : vector<1x256xi1>
    %cst_37 = arith.constant 0.000000e+00 : f32
    %144 = vector.shape_cast %143 : vector<1x256xi1> to vector<1x256xi1>
    %145 = vector.broadcast %144 : vector<1x256xi1> to vector<24x256xi1>
    %146 = vector.broadcast %cst_37 : f32 to vector<24x256xf32>
    %147 = arith.select %145, %138, %146 : vector<24x256xi1>, vector<24x256xf32>
    %148 = vector.extract_strided_slice %30 {offsets = [0, 8], sizes = [24, 1], strides = [1, 1]} : vector<24x9xf32> to vector<24x1xf32>
    %149 = vector.broadcast %148 : vector<24x1xf32> to vector<24x256xf32>
    %150 = arith.mulf %147, %149 : vector<24x256xf32>
    %151 = arith.addf %135, %150 : vector<24x256xf32>
    %152 = vector.extract_strided_slice %151 {offsets = [0, 0], sizes = [8, 256], strides = [1, 1]} : vector<24x256xf32> to vector<8x256xf32>
    %153 = vector.extract_strided_slice %151 {offsets = [8, 0], sizes = [8, 256], strides = [1, 1]} : vector<24x256xf32> to vector<8x256xf32>
    %154 = vector.extract_strided_slice %151 {offsets = [16, 0], sizes = [8, 256], strides = [1, 1]} : vector<24x256xf32> to vector<8x256xf32>
    %155 = arith.mulf %152, %152 : vector<8x256xf32>
    %cst_38 = arith.constant dense<0.000000e+00> : vector<8xf32>
    %156 = vector.multi_reduction <add>, %155, %cst_38 [1] : vector<8x256xf32> to vector<8xf32>
    %157 = vector.shape_cast %156 : vector<8xf32> to vector<8x1xf32>
    %cst_39 = arith.constant 1.000000e-24 : f32
    %158 = vector.broadcast %cst_39 : f32 to vector<8x1xf32>
    %159 = arith.maximumf %157, %158 : vector<8x1xf32>
    %160 = math.rsqrt %159 : vector<8x1xf32>
    %161 = vector.broadcast %160 : vector<8x1xf32> to vector<8x256xf32>
    %162 = arith.mulf %152, %161 : vector<8x256xf32>
    %163 = arith.mulf %153, %153 : vector<8x256xf32>
    %cst_40 = arith.constant dense<0.000000e+00> : vector<8xf32>
    %164 = vector.multi_reduction <add>, %163, %cst_40 [1] : vector<8x256xf32> to vector<8xf32>
    %165 = vector.shape_cast %164 : vector<8xf32> to vector<8x1xf32>
    %cst_41 = arith.constant 1.000000e-24 : f32
    %166 = vector.broadcast %cst_41 : f32 to vector<8x1xf32>
    %167 = arith.maximumf %165, %166 : vector<8x1xf32>
    %168 = math.rsqrt %167 : vector<8x1xf32>
    %169 = vector.broadcast %168 : vector<8x1xf32> to vector<8x256xf32>
    %170 = arith.mulf %153, %169 : vector<8x256xf32>
    %c0_42 = arith.constant 0 : index
    %c0_43 = arith.constant 0 : index
    %171 = vector.load %arg4[%c0_42, %c0_43] : memref<8x1xf32, #tpu.memory_space<vmem>>, vector<8x1xf32>
    %172 = vector.broadcast %171 : vector<8x1xf32> to vector<8x256xf32>
    %173 = arith.mulf %162, %172 : vector<8x256xf32>
    %cst_44 = arith.constant dense<0.000000e+00> : vector<8x8xf32>
    %174 = tpu.matmul %173, %170, %cst_44 {dimension_numbers = #tpu.dot_dimension_numbers<[1], [1], [0], [0], [0, 0, 1, 0], [], []>} : vector<8x256xf32>, vector<8x256xf32>, vector<8x8xf32> -> vector<8x8xf32>
    %c0_45 = arith.constant 0 : index
    %c0_46 = arith.constant 0 : index
    %175 = vector.load %arg5[%c0_45, %c0_46] : memref<8x8xf32, #tpu.memory_space<vmem>>, vector<8x8xf32>
    %176 = arith.addf %174, %175 : vector<8x8xf32>
    %cst_47 = arith.constant dense<0xFF800000> : vector<8xf32>
    %177 = vector.multi_reduction <maximumf>, %176, %cst_47 [1] : vector<8x8xf32> to vector<8xf32>
    %178 = vector.shape_cast %177 : vector<8xf32> to vector<8x1xf32>
    %179 = vector.broadcast %178 : vector<8x1xf32> to vector<8x8xf32>
    %180 = arith.subf %176, %179 : vector<8x8xf32>
    %181 = math.exp %180 : vector<8x8xf32>
    %cst_48 = arith.constant dense<0.000000e+00> : vector<8xf32>
    %182 = vector.multi_reduction <add>, %181, %cst_48 [1] : vector<8x8xf32> to vector<8xf32>
    %183 = vector.shape_cast %182 : vector<8xf32> to vector<8x1xf32>
    %184 = vector.broadcast %183 : vector<8x1xf32> to vector<8x8xf32>
    %185 = arith.divf %181, %184 : vector<8x8xf32>
    %cst_49 = arith.constant dense<0.000000e+00> : vector<8x256xf32>
    %186 = tpu.matmul %185, %154, %cst_49 {dimension_numbers = #tpu.dot_dimension_numbers<[1], [0], [0], [1], [0, 0, 1, 1], [], []>} : vector<8x8xf32>, vector<8x256xf32>, vector<8x256xf32> -> vector<8x256xf32>
    %c0_50 = arith.constant 0 : index
    %c0_51 = arith.constant 0 : index
    %187 = vector.load %arg10[%c0_50, %c0_51] : memref<8x8xf32, #tpu.memory_space<vmem>>, vector<8x8xf32>
    %cst_52 = arith.constant dense<0.000000e+00> : vector<8x256xf32>
    %188 = tpu.matmul %187, %186, %cst_52 {dimension_numbers = #tpu.dot_dimension_numbers<[1], [0], [0], [1], [0, 0, 1, 1], [], []>} : vector<8x8xf32>, vector<8x256xf32>, vector<8x256xf32> -> vector<8x256xf32>
    %189 = arith.addf %3, %188 : vector<8x256xf32>
    %cst_53 = arith.constant dense<0.000000e+00> : vector<256xf32>
    %190 = vector.multi_reduction <add>, %189, %cst_53 [0] : vector<8x256xf32> to vector<256xf32>
    %191 = vector.shape_cast %190 : vector<256xf32> to vector<1x256xf32>
    %192 = arith.mulf %189, %189 : vector<8x256xf32>
    %cst_54 = arith.constant dense<0.000000e+00> : vector<256xf32>
    %193 = vector.multi_reduction <add>, %192, %cst_54 [0] : vector<8x256xf32> to vector<256xf32>
    %194 = vector.shape_cast %193 : vector<256xf32> to vector<1x256xf32>
    %cst_55 = arith.constant 1.250000e-01 : f32
    %195 = vector.broadcast %cst_55 : f32 to vector<1x256xf32>
    %196 = arith.mulf %191, %195 : vector<1x256xf32>
    %cst_56 = arith.constant 1.250000e-01 : f32
    %197 = vector.broadcast %cst_56 : f32 to vector<1x256xf32>
    %198 = arith.mulf %194, %197 : vector<1x256xf32>
    %199 = arith.mulf %196, %196 : vector<1x256xf32>
    %200 = arith.subf %198, %199 : vector<1x256xf32>
    %201 = vector.broadcast %196 : vector<1x256xf32> to vector<8x256xf32>
    %202 = arith.subf %189, %201 : vector<8x256xf32>
    %cst_57 = arith.constant 9.99999974E-6 : f32
    %203 = vector.broadcast %cst_57 : f32 to vector<1x256xf32>
    %204 = arith.addf %200, %203 : vector<1x256xf32>
    %205 = math.rsqrt %204 : vector<1x256xf32>
    %206 = vector.broadcast %205 : vector<1x256xf32> to vector<8x256xf32>
    %207 = arith.mulf %202, %206 : vector<8x256xf32>
    %c0_58 = arith.constant 0 : index
    %c0_59 = arith.constant 0 : index
    %208 = vector.load %arg11[%c0_58, %c0_59] : memref<8x1xf32, #tpu.memory_space<vmem>>, vector<8x1xf32>
    %209 = vector.broadcast %208 : vector<8x1xf32> to vector<8x256xf32>
    %210 = arith.mulf %207, %209 : vector<8x256xf32>
    %c0_60 = arith.constant 0 : index
    %c0_61 = arith.constant 0 : index
    %211 = vector.load %arg12[%c0_60, %c0_61] : memref<8x1xf32, #tpu.memory_space<vmem>>, vector<8x1xf32>
    %212 = vector.broadcast %211 : vector<8x1xf32> to vector<8x256xf32>
    %213 = arith.addf %210, %212 : vector<8x256xf32>
    %c0_62 = arith.constant 0 : index
    %c0_63 = arith.constant 0 : index
    %214 = vector.load %arg13[%c0_62, %c0_63] : memref<32x8xf32, #tpu.memory_space<vmem>>, vector<32x8xf32>
    %cst_64 = arith.constant dense<0.000000e+00> : vector<32x256xf32>
    %215 = tpu.matmul %214, %213, %cst_64 {dimension_numbers = #tpu.dot_dimension_numbers<[1], [0], [0], [1], [0, 0, 1, 1], [], []>} : vector<32x8xf32>, vector<8x256xf32>, vector<32x256xf32> -> vector<32x256xf32>
    %c0_65 = arith.constant 0 : index
    %c0_66 = arith.constant 0 : index
    %216 = vector.load %arg14[%c0_65, %c0_66] : memref<32x9xf32, #tpu.memory_space<vmem>>, vector<32x9xf32>
    %cst_67 = arith.constant 0.000000e+00 : f32
    %217 = vector.broadcast %cst_67 : f32 to vector<32x256xf32>
    %218 = vector.extract_strided_slice %215 {offsets = [0, 239], sizes = [32, 17], strides = [1, 1]} : vector<32x256xf32> to vector<32x17xf32>
    %219 = vector.extract_strided_slice %215 {offsets = [0, 0], sizes = [32, 239], strides = [1, 1]} : vector<32x256xf32> to vector<32x239xf32>
    %220 = tpu.concatenate %218, %219 in 1 : vector<32x17xf32>, vector<32x239xf32> -> vector<32x256xf32>
    %c1_i32_68 = arith.constant 1 : i32
    %221 = vector.broadcast %c1_i32_68 : i32 to vector<1x256xi32>
    %222 = arith.cmpi sge, %0, %221 : vector<1x256xi32>
    %c1_i32_69 = arith.constant 1 : i32
    %223 = vector.broadcast %c1_i32_69 : i32 to vector<1x256xi32>
    %224 = arith.cmpi sge, %1, %223 : vector<1x256xi32>
    %225 = arith.andi %222, %224 : vector<1x256xi1>
    %cst_70 = arith.constant 0.000000e+00 : f32
    %226 = vector.shape_cast %225 : vector<1x256xi1> to vector<1x256xi1>
    %227 = vector.broadcast %226 : vector<1x256xi1> to vector<32x256xi1>
    %228 = vector.broadcast %cst_70 : f32 to vector<32x256xf32>
    %229 = arith.select %227, %220, %228 : vector<32x256xi1>, vector<32x256xf32>
    %230 = vector.extract_strided_slice %216 {offsets = [0, 0], sizes = [32, 1], strides = [1, 1]} : vector<32x9xf32> to vector<32x1xf32>
    %231 = vector.broadcast %230 : vector<32x1xf32> to vector<32x256xf32>
    %232 = arith.mulf %229, %231 : vector<32x256xf32>
    %233 = arith.addf %217, %232 : vector<32x256xf32>
    %234 = vector.extract_strided_slice %215 {offsets = [0, 240], sizes = [32, 16], strides = [1, 1]} : vector<32x256xf32> to vector<32x16xf32>
    %235 = vector.extract_strided_slice %215 {offsets = [0, 0], sizes = [32, 240], strides = [1, 1]} : vector<32x256xf32> to vector<32x240xf32>
    %236 = tpu.concatenate %234, %235 in 1 : vector<32x16xf32>, vector<32x240xf32> -> vector<32x256xf32>
    %c1_i32_71 = arith.constant 1 : i32
    %237 = vector.broadcast %c1_i32_71 : i32 to vector<1x256xi32>
    %238 = arith.cmpi sge, %0, %237 : vector<1x256xi32>
    %cst_72 = arith.constant 0.000000e+00 : f32
    %239 = vector.shape_cast %238 : vector<1x256xi1> to vector<1x256xi1>
    %240 = vector.broadcast %239 : vector<1x256xi1> to vector<32x256xi1>
    %241 = vector.broadcast %cst_72 : f32 to vector<32x256xf32>
    %242 = arith.select %240, %236, %241 : vector<32x256xi1>, vector<32x256xf32>
    %243 = vector.extract_strided_slice %216 {offsets = [0, 1], sizes = [32, 1], strides = [1, 1]} : vector<32x9xf32> to vector<32x1xf32>
    %244 = vector.broadcast %243 : vector<32x1xf32> to vector<32x256xf32>
    %245 = arith.mulf %242, %244 : vector<32x256xf32>
    %246 = arith.addf %233, %245 : vector<32x256xf32>
    %247 = vector.extract_strided_slice %215 {offsets = [0, 241], sizes = [32, 15], strides = [1, 1]} : vector<32x256xf32> to vector<32x15xf32>
    %248 = vector.extract_strided_slice %215 {offsets = [0, 0], sizes = [32, 241], strides = [1, 1]} : vector<32x256xf32> to vector<32x241xf32>
    %249 = tpu.concatenate %247, %248 in 1 : vector<32x15xf32>, vector<32x241xf32> -> vector<32x256xf32>
    %c1_i32_73 = arith.constant 1 : i32
    %250 = vector.broadcast %c1_i32_73 : i32 to vector<1x256xi32>
    %251 = arith.cmpi sge, %0, %250 : vector<1x256xi32>
    %c14_i32_74 = arith.constant 14 : i32
    %252 = vector.broadcast %c14_i32_74 : i32 to vector<1x256xi32>
    %253 = arith.cmpi sle, %1, %252 : vector<1x256xi32>
    %254 = arith.andi %251, %253 : vector<1x256xi1>
    %cst_75 = arith.constant 0.000000e+00 : f32
    %255 = vector.shape_cast %254 : vector<1x256xi1> to vector<1x256xi1>
    %256 = vector.broadcast %255 : vector<1x256xi1> to vector<32x256xi1>
    %257 = vector.broadcast %cst_75 : f32 to vector<32x256xf32>
    %258 = arith.select %256, %249, %257 : vector<32x256xi1>, vector<32x256xf32>
    %259 = vector.extract_strided_slice %216 {offsets = [0, 2], sizes = [32, 1], strides = [1, 1]} : vector<32x9xf32> to vector<32x1xf32>
    %260 = vector.broadcast %259 : vector<32x1xf32> to vector<32x256xf32>
    %261 = arith.mulf %258, %260 : vector<32x256xf32>
    %262 = arith.addf %246, %261 : vector<32x256xf32>
    %263 = vector.extract_strided_slice %215 {offsets = [0, 255], sizes = [32, 1], strides = [1, 1]} : vector<32x256xf32> to vector<32x1xf32>
    %264 = vector.extract_strided_slice %215 {offsets = [0, 0], sizes = [32, 255], strides = [1, 1]} : vector<32x256xf32> to vector<32x255xf32>
    %265 = tpu.concatenate %263, %264 in 1 : vector<32x1xf32>, vector<32x255xf32> -> vector<32x256xf32>
    %c1_i32_76 = arith.constant 1 : i32
    %266 = vector.broadcast %c1_i32_76 : i32 to vector<1x256xi32>
    %267 = arith.cmpi sge, %1, %266 : vector<1x256xi32>
    %cst_77 = arith.constant 0.000000e+00 : f32
    %268 = vector.shape_cast %267 : vector<1x256xi1> to vector<1x256xi1>
    %269 = vector.broadcast %268 : vector<1x256xi1> to vector<32x256xi1>
    %270 = vector.broadcast %cst_77 : f32 to vector<32x256xf32>
    %271 = arith.select %269, %265, %270 : vector<32x256xi1>, vector<32x256xf32>
    %272 = vector.extract_strided_slice %216 {offsets = [0, 3], sizes = [32, 1], strides = [1, 1]} : vector<32x9xf32> to vector<32x1xf32>
    %273 = vector.broadcast %272 : vector<32x1xf32> to vector<32x256xf32>
    %274 = arith.mulf %271, %273 : vector<32x256xf32>
    %275 = arith.addf %262, %274 : vector<32x256xf32>
    %276 = vector.extract_strided_slice %216 {offsets = [0, 4], sizes = [32, 1], strides = [1, 1]} : vector<32x9xf32> to vector<32x1xf32>
    %277 = vector.broadcast %276 : vector<32x1xf32> to vector<32x256xf32>
    %278 = arith.mulf %215, %277 : vector<32x256xf32>
    %279 = arith.addf %275, %278 : vector<32x256xf32>
    %280 = vector.extract_strided_slice %215 {offsets = [0, 1], sizes = [32, 255], strides = [1, 1]} : vector<32x256xf32> to vector<32x255xf32>
    %281 = vector.extract_strided_slice %215 {offsets = [0, 0], sizes = [32, 1], strides = [1, 1]} : vector<32x256xf32> to vector<32x1xf32>
    %282 = tpu.concatenate %280, %281 in 1 : vector<32x255xf32>, vector<32x1xf32> -> vector<32x256xf32>
    %c14_i32_78 = arith.constant 14 : i32
    %283 = vector.broadcast %c14_i32_78 : i32 to vector<1x256xi32>
    %284 = arith.cmpi sle, %1, %283 : vector<1x256xi32>
    %cst_79 = arith.constant 0.000000e+00 : f32
    %285 = vector.shape_cast %284 : vector<1x256xi1> to vector<1x256xi1>
    %286 = vector.broadcast %285 : vector<1x256xi1> to vector<32x256xi1>
    %287 = vector.broadcast %cst_79 : f32 to vector<32x256xf32>
    %288 = arith.select %286, %282, %287 : vector<32x256xi1>, vector<32x256xf32>
    %289 = vector.extract_strided_slice %216 {offsets = [0, 5], sizes = [32, 1], strides = [1, 1]} : vector<32x9xf32> to vector<32x1xf32>
    %290 = vector.broadcast %289 : vector<32x1xf32> to vector<32x256xf32>
    %291 = arith.mulf %288, %290 : vector<32x256xf32>
    %292 = arith.addf %279, %291 : vector<32x256xf32>
    %293 = vector.extract_strided_slice %215 {offsets = [0, 15], sizes = [32, 241], strides = [1, 1]} : vector<32x256xf32> to vector<32x241xf32>
    %294 = vector.extract_strided_slice %215 {offsets = [0, 0], sizes = [32, 15], strides = [1, 1]} : vector<32x256xf32> to vector<32x15xf32>
    %295 = tpu.concatenate %293, %294 in 1 : vector<32x241xf32>, vector<32x15xf32> -> vector<32x256xf32>
    %c14_i32_80 = arith.constant 14 : i32
    %296 = vector.broadcast %c14_i32_80 : i32 to vector<1x256xi32>
    %297 = arith.cmpi sle, %0, %296 : vector<1x256xi32>
    %c1_i32_81 = arith.constant 1 : i32
    %298 = vector.broadcast %c1_i32_81 : i32 to vector<1x256xi32>
    %299 = arith.cmpi sge, %1, %298 : vector<1x256xi32>
    %300 = arith.andi %297, %299 : vector<1x256xi1>
    %cst_82 = arith.constant 0.000000e+00 : f32
    %301 = vector.shape_cast %300 : vector<1x256xi1> to vector<1x256xi1>
    %302 = vector.broadcast %301 : vector<1x256xi1> to vector<32x256xi1>
    %303 = vector.broadcast %cst_82 : f32 to vector<32x256xf32>
    %304 = arith.select %302, %295, %303 : vector<32x256xi1>, vector<32x256xf32>
    %305 = vector.extract_strided_slice %216 {offsets = [0, 6], sizes = [32, 1], strides = [1, 1]} : vector<32x9xf32> to vector<32x1xf32>
    %306 = vector.broadcast %305 : vector<32x1xf32> to vector<32x256xf32>
    %307 = arith.mulf %304, %306 : vector<32x256xf32>
    %308 = arith.addf %292, %307 : vector<32x256xf32>
    %309 = vector.extract_strided_slice %215 {offsets = [0, 16], sizes = [32, 240], strides = [1, 1]} : vector<32x256xf32> to vector<32x240xf32>
    %310 = vector.extract_strided_slice %215 {offsets = [0, 0], sizes = [32, 16], strides = [1, 1]} : vector<32x256xf32> to vector<32x16xf32>
    %311 = tpu.concatenate %309, %310 in 1 : vector<32x240xf32>, vector<32x16xf32> -> vector<32x256xf32>
    %c14_i32_83 = arith.constant 14 : i32
    %312 = vector.broadcast %c14_i32_83 : i32 to vector<1x256xi32>
    %313 = arith.cmpi sle, %0, %312 : vector<1x256xi32>
    %cst_84 = arith.constant 0.000000e+00 : f32
    %314 = vector.shape_cast %313 : vector<1x256xi1> to vector<1x256xi1>
    %315 = vector.broadcast %314 : vector<1x256xi1> to vector<32x256xi1>
    %316 = vector.broadcast %cst_84 : f32 to vector<32x256xf32>
    %317 = arith.select %315, %311, %316 : vector<32x256xi1>, vector<32x256xf32>
    %318 = vector.extract_strided_slice %216 {offsets = [0, 7], sizes = [32, 1], strides = [1, 1]} : vector<32x9xf32> to vector<32x1xf32>
    %319 = vector.broadcast %318 : vector<32x1xf32> to vector<32x256xf32>
    %320 = arith.mulf %317, %319 : vector<32x256xf32>
    %321 = arith.addf %308, %320 : vector<32x256xf32>
    %322 = vector.extract_strided_slice %215 {offsets = [0, 17], sizes = [32, 239], strides = [1, 1]} : vector<32x256xf32> to vector<32x239xf32>
    %323 = vector.extract_strided_slice %215 {offsets = [0, 0], sizes = [32, 17], strides = [1, 1]} : vector<32x256xf32> to vector<32x17xf32>
    %324 = tpu.concatenate %322, %323 in 1 : vector<32x239xf32>, vector<32x17xf32> -> vector<32x256xf32>
    %c14_i32_85 = arith.constant 14 : i32
    %325 = vector.broadcast %c14_i32_85 : i32 to vector<1x256xi32>
    %326 = arith.cmpi sle, %0, %325 : vector<1x256xi32>
    %c14_i32_86 = arith.constant 14 : i32
    %327 = vector.broadcast %c14_i32_86 : i32 to vector<1x256xi32>
    %328 = arith.cmpi sle, %1, %327 : vector<1x256xi32>
    %329 = arith.andi %326, %328 : vector<1x256xi1>
    %cst_87 = arith.constant 0.000000e+00 : f32
    %330 = vector.shape_cast %329 : vector<1x256xi1> to vector<1x256xi1>
    %331 = vector.broadcast %330 : vector<1x256xi1> to vector<32x256xi1>
    %332 = vector.broadcast %cst_87 : f32 to vector<32x256xf32>
    %333 = arith.select %331, %324, %332 : vector<32x256xi1>, vector<32x256xf32>
    %334 = vector.extract_strided_slice %216 {offsets = [0, 8], sizes = [32, 1], strides = [1, 1]} : vector<32x9xf32> to vector<32x1xf32>
    %335 = vector.broadcast %334 : vector<32x1xf32> to vector<32x256xf32>
    %336 = arith.mulf %333, %335 : vector<32x256xf32>
    %337 = arith.addf %321, %336 : vector<32x256xf32>
    %338 = vector.extract_strided_slice %337 {offsets = [0, 0], sizes = [16, 256], strides = [1, 1]} : vector<32x256xf32> to vector<16x256xf32>
    %339 = vector.extract_strided_slice %337 {offsets = [16, 0], sizes = [16, 256], strides = [1, 1]} : vector<32x256xf32> to vector<16x256xf32>
    %cst_88 = arith.constant 5.000000e-01 : f32
    %340 = vector.broadcast %cst_88 : f32 to vector<16x256xf32>
    %341 = arith.mulf %340, %338 : vector<16x256xf32>
    %cst_89 = arith.constant 0.707106769 : f32
    %342 = vector.broadcast %cst_89 : f32 to vector<16x256xf32>
    %343 = arith.mulf %338, %342 : vector<16x256xf32>
    %344 = math.absf %343 : vector<16x256xf32>
    %cst_90 = arith.constant 0.327591091 : f32
    %345 = vector.broadcast %cst_90 : f32 to vector<16x256xf32>
    %346 = arith.mulf %345, %344 : vector<16x256xf32>
    %cst_91 = arith.constant 1.000000e+00 : f32
    %347 = vector.broadcast %cst_91 : f32 to vector<16x256xf32>
    %348 = arith.addf %347, %346 : vector<16x256xf32>
    %cst_92 = arith.constant 1.000000e+00 : f32
    %349 = vector.broadcast %cst_92 : f32 to vector<16x256xf32>
    %350 = arith.divf %349, %348 : vector<16x256xf32>
    %cst_93 = arith.constant 1.06140542 : f32
    %351 = vector.broadcast %cst_93 : f32 to vector<16x256xf32>
    %352 = arith.mulf %351, %350 : vector<16x256xf32>
    %cst_94 = arith.constant -1.45315206 : f32
    %353 = vector.broadcast %cst_94 : f32 to vector<16x256xf32>
    %354 = arith.addf %352, %353 : vector<16x256xf32>
    %355 = arith.mulf %354, %350 : vector<16x256xf32>
    %cst_95 = arith.constant 1.42141378 : f32
    %356 = vector.broadcast %cst_95 : f32 to vector<16x256xf32>
    %357 = arith.addf %355, %356 : vector<16x256xf32>
    %358 = arith.mulf %357, %350 : vector<16x256xf32>
    %cst_96 = arith.constant -0.284496725 : f32
    %359 = vector.broadcast %cst_96 : f32 to vector<16x256xf32>
    %360 = arith.addf %358, %359 : vector<16x256xf32>
    %361 = arith.mulf %360, %350 : vector<16x256xf32>
    %cst_97 = arith.constant 0.254829586 : f32
    %362 = vector.broadcast %cst_97 : f32 to vector<16x256xf32>
    %363 = arith.addf %361, %362 : vector<16x256xf32>
    %364 = arith.mulf %363, %350 : vector<16x256xf32>
    %cst_98 = arith.constant 0.000000e+00 : f32
    %365 = vector.broadcast %cst_98 : f32 to vector<16x256xf32>
    %366 = arith.subf %365, %344 : vector<16x256xf32>
    %367 = arith.mulf %366, %344 : vector<16x256xf32>
    %368 = math.exp %367 : vector<16x256xf32>
    %369 = arith.mulf %364, %368 : vector<16x256xf32>
    %cst_99 = arith.constant 1.000000e+00 : f32
    %370 = vector.broadcast %cst_99 : f32 to vector<16x256xf32>
    %371 = arith.subf %370, %369 : vector<16x256xf32>
    %cst_100 = arith.constant 0.000000e+00 : f32
    %372 = vector.broadcast %cst_100 : f32 to vector<16x256xf32>
    %373 = arith.cmpf oge, %343, %372 : vector<16x256xf32>
    %cst_101 = arith.constant 0.000000e+00 : f32
    %374 = vector.broadcast %cst_101 : f32 to vector<16x256xf32>
    %375 = arith.subf %374, %371 : vector<16x256xf32>
    %376 = arith.select %373, %371, %375 : vector<16x256xi1>, vector<16x256xf32>
    %cst_102 = arith.constant 1.000000e+00 : f32
    %377 = vector.broadcast %cst_102 : f32 to vector<16x256xf32>
    %378 = arith.addf %377, %376 : vector<16x256xf32>
    %379 = arith.mulf %341, %378 : vector<16x256xf32>
    %c0_103 = arith.constant 0 : index
    %c0_104 = arith.constant 0 : index
    %380 = vector.load %arg15[%c0_103, %c0_104] : memref<8x16xf32, #tpu.memory_space<vmem>>, vector<8x16xf32>
    %381 = arith.mulf %379, %339 : vector<16x256xf32>
    %cst_105 = arith.constant dense<0.000000e+00> : vector<8x256xf32>
    %382 = tpu.matmul %380, %381, %cst_105 {dimension_numbers = #tpu.dot_dimension_numbers<[1], [0], [0], [1], [0, 0, 1, 1], [], []>} : vector<8x16xf32>, vector<16x256xf32>, vector<8x256xf32> -> vector<8x256xf32>
    %383 = arith.addf %189, %382 : vector<8x256xf32>
    %c0_106 = arith.constant 0 : index
    %c0_107 = arith.constant 0 : index
    %c0_108 = arith.constant 0 : index
    %384 = vector.load %arg16[%c0_106, %c0_107, %c0_108] : memref<1x8x256xf32, #tpu.memory_space<vmem>>, vector<1x8x256xf32>
    %385 = vector.shape_cast %384 : vector<1x8x256xf32> to vector<8x256xf32>
    %386 = vector.shape_cast %383 : vector<8x256xf32> to vector<1x8x256xf32>
    tpu.vector_store %arg16[%c0_106, %c0_107, %c0_108], %386 {strides = array<i32>} : memref<1x8x256xf32, #tpu.memory_space<vmem>>, vector<1x8x256xf32>,
    return
  }
  func.func @transform_0(%arg0: i32) -> (i32, i32, i32) {
    %c0_i32 = arith.constant 0 : i32
    %c0_i32_0 = arith.constant 0 : i32
    %c0_i32_1 = arith.constant 0 : i32
    return %arg0, %c0_i32, %c0_i32_0 : i32, i32, i32
  }
  func.func @transform_1(%arg0: i32) -> (i32, i32) {
    %c0_i32 = arith.constant 0 : i32
    %c0_i32_0 = arith.constant 0 : i32
    %c0_i32_1 = arith.constant 0 : i32
    return %c0_i32, %c0_i32_0 : i32, i32
  }
  func.func @transform_2(%arg0: i32) -> (i32, i32) {
    %c0_i32 = arith.constant 0 : i32
    %c0_i32_0 = arith.constant 0 : i32
    %c0_i32_1 = arith.constant 0 : i32
    return %c0_i32, %c0_i32_0 : i32, i32
  }
  func.func @transform_3(%arg0: i32) -> (i32, i32) {
    %c0_i32 = arith.constant 0 : i32
    %c0_i32_0 = arith.constant 0 : i32
    %c0_i32_1 = arith.constant 0 : i32
    return %c0_i32, %c0_i32_0 : i32, i32
  }
  func.func @transform_4(%arg0: i32) -> (i32, i32) {
    %c0_i32 = arith.constant 0 : i32
    %c0_i32_0 = arith.constant 0 : i32
    %c0_i32_1 = arith.constant 0 : i32
    return %c0_i32, %c0_i32_0 : i32, i32
  }
  func.func @transform_5(%arg0: i32) -> (i32, i32) {
    %c0_i32 = arith.constant 0 : i32
    %c0_i32_0 = arith.constant 0 : i32
    %c0_i32_1 = arith.constant 0 : i32
    return %c0_i32, %c0_i32_0 : i32, i32
  }
  func.func @transform_6(%arg0: i32) -> (i32, i32) {
    %c0_i32 = arith.constant 0 : i32
    %c0_i32_0 = arith.constant 0 : i32
    %c0_i32_1 = arith.constant 0 : i32
    return %c0_i32, %c0_i32_0 : i32, i32
  }
  func.func @transform_7(%arg0: i32) -> (i32, i32) {
    %c0_i32 = arith.constant 0 : i32
    %c0_i32_0 = arith.constant 0 : i32
    %c0_i32_1 = arith.constant 0 : i32
    return %c0_i32, %c0_i32_0 : i32, i32
  }
  func.func @transform_8(%arg0: i32) -> (i32, i32) {
    %c0_i32 = arith.constant 0 : i32
    %c0_i32_0 = arith.constant 0 : i32
    %c0_i32_1 = arith.constant 0 : i32
    return %c0_i32, %c0_i32_0 : i32, i32
  }
  func.func @transform_9(%arg0: i32) -> (i32, i32) {
    %c0_i32 = arith.constant 0 : i32
    %c0_i32_0 = arith.constant 0 : i32
    %c0_i32_1 = arith.constant 0 : i32
    return %c0_i32, %c0_i32_0 : i32, i32
  }
  func.func @transform_10(%arg0: i32) -> (i32, i32) {
    %c0_i32 = arith.constant 0 : i32
    %c0_i32_0 = arith.constant 0 : i32
    %c0_i32_1 = arith.constant 0 : i32
    return %c0_i32, %c0_i32_0 : i32, i32
  }
  func.func @transform_11(%arg0: i32) -> (i32, i32) {
    %c0_i32 = arith.constant 0 : i32
    %c0_i32_0 = arith.constant 0 : i32
    %c0_i32_1 = arith.constant 0 : i32
    return %c0_i32, %c0_i32_0 : i32, i32
  }
  func.func @transform_12(%arg0: i32) -> (i32, i32) {
    %c0_i32 = arith.constant 0 : i32
    %c0_i32_0 = arith.constant 0 : i32
    %c0_i32_1 = arith.constant 0 : i32
    return %c0_i32, %c0_i32_0 : i32, i32
  }
  func.func @transform_13(%arg0: i32) -> (i32, i32) {
    %c0_i32 = arith.constant 0 : i32
    %c0_i32_0 = arith.constant 0 : i32
    %c0_i32_1 = arith.constant 0 : i32
    return %c0_i32, %c0_i32_0 : i32, i32
  }
  func.func @transform_14(%arg0: i32) -> (i32, i32) {
    %c0_i32 = arith.constant 0 : i32
    %c0_i32_0 = arith.constant 0 : i32
    %c0_i32_1 = arith.constant 0 : i32
    return %c0_i32, %c0_i32_0 : i32, i32
  }
  func.func @transform_15(%arg0: i32) -> (i32, i32, i32) {
    %c0_i32 = arith.constant 0 : i32
    %c0_i32_0 = arith.constant 0 : i32
    %c0_i32_1 = arith.constant 0 : i32
    return %arg0, %c0_i32, %c0_i32_0 : i32, i32, i32
  }
}

</mosaic_0001>

<bundles_post_ra>
// kernel: eq.10
= control target key start
LH: loop header
LB: loop body
LE: loop exit
PB: predicated region body
PF: predicated region fallthrough
CT: control target
= control target key end

     0   :  { %vm7_vm0 = vcmask 31744   ;;  %vm13_vm1 = vcmask 64544   ;;  %s39_s0 = inlined_call_operand.vmem [shape: s32[2,4], index: 0, kind: input, shape index: {}]   ;;  %s40_s1 = inlined_call_operand.vmem [shape: s32[8], index: 1, kind: output, shape index: {}]  }
   0x1   :  { %v4_v0 = vld [vmem:[%s39_s0] sm:$0x3]  ;;  %s22_s0 = smov 4  }
   0x2   :  { %5 = vst [vmem:[#allocation1] sm:$0x3] %v4_v0 }
   0x9   :  { %v10_v1 = vld [vmem:[#allocation1 + $0x1] sm:$0x1]   ;;  %v6_v2 = vld [vmem:[#allocation1] sm:$0x1]  }
   0xa   :  { %11 = vrot.lane.b32.xlu0 %v10_v1, %s22_s0  ;;  %8 = vst.msk [vmem:[#allocation0] sm:$0x1] %vm7_vm0, %v6_v2  }
  0x7c   :  { %v12_v3 = vpop.permute.xlu0 %11  }
  0x7d   :  { %14 = vst.msk [vmem:[#allocation0] sm:$0x1] %vm13_vm1, %v12_v3  }
  0x84   :  { %v18_v4 = vld [vmem:[#allocation0] sm:$0x1] }
  0x85   :  { %20 = vst [vmem:[%s40_s1] sm:$0x1] %v18_v4 }

// kernel: channel_transformer_block_pallas.1
= control target key start
LH: loop header
LB: loop body
LE: loop exit
PB: predicated region body
PF: predicated region fallthrough
CT: control target
= control target key end

     0   :  { %s5753_s0 = inlined_call_operand.hbm [shape: f32[2,8,256], index: 0, kind: input, shape index: {}]   ;;  %s5754_s1 = inlined_call_operand.hbm [shape: s32[1,256], index: 1, kind: input, shape index: {}]   ;;  %s5755_s2 = inlined_call_operand.hbm [shape: s32[1,256], index: 2, kind: input, shape index: {}]   ;;  %s5756_s3 = inlined_call_operand.hbm [shape: f32[8,1], index: 3, kind: input, shape index: {}]   ;;  %s5757_s4 = inlined_call_operand.hbm [shape: f32[8,8], index: 4, kind: input, shape index: {}]   ;;  %s5758_s5 = inlined_call_operand.hbm [shape: f32[8,1], index: 5, kind: input, shape index: {}]   ;;  %s5759_s6 = inlined_call_operand.hbm [shape: f32[8,1], index: 6, kind: input, shape index: {}]   ;;  %s5760_s7 = inlined_call_operand.hbm [shape: f32[24,8], index: 7, kind: input, shape index: {}]   ;;  %s5761_s8 = inlined_call_operand.hbm [shape: f32[24,9], index: 8, kind: input, shape index: {}]   ;;  %s5762_s9 = inlined_call_operand.hbm [shape: f32[8,8], index: 9, kind: input, shape index: {}]   ;;  %s5763_s10 = inlined_call_operand.hbm [shape: f32[8,1], index: 10, kind: input, shape index: {}]   ;;  %s5764_s11 = inlined_call_operand.hbm [shape: f32[8,1], index: 11, kind: input, shape index: {}]   ;;  %s5765_s12 = inlined_call_operand.hbm [shape: f32[32,8], index: 12, kind: input, shape index: {}]   ;;  %s5766_s13 = inlined_call_operand.hbm [shape: f32[32,9], index: 13, kind: input, shape index: {}]   ;;  %s5767_s14 = inlined_call_operand.hbm [shape: f32[8,16], index: 14, kind: input, shape index: {}]   ;;  %s5768_s15 = inlined_call_operand.hbm [shape: f32[2,8,256], index: 15, kind: output, shape index: {}]  }
   0x1   :  { %5861 = sst [smem:[#allocation66_spill]] %s5753_s0 }
   0x2   :  { %5862 = sst [smem:[#allocation67_spill]] %s5754_s1 }
   0x3   :  { %5863 = sst [smem:[#allocation68_spill]] %s5755_s2 }
   0x4   :  { %5864 = sst [smem:[#allocation69_spill]] %s5756_s3 }
   0x5   :  { %5865 = sst [smem:[#allocation70_spill]] %s5768_s15 }
   0x6   :  { %20 = vsyncpa [#allocation3], 0 }
   0x7   :  { %22 = vsyncpa [#allocation3 + $0x1], 0 }
   0x8   :  { %23 = vsyncpa [#allocation6], 0 }
   0x9   :  { %24 = vsyncpa [#allocation9], 0 }
   0xa   :  { %25 = vsyncpa [#allocation12], 0 }
   0xb   :  { %26 = vsyncpa [#allocation15], 0 }
   0xc   :  { %27 = vsyncpa [#allocation18], 0 }
   0xd   :  { %28 = vsyncpa [#allocation21], 0 }
   0xe   :  { %29 = vsyncpa [#allocation24], 0 }
   0xf   :  { %30 = vsyncpa [#allocation4], 0 }
  0x10   :  { %32 = vsyncpa [#allocation4 + $0x1], 0  ;;  %s3923_s18 = smov 0   ;;  %s3925_s19 = smov 0  }
  0x11   :  { %s3927_s20 = smov 0   ;;  %s3929_s21 = smov 0  }
  0x12 LB: > { %5866 = sst [smem:[#allocation36_spill]] %s3793_s18  ;;  %s3807_s22 = smov [#allocation5]   ;;  %s3805_s21 = sphi %s3929_s21, %s6139_s21   ;;  %s3801_s20 = sphi %s3927_s20, %s6138_s20   ;;  %s3797_s19 = sphi %s3925_s19, %s6137_s19   ;;  %s3793_s18 = sphi %s3923_s18, %s6135_s18  }
  0x13   : > { %5867 = sst [smem:[#allocation37_spill]] %s3797_s19  ;;  %s402_s23 = sshll.u32 %s3807_s22, 4  ;;  %s3949_s23 = int_to_ptr.vmem [resolvable:$true] %s402_s23 }
  0x14   : > { %s3944_s24 = sadd.s32 4294967295, %s3805_s21   ;;  %p2936_p0 = scmp.ge.s32.totalorder %s3805_s21, 1 }
  0x15   : > { %5868 = sst [smem:[#allocation38_spill]] %s3944_s24  ;;  %p5776_p1 = scmp.eq.s32.totalorder %s3944_s24, 0 }
  0x16   : > { %p389_p2 = scmp.lt.s32.totalorder %s3805_s21, 3  ;;  %s3808_s26 = smov [#allocation8]  }
  0x17   : > { %s424_s27 = sshll.u32 %s3808_s26, 4  ;;  %s3809_s28 = smov [#allocation11]   ;;  %s3958_s27 = int_to_ptr.vmem [resolvable:$true] %s424_s27 }
  0x18   : > { %p3951_p3 = pnand %p2936_p0, %p389_p2  ;;  %s446_s29 = sshll.u32 %s3809_s28, 4  ;;  %s3966_s29 = int_to_ptr.vmem [resolvable:$true] %s446_s29 }
  0x19   : > { %s3810_s16 = smov [#allocation14]   ;;  %s5872_s1 = sld [smem:[#allocation67_spill]] }
  0x1a   : > { %s5869_s25 = scalar_select %p3951_p3, 1, 0 }
  0x1b   : > { %p3055_p5 = pneg %p3951_p3  ;;  %s3968_s17 = sshll.u32 %s3810_s16, 4  ;;  %s468_s17 = int_to_ptr.vmem [resolvable:$true] %s3968_s17 }
  0x1c   : > { %5870 = sst [smem:[#allocation39_spill]] %s5869_s25 }
  0x1d   : > { %p3962_p6 = pnand %p3055_p5, %p5776_p1 }
  0x1f   : > { %s3289_s25 = scalar_lea.hbm %s5872_s1, 32  ;;  %p3978_p8 = pneg %p3962_p6 }
  0x20   : > { %p3290_p7 = scmp.ne.s32.totalorder %s5872_s1, %s3289_s25  ;;  %p3296_p11 = scmp.lt.u32.totalorder %s3289_s25, %s5872_s1 }
  0x22   : > { %p3292_p9 = pnand %p3978_p8, %p3290_p7 }
  0x24   : > { %p3293_p10 = pneg %p3292_p9 }
  0x26   : > { %p3298_p12 = pnand %p3296_p11, %p3293_p10 }
  0x28   : > { %3301 = shalt.err (!%p3298_p12)
}
  0x29   : > { %s3302_s0 = scalar_lea.vmem %s3949_s23, 32  ;;  %p3310_p5 = scmp.lt.s32.totalorder %s3949_s23, %s3949_s23 }
  0x2a   : > { %p3303_p13 = scmp.ne.s32.totalorder %s3949_s23, %s3302_s0  ;;  %p3311_p4 = scmp.lt.s32.totalorder %s3302_s0, %s3302_s0 }
  0x2c   : > { %p3305_p0 = pnand %p3303_p13, %p3978_p8  ;;  %p3312_p7 = por %p3311_p4, %p3310_p5 }
  0x2e   : > { %p3306_p2 = pneg %p3305_p0 }
  0x30   : > { %p3313_p9 = pnand %p3312_p7, %p3306_p2 }
  0x32   : > { %3316 = shalt.err (!%p3313_p9)
}
  0x33   : > { %3058 = dma.hbm_to_vmem [thread:$0]  (!%p3962_p6), %s5872_s1, 32, %s3949_s23, [#allocation6]  }
  0x34   : > { %s5874_s3 = sld [smem:[#allocation69_spill]] }
  0x3a   : > { %s3317_s26 = scalar_lea.hbm %s5874_s3, 128 }
  0x3b   : > { %p3318_p10 = scmp.ne.s32.totalorder %s5874_s3, %s3317_s26  ;;  %p3324_p12 = scmp.lt.u32.totalorder %s3317_s26, %s5874_s3 }
  0x3d   : > { %p3320_p4 = pnand %p3318_p10, %p3978_p8 }
  0x3f   : > { %p3321_p11 = pneg %p3320_p4 }
  0x41   : > { %p3326_p13 = pnand %p3324_p12, %p3321_p11 }
  0x43   : > { %3329 = shalt.err (!%p3326_p13)
}
  0x44   : > { %s3330_s23 = scalar_lea.vmem %s3958_s27, 128  ;;  %p3338_p7 = scmp.lt.s32.totalorder %s3958_s27, %s3958_s27 }
  0x45   : > { %p3331_p0 = scmp.ne.s32.totalorder %s3958_s27, %s3330_s23  ;;  %p3339_p9 = scmp.lt.s32.totalorder %s3330_s23, %s3330_s23 }
  0x47   : > { %p3333_p2 = pnand %p3331_p0, %p3978_p8  ;;  %p3340_p10 = por %p3339_p9, %p3338_p7 }
  0x49   : > { %p3334_p5 = pneg %p3333_p2 }
  0x4b   : > { %p3341_p4 = pnand %p3340_p10, %p3334_p5 }
  0x4d   : > { %3344 = shalt.err (!%p3341_p4)
}
  0x4e   : > { %3064 = dma.hbm_to_vmem [thread:$0]  (!%p3962_p6), %s5874_s3, 128, %s3958_s27, [#allocation9]  }
  0x4f   : > { %s3345_s25 = scalar_lea.hbm %s5758_s5, 128 }
  0x50   : > { %p3346_p11 = scmp.ne.s32.totalorder %s5758_s5, %s3345_s25  ;;  %p3352_p0 = scmp.lt.u32.totalorder %s3345_s25, %s5758_s5 }
  0x52   : > { %p3348_p12 = pnand %p3346_p11, %p3978_p8 }
  0x54   : > { %p3349_p13 = pneg %p3348_p12 }
  0x56   : > { %p3354_p2 = pnand %p3352_p0, %p3349_p13 }
  0x58   : > { %3357 = shalt.err (!%p3354_p2)
}
  0x59   : > { %s3358_s27 = scalar_lea.vmem %s3966_s29, 128  ;;  %p3366_p10 = scmp.lt.s32.totalorder %s3966_s29, %s3966_s29 }
  0x5a   : > { %p3359_p5 = scmp.ne.s32.totalorder %s3966_s29, %s3358_s27  ;;  %p3367_p4 = scmp.lt.s32.totalorder %s3358_s27, %s3358_s27 }
  0x5c   : > { %p3361_p7 = pnand %p3359_p5, %p3978_p8  ;;  %p3368_p11 = por %p3367_p4, %p3366_p10 }
  0x5e   : > { %p3362_p9 = pneg %p3361_p7 }
  0x60   : > { %p3369_p12 = pnand %p3368_p11, %p3362_p9 }
  0x62   : > { %3372 = shalt.err (!%p3369_p12)
}
  0x63   : > { %3070 = dma.hbm_to_vmem [thread:$0]  (!%p3962_p6), %s5758_s5, 128, %s3966_s29, [#allocation12]  }
  0x64   : > { %s3373_s24 = scalar_lea.hbm %s5760_s7, 384 }
  0x65   : > { %p3374_p13 = scmp.ne.s32.totalorder %s5760_s7, %s3373_s24  ;;  %p3380_p5 = scmp.lt.u32.totalorder %s3373_s24, %s5760_s7 }
  0x67   : > { %p3376_p0 = pnand %p3374_p13, %p3978_p8 }
  0x69   : > { %p3377_p2 = pneg %p3376_p0 }
  0x6b   : > { %p3382_p7 = pnand %p3380_p5, %p3377_p2 }
  0x6d   : > { %3385 = shalt.err (!%p3382_p7)
}
  0x6e   : > { %s3386_s0 = scalar_lea.vmem %s468_s17, 384  ;;  %p3394_p11 = scmp.lt.s32.totalorder %s468_s17, %s468_s17 }
  0x6f   : > { %p3387_p9 = scmp.ne.s32.totalorder %s468_s17, %s3386_s0  ;;  %p3395_p12 = scmp.lt.s32.totalorder %s3386_s0, %s3386_s0 }
  0x71   : > { %p3389_p10 = pnand %p3387_p9, %p3978_p8  ;;  %p3396_p1 = por %p3395_p12, %p3394_p11 }
  0x73   : > { %p3390_p4 = pneg %p3389_p10 }
  0x75   : > { %p3397_p3 = pnand %p3396_p1, %p3390_p4 }
  0x77   : > { %3400 = shalt.err (!%p3397_p3)
}
  0x78   : > { %s3811_s29 = smov 128   ;;  %s3812_s27 = smov 8  }
  0x79   : > { %3076 = dma.hbm_to_vmem [thread:$0]  (!%p3962_p6), %s5760_s7, 384, %s468_s17, [#allocation15], %s3811_s29, %s3811_s29, %s3812_s27  }
  0x7a   : > { %s3813_s19 = smov [#allocation17]   ;;  %s3814_s24 = smov [#allocation20]  }
  0x7b   : > { %s494_s15 = sshll.u32 %s3813_s19, 4  ;;  %s516_s25 = sshll.u32 %s3814_s24, 4  ;;  %s495_s15 = int_to_ptr.vmem [resolvable:$true] %s494_s15  ;;  %s4067_s25 = int_to_ptr.vmem [resolvable:$true] %s516_s25 }
  0x7c   : > { %s3401_s16 = scalar_lea.hbm %s5762_s9, 128 }
  0x7d   : > { %p3402_p1 = scmp.ne.s32.totalorder %s5762_s9, %s3401_s16  ;;  %p3408_p0 = scmp.lt.u32.totalorder %s3401_s16, %s5762_s9 }
  0x7f   : > { %p3404_p3 = pnand %p3402_p1, %p3978_p8 }
  0x81   : > { %p3405_p13 = pneg %p3404_p3 }
  0x83   : > { %p3410_p2 = pnand %p3408_p0, %p3405_p13 }
  0x85   : > { %3413 = shalt.err (!%p3410_p2)
}
  0x86   : > { %s3414_s18 = scalar_lea.vmem %s495_s15, 128  ;;  %p3422_p10 = scmp.lt.s32.totalorder %s495_s15, %s495_s15 }
  0x87   : > { %p3415_p5 = scmp.ne.s32.totalorder %s495_s15, %s3414_s18  ;;  %p3423_p4 = scmp.lt.s32.totalorder %s3414_s18, %s3414_s18 }
  0x89   : > { %p3417_p7 = pnand %p3415_p5, %p3978_p8  ;;  %p3424_p11 = por %p3423_p4, %p3422_p10 }
  0x8b   : > { %p3418_p9 = pneg %p3417_p7 }
  0x8d   : > { %p3425_p12 = pnand %p3424_p11, %p3418_p9 }
  0x8f   : > { %3428 = shalt.err (!%p3425_p12)
}
  0x90   : > { %3082 = dma.hbm_to_vmem [thread:$0]  (!%p3962_p6), %s5762_s9, 128, %s495_s15, [#allocation18]  }
  0x91   : > { %s3429_s26 = scalar_lea.hbm %s5764_s11, 128 }
  0x92   : > { %p3430_p1 = scmp.ne.s32.totalorder %s5764_s11, %s3429_s26  ;;  %p3436_p0 = scmp.lt.u32.totalorder %s3429_s26, %s5764_s11 }
  0x94   : > { %p3432_p3 = pnand %p3430_p1, %p3978_p8 }
  0x96   : > { %p3433_p13 = pneg %p3432_p3 }
  0x98   : > { %p3438_p2 = pnand %p3436_p0, %p3433_p13 }
  0x9a   : > { %3441 = shalt.err (!%p3438_p2)
}
  0x9b   : > { %s3442_s15 = scalar_lea.vmem %s4067_s25, 128  ;;  %p3450_p10 = scmp.lt.s32.totalorder %s4067_s25, %s4067_s25 }
  0x9c   : > { %p3443_p5 = scmp.ne.s32.totalorder %s4067_s25, %s3442_s15  ;;  %p3451_p4 = scmp.lt.s32.totalorder %s3442_s15, %s3442_s15 }
  0x9e   : > { %p3445_p7 = pnand %p3443_p5, %p3978_p8  ;;  %p3452_p11 = por %p3451_p4, %p3450_p10 }
  0xa0   : > { %p3446_p9 = pneg %p3445_p7 }
  0xa2   : > { %p3453_p12 = pnand %p3452_p11, %p3446_p9 }
  0xa4   : > { %3456 = shalt.err (!%p3453_p12)
}
  0xa5   : > { %3088 = dma.hbm_to_vmem [thread:$0]  (!%p3962_p6), %s5764_s11, 128, %s4067_s25, [#allocation21]  }
  0xa6   : > { %s3815_s19 = smov [#allocation23]   ;;  %s3816_s22 = smov [#allocation7]  }
  0xa7   : > { %s539_s24 = sshll.u32 %s3815_s19, 4  ;;  %s413_s26 = sshll.u32 %s3816_s22, 4  ;;  %s540_s24 = int_to_ptr.vmem [resolvable:$true] %s539_s24  ;;  %s4110_s26 = int_to_ptr.vmem [resolvable:$true] %s413_s26 }
  0xa8   : > { %s3457_s23 = scalar_lea.hbm %s5766_s13, 512 }
  0xa9   : > { %p3458_p1 = scmp.ne.s32.totalorder %s5766_s13, %s3457_s23  ;;  %p3464_p0 = scmp.lt.u32.totalorder %s3457_s23, %s5766_s13 }
  0xab   : > { %p3460_p3 = pnand %p3458_p1, %p3978_p8 }
  0xad   : > { %p3461_p13 = pneg %p3460_p3 }
  0xaf   : > { %p3466_p2 = pnand %p3464_p0, %p3461_p13 }
  0xb1   : > { %3469 = shalt.err (!%p3466_p2)
}
  0xb2   : > { %s3470_s1 = scalar_lea.vmem %s540_s24, 512  ;;  %p3478_p10 = scmp.lt.s32.totalorder %s540_s24, %s540_s24 }
  0xb3   : > { %p3471_p5 = scmp.ne.s32.totalorder %s540_s24, %s3470_s1  ;;  %p3479_p4 = scmp.lt.s32.totalorder %s3470_s1, %s3470_s1 }
  0xb5   : > { %p3473_p7 = pnand %p3471_p5, %p3978_p8  ;;  %p3480_p11 = por %p3479_p4, %p3478_p10 }
  0xb7   : > { %p3474_p9 = pneg %p3473_p7 }
  0xb9   : > { %p3481_p12 = pnand %p3480_p11, %p3474_p9 }
  0xbb   : > { %3484 = shalt.err (!%p3481_p12)
}
  0xbc   : > { %3094 = dma.hbm_to_vmem [thread:$0]  (!%p3962_p6), %s5766_s13, 512, %s540_s24, [#allocation24], %s3811_s29, %s3811_s29, %s3812_s27  }
  0xbd   : > { %s5875_s2 = sld [smem:[#allocation68_spill]] }
  0xc3   : > { %s3485_s23 = scalar_lea.hbm %s5875_s2, 32 }
  0xc4   : > { %p3486_p1 = scmp.ne.s32.totalorder %s5875_s2, %s3485_s23  ;;  %p3492_p0 = scmp.lt.u32.totalorder %s3485_s23, %s5875_s2 }
  0xc6   : > { %p3488_p3 = pnand %p3486_p1, %p3978_p8 }
  0xc8   : > { %p3489_p13 = pneg %p3488_p3 }
  0xca   : > { %p3494_p2 = pnand %p3492_p0, %p3489_p13 }
  0xcc   : > { %3497 = shalt.err (!%p3494_p2)
}
  0xcd   : > { %s3498_s24 = scalar_lea.vmem %s4110_s26, 32  ;;  %p3506_p10 = scmp.lt.s32.totalorder %s4110_s26, %s4110_s26 }
  0xce   : > { %p3499_p5 = scmp.ne.s32.totalorder %s4110_s26, %s3498_s24  ;;  %p3507_p4 = scmp.lt.s32.totalorder %s3498_s24, %s3498_s24 }
  0xd0   : > { %p3501_p7 = pnand %p3499_p5, %p3978_p8  ;;  %p3508_p11 = por %p3507_p4, %p3506_p10 }
  0xd2   : > { %p3502_p9 = pneg %p3501_p7 }
  0xd4   : > { %p3509_p12 = pnand %p3508_p11, %p3502_p9 }
  0xd6   : > { %3512 = shalt.err (!%p3509_p12)
}
  0xd7   : > { %3061 = dma.hbm_to_vmem [thread:$0]  (!%p3962_p6), %s5875_s2, 32, %s4110_s26, [#allocation6]  }
  0xd8   : > { %s3817_s22 = smov [#allocation10]   ;;  %s3818_s0 = smov [#allocation13]  }
  0xd9   : > { %s435_s16 = sshll.u32 %s3817_s22, 4  ;;  %s457_s23 = sshll.u32 %s3818_s0, 4  ;;  %s436_s16 = int_to_ptr.vmem [resolvable:$true] %s435_s16  ;;  %s4156_s23 = int_to_ptr.vmem [resolvable:$true] %s457_s23 }
  0xda   : > { %s3513_s18 = scalar_lea.hbm %s5757_s4, 128 }
  0xdb   : > { %p3514_p1 = scmp.ne.s32.totalorder %s5757_s4, %s3513_s18  ;;  %p3520_p0 = scmp.lt.u32.totalorder %s3513_s18, %s5757_s4 }
  0xdd   : > { %p3516_p3 = pnand %p3514_p1, %p3978_p8 }
  0xdf   : > { %p3517_p13 = pneg %p3516_p3 }
  0xe1   : > { %p3522_p2 = pnand %p3520_p0, %p3517_p13 }
  0xe3   : > { %3525 = shalt.err (!%p3522_p2)
}
  0xe4   : > { %s3526_s19 = scalar_lea.vmem %s436_s16, 128  ;;  %p3534_p10 = scmp.lt.s32.totalorder %s436_s16, %s436_s16 }
  0xe5   : > { %p3527_p5 = scmp.ne.s32.totalorder %s436_s16, %s3526_s19  ;;  %p3535_p4 = scmp.lt.s32.totalorder %s3526_s19, %s3526_s19 }
  0xe7   : > { %p3529_p7 = pnand %p3527_p5, %p3978_p8  ;;  %p3536_p11 = por %p3535_p4, %p3534_p10 }
  0xe9   : > { %p3530_p9 = pneg %p3529_p7 }
  0xeb   : > { %p3537_p12 = pnand %p3536_p11, %p3530_p9 }
  0xed   : > { %3540 = shalt.err (!%p3537_p12)
}
  0xee   : > { %3067 = dma.hbm_to_vmem [thread:$0]  (!%p3962_p6), %s5757_s4, 128, %s436_s16, [#allocation9]  }
  0xef   : > { %s3541_s18 = scalar_lea.hbm %s5759_s6, 128 }
  0xf0   : > { %p3542_p1 = scmp.ne.s32.totalorder %s5759_s6, %s3541_s18  ;;  %p3548_p0 = scmp.lt.u32.totalorder %s3541_s18, %s5759_s6 }
  0xf2   : > { %p3544_p3 = pnand %p3542_p1, %p3978_p8 }
  0xf4   : > { %p3545_p13 = pneg %p3544_p3 }
  0xf6   : > { %p3550_p2 = pnand %p3548_p0, %p3545_p13 }
  0xf8   : > { %3553 = shalt.err (!%p3550_p2)
}
  0xf9   : > { %s3554_s16 = scalar_lea.vmem %s4156_s23, 128  ;;  %p3562_p10 = scmp.lt.s32.totalorder %s4156_s23, %s4156_s23 }
  0xfa   : > { %p3555_p5 = scmp.ne.s32.totalorder %s4156_s23, %s3554_s16  ;;  %p3563_p4 = scmp.lt.s32.totalorder %s3554_s16, %s3554_s16 }
  0xfc   : > { %p3557_p7 = pnand %p3555_p5, %p3978_p8  ;;  %p3564_p11 = por %p3563_p4, %p3562_p10 }
  0xfe   : > { %p3558_p9 = pneg %p3557_p7 }
 0x100   : > { %p3565_p12 = pnand %p3564_p11, %p3558_p9 }
 0x102   : > { %3568 = shalt.err (!%p3565_p12)
}
 0x103   : > { %3073 = dma.hbm_to_vmem [thread:$0]  (!%p3962_p6), %s5759_s6, 128, %s4156_s23, [#allocation12]  }
 0x104   : > { %s3819_s0 = smov [#allocation16]   ;;  %s3820_s15 = smov [#allocation19]  }
 0x105   : > { %s480_s17 = sshll.u32 %s3819_s0, 4  ;;  %s505_s18 = sshll.u32 %s3820_s15, 4  ;;  %s481_s17 = int_to_ptr.vmem [resolvable:$true] %s480_s17  ;;  %s4199_s18 = int_to_ptr.vmem [resolvable:$true] %s505_s18 }
 0x106   : > { %s3569_s1 = scalar_lea.hbm %s5761_s8, 384 }
 0x107   : > { %p3570_p1 = scmp.ne.s32.totalorder %s5761_s8, %s3569_s1  ;;  %p3576_p0 = scmp.lt.u32.totalorder %s3569_s1, %s5761_s8 }
 0x109   : > { %p3572_p3 = pnand %p3570_p1, %p3978_p8 }
 0x10b   : > { %p3573_p13 = pneg %p3572_p3 }
 0x10d   : > { %p3578_p2 = pnand %p3576_p0, %p3573_p13 }
 0x10f   : > { %3581 = shalt.err (!%p3578_p2)
}
 0x110   : > { %s3582_s22 = scalar_lea.vmem %s481_s17, 384  ;;  %p3590_p10 = scmp.lt.s32.totalorder %s481_s17, %s481_s17 }
 0x111   : > { %p3583_p5 = scmp.ne.s32.totalorder %s481_s17, %s3582_s22  ;;  %p3591_p4 = scmp.lt.s32.totalorder %s3582_s22, %s3582_s22 }
 0x113   : > { %p3585_p7 = pnand %p3583_p5, %p3978_p8  ;;  %p3592_p11 = por %p3591_p4, %p3590_p10 }
 0x115   : > { %p3586_p9 = pneg %p3585_p7 }
 0x117   : > { %p3593_p12 = pnand %p3592_p11, %p3586_p9 }
 0x119   : > { %3596 = shalt.err (!%p3593_p12)
}
 0x11a   : > { %3079 = dma.hbm_to_vmem [thread:$0]  (!%p3962_p6), %s5761_s8, 384, %s481_s17, [#allocation15], %s3811_s29, %s3811_s29, %s3812_s27  }
 0x11b   : > { %s3597_s1 = scalar_lea.hbm %s5763_s10, 128 }
 0x11c   : > { %p3598_p1 = scmp.ne.s32.totalorder %s5763_s10, %s3597_s1  ;;  %p3604_p0 = scmp.lt.u32.totalorder %s3597_s1, %s5763_s10 }
 0x11e   : > { %p3600_p3 = pnand %p3598_p1, %p3978_p8 }
 0x120   : > { %p3601_p13 = pneg %p3600_p3 }
 0x122   : > { %p3606_p2 = pnand %p3604_p0, %p3601_p13 }
 0x124   : > { %3609 = shalt.err (!%p3606_p2)
}
 0x125   : > { %s3610_s17 = scalar_lea.vmem %s4199_s18, 128  ;;  %p3618_p10 = scmp.lt.s32.totalorder %s4199_s18, %s4199_s18 }
 0x126   : > { %p3611_p5 = scmp.ne.s32.totalorder %s4199_s18, %s3610_s17  ;;  %p3619_p4 = scmp.lt.s32.totalorder %s3610_s17, %s3610_s17 }
 0x128   : > { %p3613_p7 = pnand %p3611_p5, %p3978_p8  ;;  %p3620_p11 = por %p3619_p4, %p3618_p10 }
 0x12a   : > { %p3614_p9 = pneg %p3613_p7 }
 0x12c   : > { %p3621_p12 = pnand %p3620_p11, %p3614_p9 }
 0x12e   : > { %3624 = shalt.err (!%p3621_p12)
}
 0x12f   : > { %3085 = dma.hbm_to_vmem [thread:$0]  (!%p3962_p6), %s5763_s10, 128, %s4199_s18, [#allocation18]  }
 0x130   : > { %s3821_s15 = smov [#allocation22]   ;;  %s3822_s24 = smov [#allocation25]  }
 0x131   : > { %s526_s25 = sshll.u32 %s3821_s15, 4  ;;  %s553_s1 = sshll.u32 %s3822_s24, 4  ;;  %s527_s25 = int_to_ptr.vmem [resolvable:$true] %s526_s25  ;;  %s4245_s1 = int_to_ptr.vmem [resolvable:$true] %s553_s1 }
 0x132   : > { %s3625_s19 = scalar_lea.hbm %s5765_s12, 512 }
 0x133   : > { %p3626_p1 = scmp.ne.s32.totalorder %s5765_s12, %s3625_s19  ;;  %p3632_p0 = scmp.lt.u32.totalorder %s3625_s19, %s5765_s12 }
 0x135   : > { %p3628_p3 = pnand %p3626_p1, %p3978_p8 }
 0x137   : > { %p3629_p13 = pneg %p3628_p3 }
 0x139   : > { %p3634_p2 = pnand %p3632_p0, %p3629_p13 }
 0x13b   : > { %3637 = shalt.err (!%p3634_p2)
}
 0x13c   : > { %s3638_s0 = scalar_lea.vmem %s527_s25, 512  ;;  %p3646_p10 = scmp.lt.s32.totalorder %s527_s25, %s527_s25 }
 0x13d   : > { %p3639_p5 = scmp.ne.s32.totalorder %s527_s25, %s3638_s0  ;;  %p3647_p4 = scmp.lt.s32.totalorder %s3638_s0, %s3638_s0 }
 0x13f   : > { %p3641_p7 = pnand %p3639_p5, %p3978_p8  ;;  %p3648_p11 = por %p3647_p4, %p3646_p10 }
 0x141   : > { %p3642_p9 = pneg %p3641_p7 }
 0x143   : > { %p3649_p12 = pnand %p3648_p11, %p3642_p9 }
 0x145   : > { %3652 = shalt.err (!%p3649_p12)
}
 0x146   : > { %3091 = dma.hbm_to_vmem [thread:$0]  (!%p3962_p6), %s5765_s12, 512, %s527_s25, [#allocation21], %s3811_s29, %s3811_s29, %s3812_s27  }
 0x147   : > { %s3653_s19 = scalar_lea.hbm %s5767_s14, 128 }
 0x148   : > { %p3654_p1 = scmp.ne.s32.totalorder %s5767_s14, %s3653_s19  ;;  %p3660_p0 = scmp.lt.u32.totalorder %s3653_s19, %s5767_s14 }
 0x14a   : > { %p3656_p3 = pnand %p3654_p1, %p3978_p8 }
 0x14c   : > { %p3657_p13 = pneg %p3656_p3 }
 0x14e   : > { %p3662_p2 = pnand %p3660_p0, %p3657_p13 }
 0x150   : > { %3665 = shalt.err (!%p3662_p2)
}
 0x151   : > { %s3666_s29 = scalar_lea.vmem %s4245_s1, 128  ;;  %p3674_p10 = scmp.lt.s32.totalorder %s4245_s1, %s4245_s1 }
 0x152   : > { %p3667_p5 = scmp.ne.s32.totalorder %s4245_s1, %s3666_s29  ;;  %p3675_p4 = scmp.lt.s32.totalorder %s3666_s29, %s3666_s29 }
 0x154   : > { %p3669_p7 = pnand %p3667_p5, %p3978_p8  ;;  %p3676_p11 = por %p3675_p4, %p3674_p10 }
 0x156   : > { %p3670_p9 = pneg %p3669_p7 }
 0x158   : > { %p3677_p12 = pnand %p3676_p11, %p3670_p9 }
 0x15a   : > { %3680 = shalt.err (!%p3677_p12)
}
 0x15b   : > { %s5876_s0 = sld [smem:[#allocation37_spill]]  ;;  %s5877_s28 = sld [smem:[#allocation36_spill]] }
 0x15c   : > { %s5878_s15 = sld [smem:[#allocation38_spill]]  ;;  %s2935_s30 = sadd.s32 4294967294, %s3805_s21  }
 0x15d   : > { %3097 = dma.hbm_to_vmem [thread:$0]  (!%p3962_p6), %s5767_s14, 128, %s4245_s1, [#allocation24]  }
 0x15e   : > { %s4293_s24 = sadd.s32 1, %s3805_s21   ;;  %s45_s16 = sadd.s32 1, %s3801_s20 }
 0x15f   : > { %s42_s26 = ssub.s32 %s3805_s21, %s4293_s24  ;;  %p53_p3 = scmp.eq.s32.totalorder %s3805_s21, 0 }
 0x160   : > { %p43_p8 = scmp.eq.s32.totalorder %s42_s26, 0  ;;  %p382_p7 = scmp.eq.s32.totalorder %s2935_s30, 1 }
 0x161   : > { %p52_p1 = scmp.ne.s32.totalorder %s3801_s20, %s5876_s0  ;;  %p58_p13 = scmp.ne.s32.totalorder %s5876_s0, %s5877_s28 }
 0x162   : > { %s4304_s19 = scalar_select %p43_p8, %s3801_s20, %s45_s16  }
 0x163   : > { %p4306_p0 = por %p53_p3, %p52_p1  ;;  %p5880_p2 = scmp.eq.s32.totalorder %s5878_s15, 0 }
 0x164   : > { %p376_p5 = scmp.eq.s32.totalorder %s5878_s15, 1  ;;  %p3120_p9 = scmp.lt.s32.totalorder %s3805_s21, 2 }
 0x165   : > { %p4312_p6 = por %p5880_p2, %p58_p13  ;;  %s564_s17 = sand.u32 1, %s3801_s20  }
 0x166   : > { %p4319_p10 = por %p376_p5, %p52_p1  ;;  %p4323_p4 = por %p382_p7, %p58_p13 }
 0x167   : > { %s2952_s29 = sshll.u32 %s564_s17, 4  ;;  %s2987_s27 = sshll.u32 %s3805_s21, 8 }
 0x168   : > { %s5882_s22 = scalar_select %p4319_p10, 1, 0 }
 0x169   : > { %s5883_s18 = scalar_select %p4323_p4, 1, 0 }
 0x16a   : > { %s5884_s28 = sld [smem:[#allocation66_spill]]  ;;  %s568_s15 = scalar_lea.vmem [#allocation2], %s2952_s29 }
 0x16b   : > { %s576_s30 = sshll.u32 %s568_s15, 4  ;;  %p4337_p11 = pnand %p3120_p9, %p4306_p0  ;;  %s4333_s30 = int_to_ptr.vmem [resolvable:$true] %s576_s30 }
 0x16c   : > { %s565_s2 = scalar_lea.sflag [#allocation3], %s564_s17 }
 0x16d   : > { %p3683_p8 = pneg %p4337_p11 }
 0x170   : > { %s4331_s26 = scalar_lea.hbm %s5884_s28, %s2987_s27  ;;  %s3686_s25 = scalar_lea.hbm %s5884_s28, 512 }
 0x171   : > { %s3681_s3 = scalar_lea.hbm %s4331_s26, 256  ;;  %p3687_p13 = scmp.lt.u32.totalorder %s4331_s26, %s5884_s28 }
 0x172   : > { %p3682_p12 = scmp.ne.s32.totalorder %s4331_s26, %s3681_s3  ;;  %p3688_p0 = scmp.lt.u32.totalorder %s3686_s25, %s3681_s3 }
 0x173   : > { %p3690_p5 = scmp.lt.u32.totalorder %s3681_s3, %s4331_s26 }
 0x174   : > { %p3684_p1 = pnand %p3683_p8, %p3682_p12  ;;  %p3689_p2 = por %p3688_p0, %p3687_p13 }
 0x176   : > { %p3685_p3 = pneg %p3684_p1  ;;  %p3691_p7 = por %p3690_p5, %p3689_p2 }
 0x178   : > { %p3692_p9 = pnand %p3691_p7, %p3685_p3 }
 0x17a   : > { %3695 = shalt.err (!%p3692_p9)
}
 0x17b   : > { %s3696_s17 = scalar_lea.vmem %s4333_s30, 256  ;;  %s3823_s15 = smov [#allocation2]  }
 0x17c   : > { %p3697_p12 = scmp.ne.s32.totalorder %s4333_s30, %s3696_s17  ;;  %s3701_s29 = sshll.u32 %s3823_s15, 4  ;;  %s3702_s29 = int_to_ptr.vmem [resolvable:$false] %s3701_s29 }
 0x17d   : > { %s3703_s27 = scalar_lea.vmem %s3702_s29, 512  ;;  %p3704_p10 = scmp.lt.s32.totalorder %s4333_s30, %s3702_s29 }
 0x17e   : > { %p3699_p1 = pnand %p3697_p12, %p3683_p8  ;;  %p3705_p13 = scmp.lt.s32.totalorder %s3703_s27, %s3696_s17 }
 0x180   : > { %p3700_p4 = pneg %p3699_p1  ;;  %p3706_p0 = por %p3705_p13, %p3704_p10 }
 0x182   : > { %p3707_p2 = pnand %p3706_p0, %p3700_p4 }
 0x184   : > { %3710 = shalt.err (!%p3707_p2)
}
 0x185   : > { %3101 = dma.hbm_to_vmem [thread:$0]  (!%p4337_p11), %s4331_s26, 256, %s4333_s30, %s565_s2  }
 0x186   : > { %s5886_s3 = sld [smem:[#allocation39_spill]] }
 0x18c   : > { %p5887_p3 = scmp.ne.s32.totalorder %s5886_s3, 0 }
 0x18e   : > { %585 = sbr.rel (%p5887_p3) target bundleno = 2865 (0xb31), region = 80 }
 0x195   : > { %s5888_s25 = sld [smem:[#allocation37_spill]] }
 0x19b   : > { %s4369_s23 = sand.u32 1, %s5888_s25  }
 0x19c   : > { %s2956_s0 = sshll.u32 %s4369_s23, 4  ;;  %s588_s17 = scalar_lea.sflag [#allocation3], %s4369_s23 }
 0x19d   : > { %s4375_s15 = scalar_lea.vmem [#allocation2], %s2956_s0 }
 0x19e   : > { %3756 = dma.done.wait (%p4312_p6), %s588_s17, 256  }
 0x19f   : > { %3758 = vsyncadd (%p4312_p6), %s588_s17, 4294967040  ;;  %s5889_s2 = sld [smem:[#allocation38_spill]] }
 0x1a5   : > { %p5890_p10 = scmp.eq.s32.totalorder %s5889_s2, 0 }
 0x1a7   : > { %3760 = dma.done.wait (%p5890_p10), [#allocation6], 64   ;;  %p5891_p4 = pmov %p5890_p10 }
 0x1a9   : > { %3762 = vsyncadd (%p5891_p4), [#allocation6], 4294967232  ;;  %p5892_p11 = pmov %p5891_p4 }
 0x1aa   : > { %p5893_p8 = pmov %p5891_p4 }
 0x1ab   : > { %3764 = dma.done.wait (%p5892_p11), [#allocation9], 256  }
 0x1ac   : > { %3766 = vsyncadd (%p5893_p8), [#allocation9], 4294967040  ;;  %p5894_p5 = pmov %p5891_p4 }
 0x1ad   : > { %p5895_p7 = pmov %p5891_p4 }
 0x1ae   : > { %3768 = dma.done.wait (%p5894_p5), [#allocation12], 256  }
 0x1af   : > { %3770 = vsyncadd (%p5895_p7), [#allocation12], 4294967040  ;;  %p5896_p6 = pmov %p5891_p4 }
 0x1b0   : > { %p5897_p9 = pmov %p5891_p4 }
 0x1b1   : > { %3772 = dma.done.wait (%p5896_p6), [#allocation15], 768  }
 0x1b2   : > { %3774 = vsyncadd (%p5897_p9), [#allocation15], 4294966528  ;;  %p5898_p12 = pmov %p5891_p4 }
 0x1b3   : > { %p5899_p1 = pmov %p5891_p4 }
 0x1b4   : > { %3776 = dma.done.wait (%p5898_p12), [#allocation18], 256  }
 0x1b5   : > { %3778 = vsyncadd (%p5899_p1), [#allocation18], 4294967040  ;;  %p5900_p13 = pmov %p5899_p1 }
 0x1b6   : > { %p5901_p0 = pmov %p5899_p1 }
 0x1b7   : > { %3780 = dma.done.wait (%p5900_p13), [#allocation21], 640  }
 0x1b8   : > { %3782 = vsyncadd (%p5901_p0), [#allocation21], 4294966656  ;;  %p5902_p2 = pmov %p5901_p0 }
 0x1b9   : > { %p5903_p3 = pmov %p5901_p0 }
 0x1ba   : > { %3784 = dma.done.wait (%p5902_p2), [#allocation24], 640  }
 0x1bb   : > { %3786 = vsyncadd (%p5903_p3), [#allocation24], 4294966656  ;;  %v5799_v0 = vmov 0   ;;  %v740_v1 = vld [vmem:[#allocation11] sm:$0xff]  ;;  %v748_v2 = vld [vmem:[#allocation13] sm:$0xff]  ;;  %v5781_v3 = vmov 0.0  }
 0x1bc   : > { %3202 = vset.pattern.permute.xlu0 %v5799_v0  ;;  %3203 = vset.pattern.permute.xlu1 %v5799_v0  ;;  %v853_v4 = vld [vmem:[#allocation16 + $0x8] sm:$0xff]  ;;  %v5797_v5 = vmov 2   ;;  %v852_v6 = vld [vmem:[#allocation16] sm:$0xff]  ;;  %v5791_v7 = vmov 1   ;;  %v5793_v8 = vmov 3   ;;  %v5789_v9 = vmov 4  }
 0x1bd   : > { %743 = vperm.xlu0 %3202, %v740_v1   ;;  %833 = vmatprep.mubr.f32.mxu0 %v5781_v3  ;;  %v5787_v10 = vmov 5   ;;  %v5783_v11 = vmov 6   ;;  %v5785_v12 = vmov 7   ;;  %v5779_v13 = vmov 8   ;;  %v697_v14 = vld [vmem:[%s4375_s15 + $0x8] sm:$0xff]  ;;  %v696_v15 = vld [vmem:[%s4375_s15] sm:$0xff] }
 0x1be   : > { %839 = vmatprep.mubr.f32.mxu1 %v5781_v3  ;;  %916 = vperm.xlu1 %3203, %v853_v4   ;;  %v704_v16 = vrot.slane %v697_v14, 4  ;;  %v711_v17 = vmul.f32 %v697_v14, %v697_v14  ;;  %v698_v18 = vrot.slane %v696_v15, 4  ;;  %v710_v19 = vmul.f32 %v696_v15, %v696_v15  ;;  %v756_v1 = vld [vmem:[#allocation14] sm:$0xff]  ;;  %s3834_s1 = smov 17   ;;  %s3835_s26 = smov 15  }
 0x1bf   : > { %vm5795_vm0 = vcmask 64512   ;;  %s3836_s30 = smov 16   ;;  %s3837_s16 = smov 127   ;;  %vm5802_vm8 = vcmask 138240   ;;  %vm5796_vm10 = vcmask 130048   ;;  %vm5804_vm14 = vcmask 7168  }
 0x1c0   : > { %v705_v20 = vadd.f32 %v704_v16, %v697_v14  ;;  %v718_v21 = vrot.slane %v711_v17, 4  ;;  %v699_v22 = vadd.f32 %v698_v18, %v696_v15  ;;  %v712_v23 = vrot.slane %v710_v19, 4  ;;  %s3838_s29 = smov 1   ;;  %s3839_s27 = smov 113   ;;  %v758_v16 = vld [vmem:[#allocation14 + $0x10] sm:$0xff] }
 0x1c1   : > { %751 = vperm.xlu0 %3202, %v748_v2   ;;  %v757_v2 = vld [vmem:[#allocation14 + $0x8] sm:$0xff]  ;;  %s3840_s3 = smov 112   ;;  %s3841_s25 = smov 111   ;;  %vm5805_vm15 = vcmask 924672  }
 0x1c2   : > { %3204 = vset.pattern.permute.xlu1 %v5791_v7  ;;  %v706_v24 = vrot.slane %v705_v20, 2  ;;  %v719_v25 = vadd.f32 %v718_v21, %v711_v17  ;;  %v700_v26 = vrot.slane %v699_v22, 2  ;;  %v713_v27 = vadd.f32 %v712_v23, %v710_v19  ;;  %s2988_s17 = sshll.u32 %s5889_s2, 8  ;;  %p6131_p4 = scmp.ne.s32.totalorder %s5882_s22, 0 }
 0x1c3   : > { %986 = vperm.xlu1 %3204, %v853_v4  }
 0x1c4   : > { %v707_v28 = vadd.f32 %v706_v24, %v705_v20  ;;  %v720_v29 = vrot.slane %v719_v25, 2  ;;  %v701_v30 = vadd.f32 %v700_v26, %v699_v22  ;;  %v714_v31 = vrot.slane %v713_v27, 2 }
 0x1c5   : > { %3205 = vset.pattern.permute.xlu0 %v5797_v5 }
 0x1c6   : > { %1057 = vperm.xlu0 %3205, %v853_v4   ;;  %v708_v32 = vrot.slane %v707_v28, 1  ;;  %v721_v33 = vadd.f32 %v720_v29, %v719_v25  ;;  %v702_v34 = vrot.slane %v701_v30, 1  ;;  %v715_v35 = vadd.f32 %v714_v31, %v713_v27 }
 0x1c7   : > { %982 = vperm.xlu1 %3204, %v852_v6  }
 0x1c8   : > { %v709_v36 = vadd.f32 %v708_v32, %v707_v28  ;;  %v722_v37 = vrot.slane %v721_v33, 1  ;;  %v703_v38 = vadd.f32 %v702_v34, %v701_v30  ;;  %v716_v39 = vrot.slane %v715_v35, 1 }
 0x1ca   : > { %3208 = vset.pattern.permute.xlu0 %v5793_v8  ;;  %v723_v40 = vadd.f32 %v722_v37, %v721_v33  ;;  %v725_v41 = vmul.f32 0.125, %v709_v36  ;;  %v717_v42 = vadd.f32 %v716_v39, %v715_v35  ;;  %v724_v43 = vmul.f32 0.125, %v703_v38 }
 0x1cb   : > { %1122 = vperm.xlu0 %3208, %v852_v6   ;;  %3206 = vset.pattern.permute.xlu1 %v5797_v5 }
 0x1cc   : > { %1053 = vperm.xlu1 %3206, %v852_v6   ;;  %v727_v44 = vmul.f32 0.125, %v723_v40  ;;  %v729_v45 = vmul.f32 %v725_v41, %v725_v41  ;;  %v726_v46 = vmul.f32 0.125, %v717_v42  ;;  %v728_v47 = vmul.f32 %v724_v43, %v724_v43 }
 0x1cd   : > { %v733_v53 = vsub.f32 %v697_v14, %v725_v41  ;;  %v732_v54 = vsub.f32 %v696_v15, %v724_v43 }
 0x1ce   : > { %v731_v48 = vsub.f32 %v727_v44, %v729_v45  ;;  %v730_v49 = vsub.f32 %v726_v46, %v728_v47  ;;  %v893_v44 = vlaneseq  ;;  %v694_v45 = vld [vmem:[#allocation5] sm:$0x3]  ;;  %v695_v46 = vld [vmem:[#allocation7] sm:$0x3] }
 0x1cf   : > { %3209 = vset.pattern.permute.xlu0 %v5789_v9  ;;  %vm889_vm1 = vcmp.ge.s32.totalorder %v694_v45, 1  ;;  %vm890_vm2 = vcmp.ge.s32.totalorder %v695_v46, 1  ;;  %vm1033_vm4 = vcmp.le.s32.totalorder %v695_v46, 14  ;;  %vm1266_vm5 = vcmp.le.s32.totalorder %v694_v45, 14 }
 0x1d0   : > { %1150 = vperm.xlu0 %3209, %v853_v4   ;;  %3207 = vset.pattern.permute.xlu1 %v5793_v8  ;;  %v735_v50 = vadd.f32 1e-05, %v731_v48  ;;  %v734_v51 = vadd.f32 1e-05, %v730_v49  ;;  %v894_v48 = vshrl.u32 %v893_v44, 7  ;;  %vm891_vm3 = vmand %vm889_vm1, %vm890_vm2 }
 0x1d1   : > { %1126 = vperm.xlu1 %3207, %v853_v4   ;;  %vm1034_vm6 = vmand %vm889_vm1, %vm1033_vm4 }
 0x1d2   : > { %3255 = vrsqrt.f32 %v735_v50  ;;  %vm1267_vm7 = vmand %vm1266_vm5, %vm890_vm2 }
 0x1d3   : > { %3257 = vrsqrt.f32 %v734_v51  ;;  %v4559_v51 = vsub.s32 0, %v894_v48 }
 0x1d4   : > { %1146 = vperm.xlu0 %3209, %v852_v6  }
 0x1d5   : > { %3210 = vset.pattern.permute.xlu1 %v5787_v10 }
 0x1d6   : > { %1219 = vperm.xlu1 %3210, %v853_v4  }
 0x1d8   : > { %3211 = vset.pattern.permute.xlu0 %v5787_v10 }
 0x1d9   : > { %1215 = vperm.xlu0 %3211, %v852_v6  }
 0x1da   : > { %3213 = vset.pattern.permute.xlu1 %v5783_v11 }
 0x1db   : > { %1286 = vperm.xlu1 %3213, %v852_v6  }
 0x1dc   : > { %v3256_v52 = vpop.eup %3255 }
 0x1dd   : > { %3212 = vset.pattern.permute.xlu0 %v5783_v11  ;;  %v3258_v55 = vpop.eup %3257  ;;  %v739_v56 = vmul.f32 %v3256_v52, %v733_v53  ;;  %v4561_v52 = vsub.s32 1, %v894_v48  ;;  %v892_v53 = vsel %vm891_vm3, 1, %v5799_v0  ;;  %v1035_v48 = vsel %vm1034_vm6, 1, %v5799_v0 }
 0x1de   : > { %1290 = vperm.xlu0 %3212, %v853_v4   ;;  %v738_v57 = vmul.f32 %v3258_v55, %v732_v54  ;;  %v964_v55 = vsel %vm889_vm1, 1, %v5799_v0  ;;  %vm4638_vm1 = vmand %vm1266_vm5, %vm1033_vm4 }
 0x1df   : > { %3214 = vset.pattern.permute.xlu1 %v5785_v12 }
 0x1e0   : > { %1359 = vperm.xlu1 %3214, %v853_v4  }
 0x1e2   : > { %3215 = vset.pattern.permute.xlu0 %v5785_v12  ;;  %v4618_v12 = vsel %vm1266_vm5, 1, %v5799_v0 }
 0x1e3   : > { %1355 = vperm.xlu0 %3215, %v852_v6   ;;  %v1341_v7 = vrot.slane %v4618_v12, %v4559_v51 }
 0x1e4   : > { %3218 = vset.pattern.permute.xlu1 %v5799_v0 }
 0x1e7   : > { %3216 = vset.pattern.permute.xlu0 %v5779_v13 }
 0x1e8   : > { %1429 = vperm.xlu0 %3216, %v853_v4  }
 0x1ec   : > { %1425 = vperm.xlu0 %3216, %v852_v6  }
 0x1f0   : > { %3217 = vset.pattern.permute.xlu0 %v5799_v0 }
 0x1f1   : > { %911 = vperm.xlu0 %3217, %v852_v6  }
 0x23c   : > { %v744_v58 = vpop.permute.xlu0 %743 }
 0x23d   : > { %v747_v59 = vmul.f32 %v744_v58, %v739_v56  ;;  %v746_v60 = vmul.f32 %v744_v58, %v738_v57  ;;  %v4501_v17 = vpop.permute.xlu1 %916  ;;  %v896_v57 = vrot.slane %v892_v53, %v4559_v51  ;;  %v900_v58 = vrot.slane %v892_v53, %v4561_v52 }
 0x23f   : > { %vm4578_vm9 = vcmp.eq.s32.totalorder %v896_v57, 1  ;;  %vm4582_vm11 = vcmp.eq.s32.totalorder %v900_v58, 1  ;;  %v1268_v57 = vsel %vm1267_vm7, 1, %v5799_v0 }
 0x240   : > { %v752_v61 = vpop.permute.xlu0 %751 }
 0x241   : > { %v755_v62 = vadd.f32 %v752_v61, %v747_v59  ;;  %v754_v63 = vadd.f32 %v752_v61, %v746_v60  ;;  %v968_v59 = vrot.slane %v964_v55, %v4559_v51  ;;  %v972_v61 = vrot.slane %v964_v55, %v4561_v52 }
 0x242   : > { %v4505_v18 = vpop.permute.xlu1 %986  ;;  %v5911_v55 = vmov 0 }
 0x243   : > { %769 = vmatprep.subr.mxu0 %v755_v62  ;;  %2993 = vmatprep.subr.mxu1 %v755_v62  ;;  %v5905_v62 = vmov 0  ;;  %vm4586_vm12 = vcmp.eq.s32.totalorder %v968_v59, 1  ;;  %vm4598_vm13 = vcmp.eq.s32.totalorder %v972_v61, 1 }
 0x244   : > { %770 = vmatpush1.msra.mxu0 %v754_v63  ;;  %2994 = vmatpush1.msra.mxu1 %v754_v63  ;;  %v5906_v62 = vsel %vm4578_vm9, 4294967295, %v5905_v62  ;;  %v5907_v63 = vmov 0  ;;  %v5912_v55 = vsel %vm4598_vm13, 4294967295, %v5911_v55 }
 0x245   : > { %2972 = vmatmul.mubr.msk.f32.vlgmr.msra.gmra.mrb[0].mxu0 %vm5795_vm0, %v756_v1  ;;  %2973 = vmatmul.mubr.msk.f32.vlgmr.msra.gmra.mrb[0].mxu1 %vm5795_vm0, %v757_v2  ;;  %v4509_v19 = vpop.permute.xlu0 %1057  ;;  %v5908_v63 = vsel %vm4582_vm11, 4294967295, %v5907_v63  ;;  %v5909_v1 = vmov 0 }
 0x246   : > { %845 = vmatprep.mubr.f32.mxu1 %v5781_v3  ;;  %1845 = vmatprep.mubr.f32.mxu0 %v5781_v3  ;;  %v4513_v20 = vpop.permute.xlu1 %982  ;;  %v5910_v1 = vsel %vm4586_vm12, 4294967295, %v5909_v1 }
 0x249   : > { %2974 = vmatmul.mubr.msk.f32.gmra.mrb[2].mxu1 %vm5795_vm0, %v758_v16  ;;  %v1104_v16 = vsel %vm890_vm2, 1, %v5799_v0  ;;  %vm5803_vm2 = vcmask 121856  }
 0x24a   : > { %v4515_v21 = vpop.permute.xlu0 %1122  ;;  %v1112_v61 = vrot.slane %v1104_v16, %v4561_v52 }
 0x24b   : > { %v4517_v22 = vpop.permute.xlu1 %1053 }
 0x24c   : > { %vm4660_vm5 = vcmp.eq.s32.totalorder %v1112_v61, 1 }
 0x24f   : > { %v1151_v23 = vpop.permute.xlu0 %1150 }
 0x250   : > { %v4519_v24 = vpop.permute.xlu1 %1126 }
 0x253   : > { %v1147_v25 = vpop.permute.xlu0 %1146 }
 0x255   : > { %v4521_v26 = vpop.permute.xlu1 %1219 }
 0x258   : > { %v4523_v27 = vpop.permute.xlu0 %1215 }
 0x25a   : > { %v4525_v28 = vpop.permute.xlu1 %1286 }
 0x25d   : > { %v4527_v29 = vpop.permute.xlu0 %1290 }
 0x25f   : > { %v4529_v30 = vpop.permute.xlu1 %1359 }
 0x262   : > { %v4531_v31 = vpop.permute.xlu0 %1355 }
 0x267   : > { %v4533_v33 = vpop.permute.xlu0 %1429 }
 0x26b   : > { %v4535_v35 = vpop.permute.xlu0 %1425 }
 0x26c   : > { %5904 = vst [vmem:[#allocation40_spill] sm:$0xff] %v4535_v35 }
 0x270   : > { %v4541_v38 = vpop.permute.xlu0 %911 }
 0x318   : > { %v4434_v4 = vpop.f32.mrb[0].mxu0  ;;  %v4436_v6 = vpop.f32.mrb[0].mxu1 }
 0x319   : > { %872 = vrot.lane.b32.xlu1 %v4436_v6, %s3834_s1  ;;  %v4440_v14 = vpop.f32.mrb[1].mxu1  ;;  %1014 = vrot.lane.b32.xlu0 %v4434_v4, %s3835_s26  ;;  %v4444_v15 = vpop.f32.mrb[1].mxu0  ;;  %v4596_v53 = vmul.f32 %v1147_v25, %v4434_v4  ;;  %v4604_v58 = vmul.f32 %v1151_v23, %v4436_v6 }
 0x31a   : > { %v4609_v3 = vmul.f32 %v1151_v23, %v4440_v14  ;;  %v4612_v11 = vmul.f32 %v1147_v25, %v4444_v15  ;;  %v1276_v23 = vrot.slane %v1268_v57, %v4561_v52 }
 0x31c   : > { %vm4668_vm7 = vcmp.eq.s32.totalorder %v1276_v23, 1 }
 0x31d   : > { %947 = vrot.lane.b32.xlu1 %v4436_v6, %s3836_s30  ;;  %1173 = vrot.lane.b32.xlu0 %v4436_v6, %s3837_s16 }
 0x321   : > { %860 = vrot.lane.b32.xlu0 %v4440_v14, %s3834_s1  ;;  %870 = vrot.lane.b32.xlu1 %v4434_v4, %s3834_s1 }
 0x325   : > { %938 = vrot.lane.b32.xlu0 %v4440_v14, %s3836_s30  ;;  %945 = vrot.lane.b32.xlu1 %v4434_v4, %s3836_s30 }
 0x329   : > { %1016 = vrot.lane.b32.xlu1 %v4436_v6, %s3835_s26  ;;  %936 = vrot.lane.b32.xlu0 %v4444_v15, %s3836_s30 }
 0x32d   : > { %1087 = vrot.lane.b32.xlu1 %v4436_v6, %s3838_s29  ;;  %1078 = vrot.lane.b32.xlu0 %v4440_v14, %s3838_s29 }
 0x331   : > { %1085 = vrot.lane.b32.xlu1 %v4434_v4, %s3838_s29  ;;  %1240 = vrot.lane.b32.xlu0 %v4444_v15, %s3839_s27 }
 0x335   : > { %1169 = vrot.lane.b32.xlu1 %v4434_v4, %s3837_s16  ;;  %1315 = vrot.lane.b32.xlu0 %v4440_v14, %s3840_s3 }
 0x339   : > { %1242 = vrot.lane.b32.xlu1 %v4436_v6, %s3839_s27  ;;  %1311 = vrot.lane.b32.xlu0 %v4444_v15, %s3840_s3 }
 0x33d   : > { %1238 = vrot.lane.b32.xlu1 %v4434_v4, %s3839_s27  ;;  %1384 = vrot.lane.b32.xlu0 %v4440_v14, %s3841_s25 }
 0x341   : > { %1313 = vrot.lane.b32.xlu1 %v4436_v6, %s3840_s3  ;;  %1380 = vrot.lane.b32.xlu0 %v4444_v15, %s3841_s25 }
 0x345   : > { %1309 = vrot.lane.b32.xlu1 %v4434_v4, %s3840_s3 }
 0x349   : > { %858 = vrot.lane.b32.xlu1 %v4444_v15, %s3834_s1 }
 0x34d   : > { %1007 = vrot.lane.b32.xlu1 %v4440_v14, %s3835_s26 }
 0x351   : > { %1005 = vrot.lane.b32.xlu1 %v4444_v15, %s3835_s26 }
 0x355   : > { %1076 = vrot.lane.b32.xlu1 %v4444_v15, %s3838_s29 }
 0x359   : > { %1175 = vrot.lane.b32.xlu1 %v4440_v14, %s3837_s16 }
 0x35d   : > { %1171 = vrot.lane.b32.xlu1 %v4444_v15, %s3837_s16 }
 0x361   : > { %1244 = vrot.lane.b32.xlu1 %v4440_v14, %s3839_s27  ;;  %v1272_v14 = vrot.slane %v1268_v57, %v4559_v51 }
 0x363   : > { %vm4664_vm6 = vcmp.eq.s32.totalorder %v1272_v14, 1 }
 0x365   : > { %1382 = vrot.lane.b32.xlu1 %v4436_v6, %s3841_s25  ;;  %v1039_v6 = vrot.slane %v1035_v48, %v4559_v51 }
 0x367   : > { %vm4646_vm3 = vcmp.eq.s32.totalorder %v1039_v6, 1  ;;  %v5921_v6 = vmov 0 }
 0x368   : > { %v5922_v6 = vsel %vm4664_vm6, 4294967295, %v5921_v6 }
 0x369   : > { %1378 = vrot.lane.b32.xlu1 %v4434_v4, %s3841_s25  ;;  %v1108_v4 = vrot.slane %v1104_v16, %v4559_v51  ;;  %v1043_v16 = vrot.slane %v1035_v48, %v4561_v52 }
 0x36b   : > { %vm4672_vm0 = vcmp.eq.s32.totalorder %v1043_v16, 1 }
 0x38b   : > { %v873_v32 = vpop.permute.xlu1 %872  ;;  %v4545_v40 = vpop.permute.xlu0 %1014 }
 0x38f   : > { %v948_v34 = vpop.permute.xlu1 %947  ;;  %v4551_v43 = vpop.permute.xlu0 %1173 }
 0x393   : > { %v4537_v36 = vpop.permute.xlu1 %870  ;;  %v861_v49 = vpop.permute.xlu0 %860 }
 0x394   : > { %v878_v10 = vsel %vm5802_vm8, %v873_v32, %v861_v49 }
 0x395   : > { %v906_v57 = vsel %vm4582_vm11, %v878_v10, 0.0  ;;  %v5919_v10 = vmov 0 }
 0x396   : > { %v5920_v10 = vsel %vm4660_vm5, 4294967295, %v5919_v10  ;;  %v927_v14 = vmul.f32 %v4501_v17, %v906_v57 }
 0x397   : > { %v4539_v37 = vpop.permute.xlu1 %945  ;;  %v939_v56 = vpop.permute.xlu0 %938 }
 0x398   : > { %v953_v59 = vsel %vm5796_vm10, %v948_v34, %v939_v56  ;;  %v962_v13 = vsel %vm5796_vm10, %v939_v56, %v948_v34  ;;  %v887_v34 = vsel %vm5802_vm8, %v861_v49, %v873_v32  ;;  %v1345_v32 = vrot.slane %v4618_v12, %v4561_v52 }
 0x399   : > { %v977_v25 = vsel %vm4586_vm12, %v962_v13, 0.0  ;;  %v978_v56 = vsel %vm4598_vm13, %v953_v59, 0.0  ;;  %v1197_v49 = vsel %vm1033_vm4, 1, %v5799_v0  ;;  %v905_v48 = vsel %vm4578_vm9, %v887_v34, 0.0 }
 0x39a   : > { %v5915_v59 = vmov 0  ;;  %v995_v12 = vmul.f32 %v4505_v18, %v977_v25  ;;  %v996_v46 = vmul.f32 %v4505_v18, %v978_v56  ;;  %vm4656_vm4 = vcmp.eq.s32.totalorder %v1108_v4, 1 }
 0x39b   : > { %v4543_v39 = vpop.permute.xlu1 %1016  ;;  %v937_v2 = vpop.permute.xlu0 %936  ;;  %v5916_v59 = vsel %vm4646_vm3, 4294967295, %v5915_v59  ;;  %v5917_v34 = vmov 0  ;;  %v5925_v56 = vmov 0  ;;  %v4681_v4 = vsel %vm4638_vm1, 1, %v5799_v0 }
 0x39c   : > { %v952_v45 = vsel %vm5796_vm10, %v4539_v37, %v937_v2  ;;  %v961_v8 = vsel %vm5796_vm10, %v937_v2, %v4539_v37  ;;  %v5918_v34 = vsel %vm4656_vm4, 4294967295, %v5917_v34  ;;  %v5926_v56 = vsel %vm4672_vm0, 4294967295, %v5925_v56 }
 0x39d   : > { %v1201_v37 = vrot.slane %v1197_v49, %v4559_v51  ;;  %v1205_v2 = vrot.slane %v1197_v49, %v4561_v52  ;;  %v926_v61 = vmul.f32 %v4501_v17, %v905_v48  ;;  %v975_v5 = vsel %vm4586_vm12, %v961_v8, 0.0 }
 0x39e   : > { %v976_v49 = vsel %vm4598_vm13, %v952_v45, 0.0  ;;  %v1002_v57 = vadd.f32 %v996_v46, %v927_v14  ;;  %v1415_v8 = vrot.slane %v4681_v4, %v4561_v52  ;;  %v5927_v46 = vmov 0 }
 0x39f   : > { %v4547_v41 = vpop.permute.xlu1 %1087  ;;  %v1079_v9 = vpop.permute.xlu0 %1078  ;;  %v1001_v17 = vadd.f32 %v995_v12, %v926_v61  ;;  %vm4713_vm1 = vcmp.eq.s32.totalorder %v1205_v2, 1  ;;  %v993_v52 = vmul.f32 %v4513_v20, %v975_v5  ;;  %vm4731_vm10 = vcmp.eq.s32.totalorder %v1345_v32, 1 }
 0x3a3   : > { %v4549_v42 = vpop.permute.xlu1 %1085  ;;  %v1241_v0 = vpop.permute.xlu0 %1240 }
 0x3a7   : > { %v4553_v47 = vpop.permute.xlu1 %1169 }
 0x3ab   : > { %v4555_v50 = vpop.permute.xlu1 %1242 }
 0x3af   : > { %v4564_v54 = vpop.permute.xlu1 %1238 }
 0x3b0   : > { %v1251_v14 = vsel %vm5805_vm15, %v4564_v54, %v1241_v0 }
 0x3b3   : > { %v4571_v60 = vpop.permute.xlu1 %1313 }
 0x3b7   : > { %v4592_v44 = vpop.permute.xlu1 %1309 }
 0x3bb   : > { %v859_v15 = vpop.permute.xlu1 %858 }
 0x3bc   : > { %v877_v23 = vsel %vm5802_vm8, %v4537_v36, %v859_v15  ;;  %v886_v16 = vsel %vm5802_vm8, %v859_v15, %v4537_v36  ;;  %v1411_v36 = vrot.slane %v4681_v4, %v4559_v51  ;;  %vm4709_vm8 = vcmp.eq.s32.totalorder %v1201_v37, 1 }
 0x3bd   : > { %v903_v15 = vsel %vm4578_vm9, %v886_v16, 0.0  ;;  %v904_v45 = vsel %vm4582_vm11, %v877_v23, 0.0  ;;  %v5928_v46 = vsel %vm4709_vm8, 4294967295, %v5927_v46  ;;  %v5929_v51 = vmov 0 }
 0x3be   : > { %v5930_v51 = vsel %vm4713_vm1, 4294967295, %v5929_v51 }
 0x3bf   : > { %v1008_v25 = vpop.permute.xlu1 %1007 }
 0x3c0   : > { %v1022_v13 = vsel %vm5803_vm2, %v4543_v39, %v1008_v25  ;;  %v1031_v48 = vsel %vm5803_vm2, %v1008_v25, %v4543_v39  ;;  %v994_v25 = vmul.f32 %v4513_v20, %v976_v49 }
 0x3c1   : > { %v1048_v4 = vsel %vm4646_vm3, %v1031_v48, 0.0  ;;  %v1049_v61 = vsel %vm4672_vm0, %v1022_v13, 0.0  ;;  %v1316_v48 = vpop.permute.xlu0 %1315 }
 0x3c2   : > { %v1066_v23 = vmul.f32 %v4509_v19, %v1048_v4  ;;  %v1067_v16 = vmul.f32 %v4509_v19, %v1049_v61 }
 0x3c3   : > { %v1006_v35 = vpop.permute.xlu1 %1005 }
 0x3c4   : > { %v1021_v39 = vsel %vm5803_vm2, %v4545_v40, %v1006_v35  ;;  %v1030_v12 = vsel %vm5803_vm2, %v1006_v35, %v4545_v40  ;;  %v1093_v35 = vsel %vm5804_vm14, %v4547_v41, %v1079_v9  ;;  %v1102_v40 = vsel %vm5804_vm14, %v1079_v9, %v4547_v41 }
 0x3c5   : > { %vm4727_vm2 = vcmp.eq.s32.totalorder %v1341_v7, 1  ;;  %v1046_v20 = vsel %vm4646_vm3, %v1030_v12, 0.0  ;;  %v1047_v2 = vsel %vm4672_vm0, %v1021_v39, 0.0  ;;  %v1263_v9 = vsel %vm5805_vm15, %v1241_v0, %v4564_v54 }
 0x3c6   : > { %v924_v7 = vmul.f32 %v4541_v38, %v903_v15  ;;  %v925_v41 = vmul.f32 %v4541_v38, %v904_v45  ;;  %v1064_v39 = vmul.f32 %v4517_v22, %v1046_v20  ;;  %v1065_v0 = vmul.f32 %v4517_v22, %v1047_v2 }
 0x3c7   : > { %v1077_v32 = vpop.permute.xlu1 %1076  ;;  %v1117_v19 = vsel %vm4656_vm4, %v1102_v40, 0.0  ;;  %v1118_v15 = vsel %vm4660_vm5, %v1093_v35, 0.0  ;;  %v1280_v45 = vsel %vm4668_vm7, %v1263_v9, 0.0  ;;  %v1072_v2 = vadd.f32 %v1066_v23, %v1001_v17 }
 0x3c8   : > { %v1092_v49 = vsel %vm5804_vm14, %v4549_v42, %v1077_v32  ;;  %v1101_v13 = vsel %vm5804_vm14, %v1077_v32, %v4549_v42  ;;  %v1279_v42 = vsel %vm4664_vm6, %v1251_v14, 0.0  ;;  %v999_v12 = vadd.f32 %v993_v52, %v924_v7 }
 0x3c9   : > { %v1115_v54 = vsel %vm4656_vm4, %v1101_v13, 0.0  ;;  %v1116_v38 = vsel %vm4660_vm5, %v1092_v49, 0.0  ;;  %v1000_v22 = vadd.f32 %v994_v25, %v925_v41  ;;  %v1073_v32 = vadd.f32 %v1067_v16, %v1002_v57 }
 0x3ca   : > { %v1133_v4 = vmul.f32 %v4515_v21, %v1115_v54  ;;  %v1134_v61 = vmul.f32 %v4515_v21, %v1116_v38  ;;  %vm5935_vm14 = vcmask 1039360   ;;  %v1135_v14 = vmul.f32 %v4519_v24, %v1117_v19 }
 0x3cb   : > { %v1176_v20 = vpop.permute.xlu1 %1175  ;;  %vm5936_vm15 = vmmov %vm5935_vm14  ;;  %v1136_v49 = vmul.f32 %v4519_v24, %v1118_v15  ;;  %v1070_v9 = vadd.f32 %v1064_v39, %v999_v12  ;;  %v1071_v52 = vadd.f32 %v1065_v0, %v1000_v22  ;;  %v1297_v25 = vmul.f32 %v4525_v28, %v1279_v42  ;;  %v1312_v24 = vpop.permute.xlu0 %1311 }
 0x3cc   : > { %v1183_v40 = vsel %vm5935_vm14, %v4551_v43, %v1176_v20  ;;  %v1195_v35 = vsel %vm5936_vm15, %v1176_v20, %v4551_v43  ;;  %v1298_v21 = vmul.f32 %v4525_v28, %v1280_v45  ;;  %vm5937_vm4 = vcmask 916480  }
 0x3cd   : > { %v1323_v17 = vsel %vm5937_vm4, %v4571_v60, %v1316_v48  ;;  %vm5938_vm0 = vmmov %vm5937_vm4  ;;  %vm4779_vm14 = vcmp.eq.s32.totalorder %v1411_v36, 1  ;;  %v5939_v7 = vmov 0  ;;  %vm4783_vm15 = vcmp.eq.s32.totalorder %v1415_v8, 1 }
 0x3ce   : > { %v1335_v57 = vsel %vm5938_vm0, %v1316_v48, %v4571_v60  ;;  %v5940_v7 = vsel %vm4779_vm14, 4294967295, %v5939_v7  ;;  %v5942_v43 = vmov 0  ;;  %v1139_v41 = vadd.f32 %v1133_v4, %v1070_v9 }
 0x3cf   : > { %5941 = vst [vmem:[#allocation41_spill] sm:$0xff] %v5940_v7  ;;  %v5943_v43 = vsel %vm4783_vm15, 4294967295, %v5942_v43  ;;  %v1140_v23 = vadd.f32 %v1134_v61, %v1071_v52  ;;  %v1210_v28 = vsel %vm4709_vm8, %v1183_v40, 0.0  ;;  %v1211_v16 = vsel %vm4713_vm1, %v1195_v35, 0.0  ;;  %v1172_v13 = vpop.permute.xlu1 %1171 }
 0x3d0   : > { %5944 = vst [vmem:[#allocation42_spill] sm:$0xff] %v5943_v43  ;;  %v1141_v39 = vadd.f32 %v1135_v14, %v1072_v2  ;;  %v1142_v60 = vadd.f32 %v1136_v49, %v1073_v32  ;;  %vm5945_vm0 = vcmask 1039360   ;;  %v1350_v48 = vsel %vm4727_vm2, %v1323_v17, 0.0  ;;  %v1385_v32 = vpop.permute.xlu0 %1384 }
 0x3d1   : > { %v1182_v36 = vsel %vm5945_vm0, %v4553_v47, %v1172_v13  ;;  %vm5946_vm4 = vmmov %vm5945_vm0  ;;  %v1351_v0 = vsel %vm4731_vm10, %v1335_v57, 0.0  ;;  %v1228_v19 = vmul.f32 %v4521_v26, %v1210_v28  ;;  %v1229_v15 = vmul.f32 %v4521_v26, %v1211_v16 }
 0x3d2   : > { %v1194_v8 = vsel %vm5946_vm4, %v1172_v13, %v4553_v47  ;;  %v1208_v54 = vsel %vm4709_vm8, %v1182_v36, 0.0  ;;  %vm5947_vm0 = vcmask 916480   ;;  %v1163_v22 = vadd.f32 %v4596_v53, %v1139_v41 }
 0x3d3   : > { %v1209_v38 = vsel %vm4713_vm1, %v1194_v8, 0.0  ;;  %v1226_v42 = vmul.f32 %v4523_v27, %v1208_v54  ;;  %v1322_v45 = vsel %vm5947_vm0, %v4592_v44, %v1312_v24  ;;  %vm5948_vm4 = vmmov %vm5947_vm0  ;;  %v1164_v4 = vadd.f32 %v4612_v11, %v1140_v23  ;;  %v1245_v61 = vpop.permute.xlu1 %1244 }
 0x3d4   : > { %v1227_v47 = vmul.f32 %v4523_v27, %v1209_v38  ;;  %v1334_v12 = vsel %vm5948_vm4, %v1312_v24, %v4592_v44  ;;  %v1165_v20 = vadd.f32 %v4604_v58, %v1141_v39  ;;  %v1166_v2 = vadd.f32 %v4609_v3, %v1142_v60  ;;  %v1381_v8 = vpop.permute.xlu0 %1380 }
 0x3d5   : > { %vm5949_vm5 = vcmask 924672   ;;  %v1232_v40 = vadd.f32 %v1226_v42, %v1163_v22  ;;  %v1368_v49 = vmul.f32 %v4529_v30, %v1350_v48  ;;  %v1369_v9 = vmul.f32 %v4529_v30, %v1351_v0 }
 0x3d6   : > { %v1252_v26 = vsel %vm5949_vm5, %v4555_v50, %v1245_v61  ;;  %vm5950_vm1 = vmmov %vm5949_vm5  ;;  %v1233_v35 = vadd.f32 %v1227_v47, %v1164_v4  ;;  %v1234_v53 = vadd.f32 %v1228_v19, %v1165_v20  ;;  %v1235_v14 = vadd.f32 %v1229_v15, %v1166_v2 }
 0x3d7   : > { %v1264_v27 = vsel %vm5950_vm1, %v1245_v61, %v4555_v50  ;;  %v1281_v44 = vsel %vm4664_vm6, %v1252_v26, 0.0  ;;  %v1348_v50 = vsel %vm4727_vm2, %v1322_v45, 0.0  ;;  %v1349_v52 = vsel %vm4731_vm10, %v1334_v12, 0.0  ;;  %v1383_v17 = vpop.permute.xlu1 %1382  ;;  %v5955_v45 = vld [vmem:[#allocation40_spill] sm:$0xff] }
 0x3d8   : > { %v1282_v11 = vsel %vm4668_vm7, %v1264_v27, 0.0  ;;  %v1299_v58 = vmul.f32 %v4527_v29, %v1281_v44  ;;  %vm5951_vm5 = vcmask 908288   ;;  %v1303_v30 = vadd.f32 %v1297_v25, %v1232_v40  ;;  %v1466_v40 = vld [vmem:[#allocation8] sm:$0xff]  ;;  %v854_v44 = vld [vmem:[#allocation16 + $0x10] sm:$0xff] }
 0x3d9   : > { %v1300_v3 = vmul.f32 %v4527_v29, %v1282_v11  ;;  %v1392_v41 = vsel %vm5951_vm5, %v1383_v17, %v1385_v32  ;;  %vm5952_vm1 = vmmov %vm5951_vm5  ;;  %v1304_v16 = vadd.f32 %v1298_v21, %v1233_v35  ;;  %v1366_v48 = vmul.f32 %v4531_v31, %v1348_v50 }
 0x3da   : > { %v1305_v57 = vadd.f32 %v1299_v58, %v1234_v53  ;;  %v1404_v23 = vsel %vm5952_vm1, %v1385_v32, %v1383_v17  ;;  %v1420_v29 = vsel %vm4779_vm14, %v1392_v41, 0.0  ;;  %v1367_v0 = vmul.f32 %v4531_v31, %v1349_v52  ;;  %vm5953_vm0 = vmmov %vm5952_vm1 }
 0x3db   : > { %v1306_v24 = vadd.f32 %v1300_v3, %v1235_v14  ;;  %v1421_v28 = vsel %vm4783_vm15, %v1404_v23, 0.0  ;;  %v1438_v13 = vmul.f32 %v4533_v33, %v1420_v29  ;;  %v1379_v54 = vpop.permute.xlu1 %1378  ;;  %vm5954_vm4 = vmmov %vm5953_vm0  ;;  %v1372_v21 = vadd.f32 %v1366_v48, %v1303_v30  ;;  %v4854_v3 = vpop.f32.mrb[2].mxu1  ;;  %v1474_v48 = vld [vmem:[#allocation10] sm:$0xff] }
 0x3dc   : > { %v1439_v39 = vmul.f32 %v4533_v33, %v1421_v28  ;;  %v1374_v60 = vadd.f32 %v1368_v49, %v1305_v57  ;;  %v1391_v38 = vsel %vm5953_vm0, %v1379_v54, %v1381_v8  ;;  %v1403_v19 = vsel %vm5954_vm4, %v1381_v8, %v1379_v54  ;;  %v4856_v49 = vpop.f32.mrb[3].mxu1 }
 0x3dd   : > { %v1375_v36 = vadd.f32 %v1369_v9, %v1306_v24  ;;  %v1418_v25 = vsel %vm4779_vm14, %v1391_v38, 0.0  ;;  %v1419_v33 = vsel %vm4783_vm15, %v1403_v19, 0.0  ;;  %v1373_v47 = vadd.f32 %v1367_v0, %v1304_v16 }
 0x3de   : > { %v1444_v15 = vadd.f32 %v1438_v13, %v1374_v60  ;;  %v1436_v12 = vmul.f32 %v5955_v45, %v1418_v25  ;;  %v1437_v22 = vmul.f32 %v5955_v45, %v1419_v33  ;;  %v5956_v35 = vmov 2  }
 0x3df   : > { %v1445_v42 = vadd.f32 %v1439_v39, %v1375_v36  ;;  %v5957_v11 = vmov 3   ;;  %v5958_v53 = vmov 1   ;;  %v5959_v14 = vmov 4  }
 0x3e0   : > { %v1457_v31 = vmul.f32 %v1444_v15, %v1444_v15  ;;  %v1442_v20 = vadd.f32 %v1436_v12, %v1372_v21  ;;  %v1443_v2 = vadd.f32 %v1437_v22, %v1373_v47  ;;  %v5960_v58 = vmov 5  }
 0x3e1   : > { %v1458_v4 = vmul.f32 %v1445_v42, %v1445_v42  ;;  %v5961_v9 = vmov 7   ;;  %v5962_v50 = vmov 6   ;;  %v5963_v52 = vmov 0  }
 0x3e2   : > { %v1448_v26 = vmul.f32 %v1442_v20, %v1442_v20  ;;  %v1449_v27 = vmul.f32 %v1443_v2, %v1443_v2  ;;  %v5964_v8 = vmov 0.0   ;;  %vm5965_vm5 = vcmask 64512  }
 0x3e3   : > { %v1459_v61 = vadd.f32 %v1458_v4, %v1457_v31  ;;  %vm5967_vm1 = vmmov %vm5965_vm5  ;;  %vm5968_vm0 = vcmask 130048   ;;  %vm5969_vm4 = vcmask 138240  }
 0x3e4   : > { %v1450_v32 = vadd.f32 %v1449_v27, %v1448_v26 }
 0x3e5   : > { %1460 = vadd.xlane.f32.xlu1 %v1459_v61 }
 0x3e6   : > { %1451 = vadd.xlane.f32.xlu0 %v1450_v32 }
 0x3f6   : > { %921 = vperm.xlu1 %3218, %v854_v44  }
 0x3fa   : > { %3219 = vset.pattern.permute.xlu1 %v5958_v53 }
 0x3fb   : > { %990 = vperm.xlu1 %3219, %v854_v44  }
 0x3fc   : > { %1469 = vperm.xlu0 %3217, %v1466_v40  }
 0x3ff   : > { %3223 = vset.pattern.permute.xlu1 %v5960_v58 }
 0x400   : > { %3220 = vset.pattern.permute.xlu0 %v5956_v35  ;;  %874 = vrot.lane.b32.xlu1 %v4854_v3, %s3834_s1 }
 0x401   : > { %1061 = vperm.xlu0 %3220, %v854_v44  }
 0x404   : > { %1009 = vrot.lane.b32.xlu1 %v4856_v49, %s3835_s26 }
 0x405   : > { %3221 = vset.pattern.permute.xlu0 %v5957_v11 }
 0x406   : > { %1130 = vperm.xlu0 %3221, %v854_v44  }
 0x408   : > { %1223 = vperm.xlu1 %3223, %v854_v44  }
 0x40a   : > { %3222 = vset.pattern.permute.xlu0 %v5959_v14 }
 0x40b   : > { %862 = vrot.lane.b32.xlu0 %v4856_v49, %s3834_s1 }
 0x40c   : > { %3225 = vset.pattern.permute.xlu1 %v5961_v9 }
 0x40f   : > { %940 = vrot.lane.b32.xlu0 %v4856_v49, %s3836_s30 }
 0x413   : > { %949 = vrot.lane.b32.xlu0 %v4854_v3, %s3836_s30 }
 0x417   : > { %1154 = vperm.xlu0 %3222, %v854_v44  }
 0x41b   : > { %1018 = vrot.lane.b32.xlu0 %v4854_v3, %s3835_s26 }
 0x41c   : > { %3224 = vset.pattern.permute.xlu0 %v5962_v50 }
 0x41f   : > { %1080 = vrot.lane.b32.xlu0 %v4856_v49, %s3838_s29 }
 0x423   : > { %1294 = vperm.xlu0 %3224, %v854_v44  }
 0x427   : > { %1179 = vrot.lane.b32.xlu0 %v4856_v49, %s3837_s16 }
 0x428   : > { %3227 = vset.pattern.permute.xlu0 %v5963_v52 }
 0x42b   : > { %1246 = vrot.lane.b32.xlu0 %v4854_v3, %s3839_s27 }
 0x42f   : > { %1317 = vrot.lane.b32.xlu0 %v4854_v3, %s3840_s3 }
 0x433   : > { %1386 = vrot.lane.b32.xlu0 %v4854_v3, %s3841_s25 }
 0x472   : > { %v1461_v17 = vpop.xlane.xlu1 %1460 }
 0x473   : > { %v1462_v57 = vmax.f32 %v1461_v17, 1e-24  ;;  %v1452_v24 = vpop.xlane.xlu0 %1451 }
 0x474   : > { %v1453_v41 = vmax.f32 %v1452_v24, 1e-24 }
 0x475   : > { %3259 = vrsqrt.f32 %v1462_v57 }
 0x476   : > { %3261 = vrsqrt.f32 %v1453_v41 }
 0x47b   : > { %v1470_v39 = vpop.permute.xlu0 %1469 }
 0x47f   : > { %v3260_v23 = vpop.eup %3259 }
 0x480   : > { %v1465_v29 = vmul.f32 %v3260_v23, %v1445_v42  ;;  %v1464_v28 = vmul.f32 %v3260_v23, %v1444_v15  ;;  %v3262_v30 = vpop.eup %3261  ;;  %v5966_v15 = vmov 8   ;;  %v922_v42 = vpop.permute.xlu1 %921 }
 0x481   : > { %v1455_v16 = vmul.f32 %v3262_v30, %v1442_v20  ;;  %v1456_v13 = vmul.f32 %v3262_v30, %v1443_v2  ;;  %v1062_v61 = vpop.permute.xlu0 %1061 }
 0x482   : > { %1475 = vmatprep.subr.mxu1 %v1465_v29 }
 0x483   : > { %1476 = vmatpush1.xpose.msra.mxu1 %v1464_v28  ;;  %v1472_v60 = vmul.f32 %v1470_v39, %v1455_v16  ;;  %v1473_v36 = vmul.f32 %v1470_v39, %v1456_v13 }
 0x484   : > { %v991_v25 = vpop.permute.xlu1 %990 }
 0x485   : > { %1539 = vmatprep.mubr.f32.mxu1 %v1473_v36  ;;  %v1131_v20 = vpop.permute.xlu0 %1130 }
 0x486   : > { %1540 = vmatmul.mubr.f32.vlgmr.msra.gmra.mrb[4].mxu1 %v1472_v60 }
 0x487   : > { %1623 = vmatprep.mubr.f32.mxu1 %v5964_v8 }
 0x488   : > { %v875_v33 = vpop.permute.xlu1 %874 }
 0x489   : > { %v863_v2 = vpop.permute.xlu0 %862 }
 0x48a   : > { %v888_v29 = vsel %vm5969_vm4, %v863_v2, %v875_v33 }
 0x48b   : > { %v907_v39 = vsel %vm4578_vm9, %v888_v29, 0.0 }
 0x48c   : > { %v1010_v21 = vpop.permute.xlu1 %1009 }
 0x48d   : > { %v941_v26 = vpop.permute.xlu0 %940 }
 0x490   : > { %v4895_v47 = vpop.permute.xlu1 %1223 }
 0x491   : > { %v950_v27 = vpop.permute.xlu0 %949 }
 0x492   : > { %v963_v23 = vsel %vm5968_vm0, %v941_v26, %v950_v27 }
 0x493   : > { %v979_v13 = vsel %vm4586_vm12, %v963_v23, 0.0  ;;  %vm5977_vm12 = vnez %v5918_v34 }
 0x496   : > { %v1155_v32 = vpop.permute.xlu0 %1154 }
 0x559   : > { %v1541_v0 = vpop.f32.mrb[4].mxu1 }
 0x55a   : > { %v1542_v54 = vadd.f32 %v1541_v0, %v1474_v48  ;;  %v1543_v38 = vpop.f32.mrb[5].mxu1 }
 0x55b   : > { %v997_v38 = vmul.f32 %v991_v25, %v979_v13 }
 0x55c   : > { %v1545_v19 = vsel %vm5965_vm5, %v1542_v54, -inf  ;;  %vm5970_vm5 = vmmov %vm5968_vm0  ;;  %vm5972_vm0 = vcmask 121856  }
 0x55d   : > { %1546 = vmax.xlane.f32.xlu1 %v1545_v19  ;;  %v954_v28 = vsel %vm5970_vm5, %v950_v27, %v941_v26  ;;  %v928_v19 = vmul.f32 %v922_v42, %v907_v39  ;;  %vm5974_vm5 = vcmask 7168  }
 0x55e   : > { %v980_v36 = vsel %vm4598_vm13, %v954_v28, 0.0  ;;  %vm5976_vm13 = vnez %v5926_v56 }
 0x56e   : > { %1089 = vrot.lane.b32.xlu1 %v4854_v3, %s3838_s29 }
 0x572   : > { %1363 = vperm.xlu1 %3225, %v854_v44  }
 0x576   : > { %1177 = vrot.lane.b32.xlu1 %v4854_v3, %s3837_s16 }
 0x577   : > { %3226 = vset.pattern.permute.xlu1 %v5966_v15 }
 0x57a   : > { %1433 = vperm.xlu1 %3226, %v854_v44   ;;  %v1019_v44 = vpop.permute.xlu0 %1018 }
 0x57b   : > { %v1032_v0 = vsel %vm5972_vm0, %v1010_v21, %v1019_v44 }
 0x57e   : > { %1248 = vrot.lane.b32.xlu1 %v4856_v49, %s3839_s27  ;;  %v1081_v57 = vpop.permute.xlu0 %1080 }
 0x57f   : > { %3228 = vset.pattern.permute.xlu1 %v5963_v52 }
 0x582   : > { %1319 = vrot.lane.b32.xlu1 %v4856_v49, %s3840_s3  ;;  %v1295_v41 = vpop.permute.xlu0 %1294 }
 0x586   : > { %v1180_v60 = vpop.permute.xlu0 %1179 }
 0x58a   : > { %v1247_v23 = vpop.permute.xlu0 %1246 }
 0x5ea   : > { %v1547_v45 = vpop.xlane.xlu1 %1546 }
 0x5eb   : > { %v1548_v12 = vsub.f32 %v1542_v54, %v1547_v45  ;;  %v998_v45 = vmul.f32 %v991_v25, %v980_v36 }
 0x5ed   : > { %v1549_v22 = vmul.f32 1.442695, %v1548_v12 }
 0x5ee   : > { %v1090_v40 = vpop.permute.xlu1 %1089 }
 0x5ef   : > { %3263 = vpow2.f32 %v1549_v22  ;;  %v1050_v22 = vsel %vm4646_vm3, %v1032_v0, 0.0 }
 0x5f2   : > { %v4903_v17 = vpop.permute.xlu1 %1363 }
 0x5f6   : > { %v1178_v24 = vpop.permute.xlu1 %1177 }
 0x5f9   : > { %v4897_v31 = vpop.eup %3263 }
 0x5fa   : > { %v1551_v4 = vsel %vm5967_vm1, %v4897_v31, 0.0  ;;  %vm5971_vm1 = vmmov %vm5969_vm4  ;;  %v4909_v16 = vpop.permute.xlu1 %1433 }
 0x5fb   : > { %1552 = vadd.xlane.f32.xlu1 %v1551_v4  ;;  %v879_v30 = vsel %vm5971_vm1, %v875_v33, %v863_v2  ;;  %vm5973_vm4 = vmmov %vm5972_vm0  ;;  %v1103_v33 = vsel %vm5974_vm5, %v1081_v57, %v1090_v40  ;;  %vm5978_vm0 = vnez %v5920_v10 }
 0x5fc   : > { %v908_v48 = vsel %vm4582_vm11, %v879_v30, 0.0  ;;  %v1023_v54 = vsel %vm5973_vm4, %v1019_v44, %v1010_v21  ;;  %vm5975_vm1 = vmmov %vm5974_vm5  ;;  %v1119_v27 = vsel %vm5977_vm12, %v1103_v33, 0.0  ;;  %v1003_v21 = vadd.f32 %v997_v38, %v928_v19 }
 0x5fd   : > { %v929_v12 = vmul.f32 %v922_v42, %v908_v48  ;;  %v1094_v4 = vsel %vm5975_vm1, %v1090_v40, %v1081_v57  ;;  %v1051_v2 = vsel %vm5976_vm13, %v1023_v54, 0.0  ;;  %v1068_v44 = vmul.f32 %v1062_v61, %v1050_v22  ;;  %v1318_v54 = vpop.permute.xlu0 %1317 }
 0x5fe   : > { %v1249_v26 = vpop.permute.xlu1 %1248  ;;  %v1120_v29 = vsel %vm5978_vm0, %v1094_v4, 0.0  ;;  %v1069_v42 = vmul.f32 %v1062_v61, %v1051_v2  ;;  %v1137_v28 = vmul.f32 %v1131_v20, %v1119_v27  ;;  %vm5979_vm4 = vcmask 1039360  }
 0x5ff   : > { %v1004_v25 = vadd.f32 %v998_v45, %v929_v12  ;;  %v1138_v30 = vmul.f32 %v1131_v20, %v1120_v29  ;;  %v1184_v13 = vsel %vm5979_vm4, %v1178_v24, %v1180_v60  ;;  %vm5980_vm5 = vmmov %vm5979_vm4  ;;  %v1074_v57 = vadd.f32 %v1068_v44, %v1003_v21 }
 0x600   : > { %v1196_v40 = vsel %vm5980_vm5, %v1180_v60, %v1178_v24  ;;  %vm5981_vm1 = vcmask 924672   ;;  %v1212_v19 = vsel %vm4709_vm8, %v1184_v13, 0.0  ;;  %vm5983_vm0 = vnez %v5930_v51 }
 0x601   : > { %v1075_v36 = vadd.f32 %v1069_v42, %v1004_v25  ;;  %v1253_v48 = vsel %vm5981_vm1, %v1247_v23, %v1249_v26  ;;  %vm5982_vm12 = vmmov %vm5981_vm1  ;;  %v1143_v38 = vadd.f32 %v1137_v28, %v1074_v57  ;;  %v1213_v61 = vsel %vm5983_vm0, %v1196_v40, 0.0  ;;  %v1387_v28 = vpop.permute.xlu0 %1386 }
 0x602   : > { %v1320_v39 = vpop.permute.xlu1 %1319  ;;  %v1265_v0 = vsel %vm5982_vm12, %v1249_v26, %v1247_v23  ;;  %vm5984_vm13 = vcmask 916480   ;;  %v1161_v60 = vmul.f32 %v1155_v32, %v4854_v3  ;;  %v1283_v45 = vsel %vm4664_vm6, %v1253_v48, 0.0 }
 0x603   : > { %v1144_v20 = vadd.f32 %v1138_v30, %v1075_v36  ;;  %v1324_v33 = vsel %vm5984_vm13, %v1318_v54, %v1320_v39  ;;  %vm5985_vm4 = vmmov %vm5984_vm13  ;;  %v1284_v12 = vsel %vm4668_vm7, %v1265_v0, 0.0  ;;  %v1162_v22 = vmul.f32 %v1155_v32, %v4856_v49 }
 0x604   : > { %v1336_v24 = vsel %vm5985_vm4, %v1320_v39, %v1318_v54  ;;  %v1230_v4 = vmul.f32 %v4895_v47, %v1212_v19  ;;  %v1231_v2 = vmul.f32 %v4895_v47, %v1213_v61  ;;  %v1167_v26 = vadd.f32 %v1161_v60, %v1143_v38  ;;  %v1630_v60 = vld [vmem:[#allocation17] sm:$0xff] }
 0x605   : > { %v1352_v27 = vsel %vm4727_vm2, %v1324_v33, 0.0  ;;  %v1353_v23 = vsel %vm4731_vm10, %v1336_v24, 0.0  ;;  %v1168_v21 = vadd.f32 %v1162_v22, %v1144_v20  ;;  %v1301_v44 = vmul.f32 %v1295_v41, %v1283_v45  ;;  %v1757_v20 = vld [vmem:[#allocation20] sm:$0xff]  ;;  %v1749_v33 = vld [vmem:[#allocation19] sm:$0xff]  ;;  %v1870_v24 = vld [vmem:[#allocation23] sm:$0xff] }
 0x606   : > { %v1302_v29 = vmul.f32 %v1295_v41, %v1284_v12  ;;  %v1236_v25 = vadd.f32 %v1230_v4, %v1167_v26  ;;  %v1371_v32 = vmul.f32 %v4903_v17, %v1353_v23  ;;  %vm5986_vm12 = vcmask 908288   ;;  %1752 = vperm.xlu0 %3227, %v1749_v33   ;;  %v1871_v45 = vld [vmem:[#allocation23 + $0x8] sm:$0xff]  ;;  %v4973_v12 = vld [vmem:[#allocation23 + $0x18] sm:$0xff]  ;;  %v1872_v22 = vld [vmem:[#allocation23 + $0x10] sm:$0xff] }
 0x607   : > { %v1237_v42 = vadd.f32 %v1231_v2, %v1168_v21  ;;  %vm5987_vm13 = vmmov %vm5986_vm12  ;;  %vm5988_vm5 = vcmask 64512   ;;  %v3288_v4 = vld [vmem:[%s4375_s15 + $0x8] sm:$0xff] }
 0x608   : > { %v1307_v30 = vadd.f32 %v1301_v44, %v1236_v25  ;;  %vm5989_vm1 = vmmov %vm5988_vm5 }
 0x609   : > { %v1308_v13 = vadd.f32 %v1302_v29, %v1237_v42  ;;  %vm5992_vm4 = vmmov %vm5989_vm1 }
 0x60a   : > { %3230 = vset.pattern.permute.xlu0 %v5958_v53 }
 0x60b   : > { %2011 = vperm.xlu0 %3230, %v1871_v45  }
 0x60c   : > { %1388 = vrot.lane.b32.xlu1 %v4856_v49, %s3841_s25  ;;  %v1370_v49 = vmul.f32 %v4903_v17, %v1352_v27  ;;  %v1377_v17 = vadd.f32 %v1371_v32, %v1308_v13 }
 0x60e   : > { %v1376_v36 = vadd.f32 %v1370_v49, %v1307_v30 }
 0x60f   : > { %3231 = vset.pattern.permute.xlu0 %v5963_v52 }
 0x610   : > { %1760 = vperm.xlu1 %3228, %v1757_v20   ;;  %1933 = vperm.xlu0 %3231, %v1871_v45  }
 0x614   : > { %1928 = vperm.xlu1 %3228, %v1870_v24   ;;  %1943 = vperm.xlu0 %3231, %v4973_v12  }
 0x618   : > { %3229 = vset.pattern.permute.xlu1 %v5958_v53  ;;  %3241 = vset.pattern.permute.xlu0 %v5956_v35 }
 0x619   : > { %2007 = vperm.xlu1 %3229, %v1870_v24   ;;  %2091 = vperm.xlu0 %3241, %v1872_v22  }
 0x61d   : > { %3232 = vset.pattern.permute.xlu1 %v5956_v35  ;;  %3242 = vset.pattern.permute.xlu0 %v5957_v11 }
 0x61e   : > { %2083 = vperm.xlu1 %3232, %v1870_v24   ;;  %2159 = vperm.xlu0 %3242, %v1870_v24  }
 0x622   : > { %2087 = vperm.xlu1 %3232, %v1871_v45   ;;  %2171 = vperm.xlu0 %3242, %v4973_v12  }
 0x626   : > { %3233 = vset.pattern.permute.xlu1 %v5957_v11  ;;  %3245 = vset.pattern.permute.xlu0 %v5959_v14 }
 0x627   : > { %2163 = vperm.xlu1 %3233, %v1871_v45   ;;  %2195 = vperm.xlu0 %3245, %v1871_v45  }
 0x62b   : > { %3234 = vset.pattern.permute.xlu1 %v5959_v14  ;;  %2199 = vperm.xlu0 %3245, %v1872_v22  }
 0x62c   : > { %2191 = vperm.xlu1 %3234, %v1870_v24  }
 0x62f   : > { %3246 = vset.pattern.permute.xlu0 %v5960_v58 }
 0x630   : > { %3235 = vset.pattern.permute.xlu1 %v5960_v58  ;;  %2267 = vperm.xlu0 %3246, %v1870_v24  }
 0x631   : > { %2271 = vperm.xlu1 %3235, %v1871_v45  }
 0x634   : > { %2279 = vperm.xlu0 %3246, %v4973_v12  }
 0x635   : > { %3236 = vset.pattern.permute.xlu1 %v5962_v50 }
 0x636   : > { %2343 = vperm.xlu1 %3236, %v1870_v24  }
 0x638   : > { %3249 = vset.pattern.permute.xlu0 %v5962_v50 }
 0x639   : > { %2347 = vperm.xlu0 %3249, %v1871_v45  }
 0x63a   : > { %3237 = vset.pattern.permute.xlu1 %v5961_v9 }
 0x63b   : > { %2419 = vperm.xlu1 %3237, %v1870_v24  }
 0x63d   : > { %2351 = vperm.xlu0 %3249, %v1872_v22  }
 0x63f   : > { %2423 = vperm.xlu1 %3237, %v1871_v45  }
 0x641   : > { %3252 = vset.pattern.permute.xlu0 %v5961_v9 }
 0x642   : > { %2431 = vperm.xlu0 %3252, %v4973_v12  }
 0x643   : > { %3238 = vset.pattern.permute.xlu1 %v5966_v15 }
 0x644   : > { %2499 = vperm.xlu1 %3238, %v1871_v45  }
 0x646   : > { %3253 = vset.pattern.permute.xlu0 %v5966_v15 }
 0x647   : > { %2495 = vperm.xlu0 %3253, %v1870_v24  }
 0x648   : > { %3239 = vset.pattern.permute.xlu1 %v5963_v52 }
 0x649   : > { %1938 = vperm.xlu1 %3239, %v1872_v22  }
 0x64b   : > { %2503 = vperm.xlu0 %3253, %v1872_v22  }
 0x64d   : > { %3240 = vset.pattern.permute.xlu1 %v5958_v53  ;;  %v3287_v53 = vld [vmem:[%s4375_s15] sm:$0xff]  ;;  %s693_s15 = scalar_lea.vmem [#allocation26], %s2956_s0  ;;  %s2718_s0 = scalar_lea.sflag [#allocation4], %s4369_s23 }
 0x64e   : > { %2015 = vperm.xlu1 %3240, %v1872_v22  }
 0x652   : > { %2019 = vperm.xlu1 %3240, %v4973_v12  }
 0x656   : > { %3243 = vset.pattern.permute.xlu1 %v5956_v35 }
 0x657   : > { %2095 = vperm.xlu1 %3243, %v4973_v12  }
 0x65b   : > { %3244 = vset.pattern.permute.xlu1 %v5957_v11 }
 0x65c   : > { %2167 = vperm.xlu1 %3244, %v1872_v22  }
 0x660   : > { %3247 = vset.pattern.permute.xlu1 %v5959_v14 }
 0x661   : > { %2203 = vperm.xlu1 %3247, %v4973_v12  }
 0x665   : > { %3248 = vset.pattern.permute.xlu1 %v5960_v58 }
 0x666   : > { %2275 = vperm.xlu1 %3248, %v1872_v22  }
 0x66a   : > { %3250 = vset.pattern.permute.xlu1 %v5962_v50 }
 0x66b   : > { %2355 = vperm.xlu1 %3250, %v4973_v12  }
 0x66f   : > { %3251 = vset.pattern.permute.xlu1 %v5961_v9 }
 0x670   : > { %2427 = vperm.xlu1 %3251, %v1872_v22  }
 0x674   : > { %3254 = vset.pattern.permute.xlu1 %v5966_v15 }
 0x675   : > { %2507 = vperm.xlu1 %3254, %v4973_v12  }
 0x685   : > { %v1753_v12 = vpop.permute.xlu0 %1752 }
 0x688   : > { %v1553_v3 = vpop.xlane.xlu1 %1552 }
 0x689   : > { %3265 = vrcp.f32 %v1553_v3 }
 0x68c   : > { %v1389_v47 = vpop.permute.xlu1 %1388 }
 0x68d   : > { %v1393_v40 = vsel %vm5986_vm12, %v1387_v28, %v1389_v47  ;;  %v1405_v57 = vsel %vm5987_vm13, %v1389_v47, %v1387_v28  ;;  %vm5993_vm12 = vmmov %vm5989_vm1 }
 0x68e   : > { %v1422_v39 = vsel %vm4779_vm14, %v1393_v40, 0.0  ;;  %v1423_v41 = vsel %vm4783_vm15, %v1405_v57, 0.0  ;;  %vm5994_vm13 = vmmov %vm5989_vm1 }
 0x68f   : > { %v1440_v48 = vmul.f32 %v4909_v16, %v1422_v39  ;;  %v1441_v0 = vmul.f32 %v4909_v16, %v1423_v41 }
 0x691   : > { %v1447_v54 = vadd.f32 %v1441_v0, %v1377_v17  ;;  %v1446_v38 = vadd.f32 %v1440_v48, %v1376_v36 }
 0x693   : > { %v3266_v19 = vpop.eup %3265  ;;  %1559 = vmatprep.subr.mxu1 %v1447_v54 }
 0x694   : > { %1560 = vmatpush1.msra.mxu1 %v1446_v38  ;;  %v1555_v61 = vmul.f32 %v3266_v19, %v4897_v31 }
 0x696   : > { %2975 = vmatmul.mubr.msk.f32.vlgmr.msra.gmra.mrb[6].mxu1 %vm5988_vm5, %v1555_v61  ;;  %vm5995_vm5 = vmmov %vm5989_vm1 }
 0x697   : > { %1698 = vmatprep.mubr.f32.mxu1 %v5964_v8 }
 0x769   : > { %v1625_v16 = vpop.f32.mrb[6].mxu1 }
 0x76a   : > { %v1627_v31 = vpop.f32.mrb[7].mxu1 }
 0x76b   : > { %1634 = vmatprep.subr.mxu1 %v1627_v31 }
 0x76c   : > { %1635 = vmatpush1.msra.mxu1 %v1625_v16 }
 0x76d   : > { %2976 = vmatmul.mubr.msk.f32.vlgmr.msra.gmra.mrb[8].mxu1 %vm5989_vm1, %v1630_v60  ;;  %vm6018_vm1 = vcmask 138240  }
 0x76e   : > { %2706 = vmatprep.mubr.f32.mxu1 %v5964_v8 }
 0x840   : > { %v1700_v35 = vpop.f32.mrb[8].mxu1 }
 0x841   : > { %v5003_v11 = vadd.f32 %v3287_v53, %v1700_v35  ;;  %v1702_v52 = vpop.f32.mrb[9].mxu1 }
 0x842   : > { %v5007_v2 = vadd.f32 %v3288_v4, %v1702_v52 }
 0x843   : > { %5990 = vst [vmem:[#allocation40_spill] sm:$0xff] %v5003_v11  ;;  %v1707_v14 = vrot.slane %v5003_v11, 4  ;;  %v1719_v58 = vmul.f32 %v5003_v11, %v5003_v11 }
 0x844   : > { %5991 = vst [vmem:[#allocation43_spill] sm:$0xff] %v5007_v2  ;;  %v1713_v50 = vrot.slane %v5007_v2, 4  ;;  %v1720_v26 = vmul.f32 %v5007_v2, %v5007_v2 }
 0x845   : > { %v1721_v27 = vrot.slane %v1719_v58, 4  ;;  %v1708_v23 = vadd.f32 %v1707_v14, %v5003_v11  ;;  %v1761_v14 = vpop.permute.xlu1 %1760 }
 0x846   : > { %v1727_v3 = vrot.slane %v1720_v26, 4  ;;  %v1714_v9 = vadd.f32 %v1713_v50, %v5007_v2 }
 0x847   : > { %v1722_v21 = vadd.f32 %v1721_v27, %v1719_v58  ;;  %v1709_v44 = vrot.slane %v1708_v23, 2  ;;  %v1766_v27 = vld [vmem:[#allocation22 + $0x8] sm:$0xff] }
 0x848   : > { %v1728_v29 = vadd.f32 %v1727_v3, %v1720_v26  ;;  %v1715_v25 = vrot.slane %v1714_v9, 2  ;;  %v1765_v26 = vld [vmem:[#allocation22] sm:$0xff]  ;;  %v1768_v3 = vld [vmem:[#allocation22 + $0x18] sm:$0xff] }
 0x849   : > { %v1723_v42 = vrot.slane %v1722_v21, 2  ;;  %v1710_v49 = vadd.f32 %v1709_v44, %v1708_v23  ;;  %v1767_v23 = vld [vmem:[#allocation22 + $0x10] sm:$0xff] }
 0x84a   : > { %v1729_v32 = vrot.slane %v1728_v29, 2  ;;  %v1716_v28 = vadd.f32 %v1715_v25, %v1714_v9  ;;  %v5028_v9 = vpop.permute.xlu1 %1928 }
 0x84b   : > { %v1711_v47 = vrot.slane %v1710_v49, 1  ;;  %v1724_v30 = vadd.f32 %v1723_v42, %v1722_v21 }
 0x84c   : > { %v1717_v13 = vrot.slane %v1716_v28, 1  ;;  %v1730_v40 = vadd.f32 %v1729_v32, %v1728_v29 }
 0x84d   : > { %v1712_v57 = vadd.f32 %v1711_v47, %v1710_v49  ;;  %v1725_v39 = vrot.slane %v1724_v30, 1 }
 0x84e   : > { %v1718_v41 = vadd.f32 %v1717_v13, %v1716_v28  ;;  %v1731_v36 = vrot.slane %v1730_v40, 1  ;;  %v5030_v21 = vpop.permute.xlu1 %2007 }
 0x84f   : > { %v1726_v48 = vadd.f32 %v1725_v39, %v1724_v30  ;;  %v1733_v15 = vmul.f32 0.125, %v1712_v57 }
 0x850   : > { %v1732_v0 = vadd.f32 %v1731_v36, %v1730_v40  ;;  %v1734_v17 = vmul.f32 0.125, %v1718_v41 }
 0x851   : > { %v1735_v54 = vmul.f32 0.125, %v1726_v48  ;;  %v1737_v38 = vmul.f32 %v1733_v15, %v1733_v15  ;;  %v1741_v31 = vsub.f32 %v5003_v11, %v1733_v15 }
 0x852   : > { %v1736_v19 = vmul.f32 0.125, %v1732_v0  ;;  %v1738_v61 = vmul.f32 %v1734_v17, %v1734_v17  ;;  %v1742_v45 = vsub.f32 %v5007_v2, %v1734_v17  ;;  %v5032_v44 = vpop.permute.xlu1 %2083 }
 0x853   : > { %v1739_v20 = vsub.f32 %v1735_v54, %v1737_v38 }
 0x854   : > { %v1740_v33 = vsub.f32 %v1736_v19, %v1738_v61 }
 0x855   : > { %v1743_v24 = vadd.f32 1e-05, %v1739_v20 }
 0x856   : > { %v1744_v16 = vadd.f32 1e-05, %v1740_v33  ;;  %v5034_v29 = vpop.permute.xlu1 %2087 }
 0x857   : > { %3267 = vrsqrt.f32 %v1743_v24 }
 0x858   : > { %3269 = vrsqrt.f32 %v1744_v16 }
 0x85a   : > { %v5036_v25 = vpop.permute.xlu1 %2163 }
 0x85e   : > { %v5038_v42 = vpop.permute.xlu1 %2191 }
 0x861   : > { %v3268_v60 = vpop.eup %3267 }
 0x862   : > { %v3270_v22 = vpop.eup %3269  ;;  %v1747_v35 = vmul.f32 %v3268_v60, %v1741_v31  ;;  %v5040_v49 = vpop.permute.xlu1 %2271 }
 0x863   : > { %v1748_v53 = vmul.f32 %v3270_v22, %v1742_v45 }
 0x864   : > { %v1755_v52 = vmul.f32 %v1753_v12, %v1747_v35 }
 0x865   : > { %v1756_v4 = vmul.f32 %v1753_v12, %v1748_v53 }
 0x866   : > { %v1763_v50 = vadd.f32 %v1761_v14, %v1755_v52  ;;  %v5042_v32 = vpop.permute.xlu1 %2343 }
 0x867   : > { %v1764_v58 = vadd.f32 %v1761_v14, %v1756_v4 }
 0x869   : > { %1781 = vmatprep.subr.mxu0 %v1764_v58 }
 0x86a   : > { %1782 = vmatpush1.msra.mxu0 %v1763_v50  ;;  %v5046_v28 = vpop.permute.xlu1 %2419 }
 0x86b   : > { %2977 = vmatmul.mubr.msk.f32.vlgmr.msra.gmra.mrb[2].mxu0 %vm5992_vm4, %v1765_v26  ;;  %vm6019_vm4 = vmmov %vm6018_vm1 }
 0x86c   : > { %1851 = vmatprep.mubr.f32.mxu0 %v5964_v8 }
 0x86e   : > { %v5050_v30 = vpop.permute.xlu1 %2423 }
 0x86f   : > { %2978 = vmatmul.mubr.msk.f32.gmra.mrb[4].mxu0 %vm5993_vm12, %v1766_v27  ;;  %5996 = vst [vmem:[#allocation44_spill] sm:$0xff] %v5050_v30  ;;  %vm6020_vm12 = vcmask 130048  }
 0x870   : > { %1857 = vmatprep.mubr.f32.mxu0 %v5964_v8 }
 0x872   : > { %v5052_v13 = vpop.permute.xlu1 %2499 }
 0x873   : > { %2979 = vmatmul.mubr.msk.f32.gmra.mrb[6].mxu0 %vm5994_vm13, %v1767_v23  ;;  %5997 = vst [vmem:[#allocation45_spill] sm:$0xff] %v5052_v13  ;;  %vm6021_vm13 = vmmov %vm6020_vm12 }
 0x874   : > { %1863 = vmatprep.mubr.f32.mxu0 %v5964_v8  ;;  %v5044_v8 = vpop.permute.xlu0 %2011 }
 0x876   : > { %v5056_v57 = vpop.permute.xlu1 %1938 }
 0x877   : > { %2980 = vmatmul.mubr.msk.f32.gmra.mrb[8].mxu0 %vm5995_vm5, %v1768_v3  ;;  %5999 = vst [vmem:[#allocation47_spill] sm:$0xff] %v5056_v57  ;;  %vm6022_vm5 = vnez %v5910_v1 }
 0x878   : > { %v5048_v47 = vpop.permute.xlu0 %1933 }
 0x87a   : > { %v5060_v41 = vpop.permute.xlu1 %2015 }
 0x87b   : > { %6001 = vst [vmem:[#allocation49_spill] sm:$0xff] %v5060_v41 }
 0x87c   : > { %v5054_v40 = vpop.permute.xlu0 %1943 }
 0x87d   : > { %5998 = vst [vmem:[#allocation46_spill] sm:$0xff] %v5054_v40 }
 0x87e   : > { %v5064_v48 = vpop.permute.xlu1 %2019 }
 0x87f   : > { %6002 = vst [vmem:[#allocation50_spill] sm:$0xff] %v5064_v48 }
 0x880   : > { %v5058_v39 = vpop.permute.xlu0 %2091 }
 0x881   : > { %6000 = vst [vmem:[#allocation48_spill] sm:$0xff] %v5058_v39 }
 0x882   : > { %v5068_v0 = vpop.permute.xlu1 %2095 }
 0x883   : > { %6004 = vst [vmem:[#allocation52_spill] sm:$0xff] %v5068_v0 }
 0x884   : > { %v5062_v36 = vpop.permute.xlu0 %2159 }
 0x886   : > { %v5082_v61 = vpop.permute.xlu1 %2167 }
 0x887   : > { %6005 = vst [vmem:[#allocation53_spill] sm:$0xff] %v5082_v61 }
 0x888   : > { %v5066_v15 = vpop.permute.xlu0 %2171  ;;  %v6075_v43 = vld [vmem:[#allocation48_spill] sm:$0xff] }
 0x889   : > { %6003 = vst [vmem:[#allocation51_spill] sm:$0xff] %v5066_v15 }
 0x88a   : > { %v2204_v45 = vpop.permute.xlu1 %2203 }
 0x88c   : > { %v5078_v38 = vpop.permute.xlu0 %2195 }
 0x88e   : > { %v5192_v58 = vpop.permute.xlu1 %2275 }
 0x88f   : > { %6011 = vst [vmem:[#allocation59_spill] sm:$0xff] %v5192_v58 }
 0x890   : > { %v2200_v33 = vpop.permute.xlu0 %2199 }
 0x892   : > { %v5201_v26 = vpop.permute.xlu1 %2355 }
 0x893   : > { %6013 = vst [vmem:[#allocation61_spill] sm:$0xff] %v5201_v26 }
 0x894   : > { %v5174_v52 = vpop.permute.xlu0 %2267 }
 0x896   : > { %v5209_v23 = vpop.permute.xlu1 %2427 }
 0x897   : > { %6015 = vst [vmem:[#allocation63_spill] sm:$0xff] %v5209_v23 }
 0x898   : > { %v5179_v4 = vpop.permute.xlu0 %2279 }
 0x899   : > { %6010 = vst [vmem:[#allocation58_spill] sm:$0xff] %v5179_v4 }
 0x89c   : > { %v5187_v14 = vpop.permute.xlu0 %2347 }
 0x8a0   : > { %v5194_v50 = vpop.permute.xlu0 %2351 }
 0x8a1   : > { %6012 = vst [vmem:[#allocation60_spill] sm:$0xff] %v5194_v50 }
 0x8a4   : > { %v5203_v27 = vpop.permute.xlu0 %2431 }
 0x8a5   : > { %6014 = vst [vmem:[#allocation62_spill] sm:$0xff] %v5203_v27 }
 0x8a8   : > { %v5211_v3 = vpop.permute.xlu0 %2495 }
 0x93e   : > { %v5070_v17 = vpop.f32.mrb[2].mxu0 }
 0x93f   : > { %2050 = vrot.lane.b32.xlu0 %v5070_v17, %s3835_s26  ;;  %1894 = vrot.lane.b32.xlu1 %v5070_v17, %s3834_s1  ;;  %v5076_v54 = vpop.f32.mrb[3].mxu0 }
 0x942   : > { %v5080_v19 = vpop.f32.mrb[4].mxu0 }
 0x943   : > { %2222 = vrot.lane.b32.xlu0 %v5070_v17, %s3837_s16  ;;  %1974 = vrot.lane.b32.xlu1 %v5070_v17, %s3836_s30  ;;  %v5088_v20 = vpop.f32.mrb[5].mxu0 }
 0x946   : > { %v5090_v24 = vpop.f32.mrb[6].mxu0 }
 0x947   : > { %2126 = vrot.lane.b32.xlu1 %v5070_v17, %s3838_s29  ;;  %2300 = vrot.lane.b32.xlu0 %v5076_v54, %s3839_s27  ;;  %v1861_v16 = vpop.f32.mrb[7].mxu0  ;;  %v5097_v31 = vmul.f32 %v2200_v33, %v5090_v24 }
 0x948   : > { %v5099_v60 = vmul.f32 %v2200_v33, %v1861_v16  ;;  %v5221_v33 = vpop.permute.xlu1 %2507 }
 0x949   : > { %6006 = vst [vmem:[#allocation54_spill] sm:$0xff] %v5097_v31  ;;  %6016 = vst [vmem:[#allocation64_spill] sm:$0xff] %v5221_v33 }
 0x94a   : > { %6007 = vst [vmem:[#allocation55_spill] sm:$0xff] %v5099_v60  ;;  %v5101_v12 = vpop.f32.mrb[8].mxu0 }
 0x94b   : > { %2298 = vrot.lane.b32.xlu1 %v5070_v17, %s3839_s27  ;;  %2376 = vrot.lane.b32.xlu0 %v5076_v54, %s3840_s3  ;;  %v5107_v22 = vpop.f32.mrb[9].mxu0  ;;  %v5110_v35 = vmul.f32 %v2204_v45, %v5101_v12 }
 0x94c   : > { %v5113_v53 = vmul.f32 %v2204_v45, %v5107_v22 }
 0x94d   : > { %6008 = vst [vmem:[#allocation56_spill] sm:$0xff] %v5110_v35 }
 0x94e   : > { %6009 = vst [vmem:[#allocation57_spill] sm:$0xff] %v5113_v53 }
 0x94f   : > { %2374 = vrot.lane.b32.xlu1 %v5070_v17, %s3840_s3  ;;  %2452 = vrot.lane.b32.xlu0 %v5076_v54, %s3841_s25 }
 0x953   : > { %2450 = vrot.lane.b32.xlu1 %v5070_v17, %s3841_s25  ;;  %1896 = vrot.lane.b32.xlu0 %v5080_v19, %s3834_s1 }
 0x957   : > { %1878 = vrot.lane.b32.xlu1 %v5076_v54, %s3834_s1  ;;  %1976 = vrot.lane.b32.xlu0 %v5080_v19, %s3836_s30 }
 0x95b   : > { %1962 = vrot.lane.b32.xlu1 %v5076_v54, %s3836_s30  ;;  %2128 = vrot.lane.b32.xlu0 %v5080_v19, %s3838_s29 }
 0x95f   : > { %2038 = vrot.lane.b32.xlu1 %v5076_v54, %s3835_s26  ;;  %2226 = vrot.lane.b32.xlu0 %v5080_v19, %s3837_s16 }
 0x963   : > { %2114 = vrot.lane.b32.xlu1 %v5076_v54, %s3838_s29  ;;  %1880 = vrot.lane.b32.xlu0 %v5088_v20, %s3834_s1 }
 0x967   : > { %2224 = vrot.lane.b32.xlu1 %v5076_v54, %s3837_s16  ;;  %1964 = vrot.lane.b32.xlu0 %v5088_v20, %s3836_s30 }
 0x96b   : > { %2052 = vrot.lane.b32.xlu1 %v5080_v19, %s3835_s26  ;;  %2116 = vrot.lane.b32.xlu0 %v5088_v20, %s3838_s29 }
 0x96f   : > { %2302 = vrot.lane.b32.xlu1 %v5080_v19, %s3839_s27  ;;  %2304 = vrot.lane.b32.xlu0 %v5088_v20, %s3839_s27 }
 0x973   : > { %2378 = vrot.lane.b32.xlu1 %v5080_v19, %s3840_s3  ;;  %2380 = vrot.lane.b32.xlu0 %v5088_v20, %s3840_s3 }
 0x977   : > { %2454 = vrot.lane.b32.xlu1 %v5080_v19, %s3841_s25  ;;  %2456 = vrot.lane.b32.xlu0 %v5088_v20, %s3841_s25 }
 0x97b   : > { %2040 = vrot.lane.b32.xlu1 %v5088_v20, %s3835_s26  ;;  %1898 = vrot.lane.b32.xlu0 %v5090_v24, %s3834_s1 }
 0x97f   : > { %2228 = vrot.lane.b32.xlu1 %v5088_v20, %s3837_s16  ;;  %1978 = vrot.lane.b32.xlu0 %v5090_v24, %s3836_s30 }
 0x983   : > { %2054 = vrot.lane.b32.xlu1 %v5090_v24, %s3835_s26  ;;  %2130 = vrot.lane.b32.xlu0 %v5090_v24, %s3838_s29 }
 0x987   : > { %2230 = vrot.lane.b32.xlu1 %v5090_v24, %s3837_s16  ;;  %1966 = vrot.lane.b32.xlu0 %v1861_v16, %s3836_s30 }
 0x98b   : > { %2306 = vrot.lane.b32.xlu1 %v5090_v24, %s3839_s27  ;;  %2308 = vrot.lane.b32.xlu0 %v1861_v16, %s3839_s27 }
 0x98f   : > { %2382 = vrot.lane.b32.xlu1 %v5090_v24, %s3840_s3  ;;  %2384 = vrot.lane.b32.xlu0 %v1861_v16, %s3840_s3 }
 0x993   : > { %1882 = vrot.lane.b32.xlu1 %v1861_v16, %s3834_s1  ;;  %2056 = vrot.lane.b32.xlu0 %v5101_v12, %s3835_s26 }
 0x997   : > { %2042 = vrot.lane.b32.xlu1 %v1861_v16, %s3835_s26  ;;  %2234 = vrot.lane.b32.xlu0 %v5101_v12, %s3837_s16 }
 0x99b   : > { %2118 = vrot.lane.b32.xlu1 %v1861_v16, %s3838_s29  ;;  %2044 = vrot.lane.b32.xlu0 %v5107_v22, %s3835_s26 }
 0x99f   : > { %2232 = vrot.lane.b32.xlu1 %v1861_v16, %s3837_s16  ;;  %2460 = vrot.lane.b32.xlu0 %v1861_v16, %s3841_s25  ;;  %v5223_v16 = vpop.permute.xlu0 %2503 }
 0x9a0   : > { %6017 = vst [vmem:[#allocation65_spill] sm:$0xff] %v5223_v16 }
 0x9a3   : > { %1900 = vrot.lane.b32.xlu1 %v5101_v12, %s3834_s1  ;;  %2312 = vrot.lane.b32.xlu0 %v5107_v22, %s3839_s27 }
 0x9a7   : > { %1980 = vrot.lane.b32.xlu1 %v5101_v12, %s3836_s30  ;;  %2388 = vrot.lane.b32.xlu0 %v5107_v22, %s3840_s3 }
 0x9ab   : > { %2132 = vrot.lane.b32.xlu1 %v5101_v12, %s3838_s29  ;;  %2464 = vrot.lane.b32.xlu0 %v5107_v22, %s3841_s25 }
 0x9af   : > { %2310 = vrot.lane.b32.xlu1 %v5101_v12, %s3839_s27  ;;  %s3842_s27 = smov [#allocation26]  }
 0x9b1   : > { %v1895_v45 = vpop.permute.xlu1 %1894  ;;  %v2051_v2 = vpop.permute.xlu0 %2050 }
 0x9b3   : > { %2386 = vrot.lane.b32.xlu1 %v5101_v12, %s3840_s3  ;;  %s3715_s3 = sshll.u32 %s3842_s27, 4  ;;  %s3716_s3 = int_to_ptr.vmem [resolvable:$false] %s3715_s3 }
 0x9b5   : > { %v1975_v11 = vpop.permute.xlu1 %1974  ;;  %v5229_v27 = vpop.permute.xlu0 %2222 }
 0x9b7   : > { %1884 = vrot.lane.b32.xlu1 %v5107_v22, %s3834_s1  ;;  %s2732_s1 = sshll.u32 %s693_s15, 4  ;;  %s5711_s1 = int_to_ptr.vmem [resolvable:$true] %s2732_s1 }
 0x9b8   : > { %s3711_s2 = scalar_lea.vmem %s5711_s1, 256  ;;  %p3718_p5 = scmp.lt.s32.totalorder %s5711_s1, %s3716_s3 }
 0x9b9   : > { %v2127_v26 = vpop.permute.xlu1 %2126  ;;  %v2301_v4 = vpop.permute.xlu0 %2300  ;;  %p3712_p10 = scmp.ne.s32.totalorder %s5711_s1, %s3711_s2 }
 0x9bb   : > { %1968 = vrot.lane.b32.xlu1 %v5107_v22, %s3836_s30  ;;  %p3713_p11 = pnand %p3712_p10, %p6131_p4 }
 0x9bd   : > { %v2299_v33 = vpop.permute.xlu1 %2298  ;;  %v2377_v16 = vpop.permute.xlu0 %2376  ;;  %p3714_p8 = pneg %p3713_p11 }
 0x9bf   : > { %2120 = vrot.lane.b32.xlu1 %v5107_v22, %s3838_s29 }
 0x9c1   : > { %v2375_v53 = vpop.permute.xlu1 %2374  ;;  %v2453_v35 = vpop.permute.xlu0 %2452 }
 0x9c3   : > { %2236 = vrot.lane.b32.xlu1 %v5107_v22, %s3837_s16  ;;  %s6130_s16 = sld [smem:[#allocation70_spill]] }
 0x9c5   : > { %v2451_v15 = vpop.permute.xlu1 %2450  ;;  %v5239_v48 = vpop.permute.xlu0 %1896 }
 0x9c7   : > { %2458 = vrot.lane.b32.xlu1 %v5090_v24, %s3841_s25 }
 0x9c9   : > { %v1879_v40 = vpop.permute.xlu1 %1878  ;;  %v5243_v0 = vpop.permute.xlu0 %1976  ;;  %s5709_s29 = scalar_lea.hbm %s6130_s16, %s2988_s17 }
 0x9ca   : > { %v1902_v23 = vsel %vm6018_vm1, %v1895_v45, %v1879_v40  ;;  %v1914_v50 = vsel %vm6019_vm4, %v1879_v40, %v1895_v45  ;;  %vm6023_vm1 = vnez %v5912_v55  ;;  %vm6024_vm4 = vcmask 121856  }
 0x9cb   : > { %2462 = vrot.lane.b32.xlu1 %v5101_v12, %s3841_s25  ;;  %v1918_v60 = vsel %vm4578_vm9, %v1914_v50, 0.0  ;;  %v1919_v22 = vsel %vm4582_vm11, %v1902_v23, 0.0  ;;  %vm6027_vm11 = vcmask 924672   ;;  %s3717_s25 = scalar_lea.vmem %s3716_s3, 512 }
 0x9cc   : > { %v1946_v12 = vmul.f32 %v5028_v9, %v1918_v60  ;;  %v1947_v50 = vmul.f32 %v5028_v9, %v1919_v22  ;;  %vm6028_vm9 = vmmov %vm6027_vm11  ;;  %p3719_p7 = scmp.lt.s32.totalorder %s3717_s25, %s3711_s2 }
 0x9cd   : > { %v1963_v58 = vpop.permute.xlu1 %1962  ;;  %v5253_v31 = vpop.permute.xlu0 %2128 }
 0x9ce   : > { %v1982_v24 = vsel %vm6020_vm12, %v1975_v11, %v1963_v58  ;;  %v1994_v61 = vsel %vm6021_vm13, %v1963_v58, %v1975_v11  ;;  %vm6025_vm12 = vmmov %vm6024_vm4  ;;  %vm6026_vm13 = vnez %v5926_v56  ;;  %p3720_p6 = por %p3719_p7, %p3718_p5 }
 0x9cf   : > { %v1998_v39 = vsel %vm6022_vm5, %v1994_v61, 0.0  ;;  %v1999_v40 = vsel %vm6023_vm1, %v1982_v24, 0.0  ;;  %v2314_v24 = vsel %vm6027_vm11, %v2299_v33, %v2301_v4  ;;  %vm6029_vm1 = vcmask 7168  }
 0x9d0   : > { %v2022_v45 = vmul.f32 %v5030_v21, %v1998_v39  ;;  %v2023_v23 = vmul.f32 %v5030_v21, %v1999_v40  ;;  %v2330_v40 = vsel %vm6028_vm9, %v2301_v4, %v2299_v33  ;;  %vm6033_vm9 = vcmask 916480   ;;  %p3721_p9 = pnand %p3720_p6, %p3714_p8 }
 0x9d1   : > { %v2039_v57 = vpop.permute.xlu1 %2038  ;;  %v5265_v41 = vpop.permute.xlu0 %2226  ;;  %vm6034_vm11 = vmmov %vm6033_vm9 }
 0x9d2   : > { %v2030_v13 = vadd.f32 %v2022_v45, %v1946_v12  ;;  %v2031_v30 = vadd.f32 %v2023_v23, %v1947_v50  ;;  %v2058_v11 = vsel %vm6024_vm4, %v2051_v2, %v2039_v57  ;;  %v2070_v61 = vsel %vm6025_vm12, %v2039_v57, %v2051_v2  ;;  %vm6030_vm4 = vmmov %vm6029_vm1 }
 0x9d3   : > { %v2074_v58 = vsel %vm4646_vm3, %v2070_v61, 0.0  ;;  %v2075_v60 = vsel %vm6026_vm13, %v2058_v11, 0.0  ;;  %v2206_v57 = vmul.f32 %v5038_v42, %v5070_v17  ;;  %vm6031_vm12 = vnez %v5918_v34 }
 0x9d4   : > { %v2098_v9 = vmul.f32 %v5032_v44, %v2074_v58  ;;  %v2099_v39 = vmul.f32 %v5032_v44, %v2075_v60  ;;  %vm6032_vm13 = vnez %v5920_v10  ;;  %v2207_v44 = vmul.f32 %v5038_v42, %v5076_v54 }
 0x9d5   : > { %v2115_v21 = vpop.permute.xlu1 %2114  ;;  %v1881_v22 = vpop.permute.xlu0 %1880  ;;  %v2335_v17 = vsel %vm4668_vm7, %v2330_v40, 0.0  ;;  %v2390_v61 = vsel %vm6033_vm9, %v2375_v53, %v2377_v16  ;;  %v2406_v58 = vsel %vm6034_vm11, %v2377_v16, %v2375_v53  ;;  %vm6037_vm3 = vcmask 908288  }
 0x9d6   : > { %v2134_v12 = vsel %vm6029_vm1, %v2127_v26, %v2115_v21  ;;  %v2146_v2 = vsel %vm6030_vm4, %v2115_v21, %v2127_v26  ;;  %v2106_v23 = vadd.f32 %v2098_v9, %v2030_v13  ;;  %v2107_v11 = vadd.f32 %v2099_v39, %v2031_v30 }
 0x9d7   : > { %v2150_v50 = vsel %vm6031_vm12, %v2146_v2, 0.0  ;;  %v2151_v45 = vsel %vm6032_vm13, %v2134_v12, 0.0  ;;  %v2334_v26 = vsel %vm4664_vm6, %v2314_v24, 0.0  ;;  %vm6035_vm1 = vcmask 1039360   ;;  %vm6038_vm6 = vmmov %vm6037_vm3 }
 0x9d8   : > { %v2174_v4 = vmul.f32 %v5062_v36, %v2150_v50  ;;  %v2175_v33 = vmul.f32 %v5062_v36, %v2151_v45  ;;  %vm6036_vm4 = vmmov %vm6035_vm1  ;;  %v2466_v36 = vsel %vm6037_vm3, %v2451_v15, %v2453_v35  ;;  %v2482_v54 = vsel %vm6038_vm6, %v2453_v35, %v2451_v15 }
 0x9d9   : > { %v2225_v60 = vpop.permute.xlu1 %2224  ;;  %v1965_v21 = vpop.permute.xlu0 %1964  ;;  %v2410_v2 = vsel %vm4727_vm2, %v2390_v61, 0.0  ;;  %v2358_v35 = vmul.f32 %v5042_v32, %v2334_v26  ;;  %v2359_v45 = vmul.f32 %v5042_v32, %v2335_v17  ;;  %vm6039_vm3 = vcmask 130048  }
 0x9da   : > { %v2182_v12 = vadd.f32 %v2174_v4, %v2106_v23  ;;  %v2183_v42 = vadd.f32 %v2175_v33, %v2107_v11  ;;  %v2238_v30 = vsel %vm6035_vm1, %v5229_v27, %v2225_v60  ;;  %v2254_v13 = vsel %vm6036_vm4, %v2225_v60, %v5229_v27  ;;  %vm6040_vm6 = vmmov %vm6039_vm3 }
 0x9db   : > { %v2258_v9 = vsel %vm4709_vm8, %v2238_v30, 0.0  ;;  %v2259_v53 = vsel %vm5983_vm0, %v2254_v13, 0.0  ;;  %v2411_v27 = vsel %vm4731_vm10, %v2406_v58, 0.0  ;;  %vm6041_vm9 = vcmask 138240  }
 0x9dc   : > { %v2214_v16 = vadd.f32 %v2206_v57, %v2182_v12  ;;  %v2215_v39 = vadd.f32 %v2207_v44, %v2183_v42  ;;  %v2282_v24 = vmul.f32 %v5174_v52, %v2258_v9  ;;  %v2283_v40 = vmul.f32 %v5174_v52, %v2259_v53  ;;  %vm6042_vm11 = vmmov %vm6041_vm9 }
 0x9dd   : > { %v2053_v50 = vpop.permute.xlu1 %2052  ;;  %v2117_v15 = vpop.permute.xlu0 %2116  ;;  %v2486_v57 = vsel %vm4779_vm14, %v2466_v36, 0.0  ;;  %v2487_v52 = vsel %vm4783_vm15, %v2482_v54, 0.0  ;;  %v2434_v44 = vmul.f32 %v5046_v28, %v2410_v2  ;;  %v2435_v4 = vmul.f32 %v5046_v28, %v2411_v27 }
 0x9de   : > { %v2290_v23 = vadd.f32 %v2282_v24, %v2214_v16  ;;  %v2291_v11 = vadd.f32 %v2283_v40, %v2215_v39  ;;  %v2510_v26 = vmul.f32 %v5211_v3, %v2486_v57  ;;  %v2511_v32 = vmul.f32 %v5211_v3, %v2487_v52 }
 0x9df   : > { %v1995_v54 = vsel %vm6039_vm3, %v1965_v21, %v5243_v0  ;;  %v1983_v3 = vsel %vm6040_vm6, %v5243_v0, %v1965_v21  ;;  %v1903_v53 = vsel %vm6041_vm9, %v5239_v48, %v1881_v22  ;;  %v1915_v16 = vsel %vm6042_vm11, %v1881_v22, %v5239_v48 }
 0x9e0   : > { %v2366_v33 = vadd.f32 %v2358_v35, %v2290_v23  ;;  %v2367_v61 = vadd.f32 %v2359_v45, %v2291_v11  ;;  %v2000_v40 = vsel %vm6022_vm5, %v1995_v54, 0.0  ;;  %vm6043_vm1 = vnez %v5912_v55 }
 0x9e1   : > { %v2303_v58 = vpop.permute.xlu1 %2302  ;;  %v2305_v60 = vpop.permute.xlu0 %2304  ;;  %v2001_v0 = vsel %vm6043_vm1, %v1983_v3, 0.0  ;;  %vm6044_vm4 = vnez %v5906_v62  ;;  %vm6045_vm3 = vnez %v5908_v63  ;;  %vm6046_vm6 = vcmask 7168  }
 0x9e2   : > { %v2442_v17 = vadd.f32 %v2434_v44, %v2366_v33  ;;  %v2443_v12 = vadd.f32 %v2435_v4, %v2367_v61  ;;  %v1920_v21 = vsel %vm6044_vm4, %v1915_v16, 0.0  ;;  %v1921_v48 = vsel %vm6045_vm3, %v1903_v53, 0.0  ;;  %vm6047_vm9 = vmmov %vm6046_vm6 }
 0x9e3   : > { %v2147_v35 = vsel %vm6046_vm6, %v2117_v15, %v5253_v31  ;;  %v2024_v23 = vmul.f32 %v5044_v8, %v2000_v40  ;;  %v2135_v11 = vsel %vm6047_vm9, %v5253_v31, %v2117_v15  ;;  %v2025_v52 = vmul.f32 %v5044_v8, %v2001_v0 }
 0x9e4   : > { %v5321_v42 = vadd.f32 %v2510_v26, %v2442_v17  ;;  %v5323_v30 = vadd.f32 %v2511_v32, %v2443_v12  ;;  %v1948_v4 = vmul.f32 %v5048_v47, %v1920_v21  ;;  %v1949_v33 = vmul.f32 %v5048_v47, %v1921_v48 }
 0x9e5   : > { %v2379_v13 = vpop.permute.xlu1 %2378  ;;  %v2381_v9 = vpop.permute.xlu0 %2380  ;;  %v2152_v61 = vsel %vm6031_vm12, %v2147_v35, 0.0  ;;  %v2153_v32 = vsel %vm6032_vm13, %v2135_v11, 0.0  ;;  %vm6048_vm11 = vcmask 121856   ;;  %vm6050_vm9 = vnez %v5916_v59 }
 0x9e6   : > { %v5326_v36 = vmul.f32 0.70710677, %v5321_v42  ;;  %v5329_v28 = vmul.f32 0.70710677, %v5323_v30  ;;  %vm6049_vm6 = vmmov %vm6048_vm11  ;;  %v2032_v15 = vadd.f32 %v2024_v23, %v1948_v4  ;;  %vm6051_vm3 = vnez %v5926_v56 }
 0x9e7   : > { %v2033_v47 = vadd.f32 %v2025_v52, %v1949_v33  ;;  %v2176_v54 = vmul.f32 %v5036_v25, %v2152_v61  ;;  %v2177_v40 = vmul.f32 %v5036_v25, %v2153_v32  ;;  %v2209_v25 = vmul.f32 %v5078_v38, %v5088_v20 }
 0x9e8   : > { %v5340_v39 = vand.u32 2147483647, %v5326_v36  ;;  %v5343_v24 = vand.u32 2147483647, %v5329_v28 }
 0x9e9   : > { %v2455_v2 = vpop.permute.xlu1 %2454  ;;  %v2457_v57 = vpop.permute.xlu0 %2456 }
 0x9ea   : > { %v2538_v27 = vmul.f32 0.3275911, %v5340_v39  ;;  %v2539_v22 = vmul.f32 0.3275911, %v5343_v24 }
 0x9ec   : > { %v2542_v45 = vadd.f32 1.0, %v2538_v27  ;;  %v2543_v26 = vadd.f32 1.0, %v2539_v22 }
 0x9ed   : > { %v2041_v44 = vpop.permute.xlu1 %2040 }
 0x9ee   : > { %3271 = vrcp.f32 %v2542_v45  ;;  %v2059_v17 = vsel %vm6048_vm11, %v2053_v50, %v2041_v44  ;;  %v2071_v31 = vsel %vm6049_vm6, %v2041_v44, %v2053_v50  ;;  %vm6052_vm11 = vcmask 924672   ;;  %v5378_v50 = vpop.permute.xlu0 %1898 }
 0x9ef   : > { %v2076_v8 = vsel %vm6050_vm9, %v2071_v31, 0.0  ;;  %v2077_v12 = vsel %vm6051_vm3, %v2059_v17, 0.0  ;;  %v2315_v27 = vsel %vm6052_vm11, %v2303_v58, %v2305_v60  ;;  %vm6053_vm6 = vcmask 1039360   ;;  %vm6055_vm12 = vmmov %vm6052_vm11 }
 0x9f0   : > { %v2100_v3 = vmul.f32 %v5034_v29, %v2076_v8  ;;  %v2101_v53 = vmul.f32 %v5034_v29, %v2077_v12  ;;  %vm6054_vm13 = vmmov %vm6053_vm6  ;;  %3273 = vrcp.f32 %v2543_v26  ;;  %v2331_v48 = vsel %vm6055_vm12, %v2305_v60, %v2303_v58 }
 0x9f1   : > { %v2229_v16 = vpop.permute.xlu1 %2228  ;;  %v2208_v29 = vmul.f32 %v5078_v38, %v5080_v19  ;;  %vm6056_vm11 = vcmask 916480   ;;  %vm6058_vm12 = vnez %v5922_v6  ;;  %v2337_v38 = vsel %vm4668_vm7, %v2331_v48, 0.0 }
 0x9f2   : > { %v2239_v0 = vsel %vm6053_vm6, %v5265_v41, %v2229_v16  ;;  %v2255_v21 = vsel %vm6054_vm13, %v2229_v16, %v5265_v41  ;;  %v2108_v22 = vadd.f32 %v2100_v3, %v2032_v15  ;;  %v2109_v35 = vadd.f32 %v2101_v53, %v2033_v47  ;;  %vm6057_vm13 = vmmov %vm6056_vm11  ;;  %v1979_v17 = vpop.permute.xlu0 %1978 }
 0x9f3   : > { %v2260_v45 = vsel %vm4709_vm8, %v2239_v0, 0.0  ;;  %v2261_v23 = vsel %vm5983_vm0, %v2255_v21, 0.0  ;;  %v2391_v11 = vsel %vm6056_vm11, %v2379_v13, %v2381_v9  ;;  %v2407_v41 = vsel %vm6057_vm13, %v2381_v9, %v2379_v13 }
 0x9f4   : > { %v2184_v52 = vadd.f32 %v2176_v54, %v2108_v22  ;;  %v2185_v58 = vadd.f32 %v2177_v40, %v2109_v35  ;;  %v2336_v19 = vsel %vm6058_vm12, %v2315_v27, 0.0  ;;  %vm6059_vm6 = vcmask 908288   ;;  %v6061_v54 = vld [vmem:[#allocation44_spill] sm:$0xff] }
 0x9f5   : > { %v5395_v60 = vpop.permute.xlu1 %2054  ;;  %v2467_v20 = vsel %vm6059_vm6, %v2455_v2, %v2457_v57  ;;  %vm6060_vm8 = vmmov %vm6059_vm6  ;;  %v2284_v61 = vmul.f32 %v5040_v49, %v2260_v45  ;;  %v2285_v13 = vmul.f32 %v5040_v49, %v2261_v23  ;;  %v2412_v26 = vsel %vm4727_vm2, %v2391_v11, 0.0 }
 0x9f6   : > { %v2483_v44 = vsel %vm6060_vm8, %v2457_v57, %v2455_v2  ;;  %v2216_v4 = vadd.f32 %v2208_v29, %v2184_v52  ;;  %v2217_v33 = vadd.f32 %v2209_v25, %v2185_v58  ;;  %v2413_v32 = vsel %vm4731_vm10, %v2407_v41, 0.0  ;;  %v5428_v29 = vpop.permute.xlu0 %2130 }
 0x9f7   : > { %v2360_v31 = vmul.f32 %v5187_v14, %v2336_v19  ;;  %v2361_v15 = vmul.f32 %v5187_v14, %v2337_v38  ;;  %v2488_v49 = vsel %vm4779_vm14, %v2467_v20, 0.0  ;;  %v2489_v12 = vsel %vm4783_vm15, %v2483_v44, 0.0  ;;  %v6062_v14 = vld [vmem:[#allocation45_spill] sm:$0xff] }
 0x9f8   : > { %v5405_v9 = vpop.eup %3271  ;;  %v2292_v2 = vadd.f32 %v2284_v61, %v2216_v4  ;;  %v2293_v57 = vadd.f32 %v2285_v13, %v2217_v33  ;;  %v2436_v3 = vmul.f32 %v6061_v54, %v2412_v26  ;;  %v2437_v53 = vmul.f32 %v6061_v54, %v2413_v32 }
 0x9f9   : > { %v5413_v8 = vpop.permute.xlu1 %2230  ;;  %v2554_v47 = vmul.f32 1.0614054, %v5405_v9  ;;  %v2512_v0 = vmul.f32 %v6062_v14, %v2488_v49  ;;  %v2513_v21 = vmul.f32 %v6062_v14, %v2489_v12  ;;  %v2590_v32 = vsub.f32 0.0, %v5340_v39 }
 0x9fa   : > { %v2368_v16 = vadd.f32 %v2360_v31, %v2292_v2  ;;  %v2369_v40 = vadd.f32 %v2361_v15, %v2293_v57  ;;  %v5422_v27 = vpop.eup %3273  ;;  %v1967_v44 = vpop.permute.xlu0 %1966  ;;  %v2591_v2 = vsub.f32 0.0, %v5343_v24  ;;  %vm6064_vm8 = vcmask 130048  }
 0x9fb   : > { %v2558_v25 = vadd.f32 -1.4531521, %v2554_v47  ;;  %v2555_v11 = vmul.f32 1.0614054, %v5422_v27  ;;  %v2594_v54 = vmul.f32 %v2590_v32, %v5340_v39  ;;  %vm6065_vm11 = vmmov %vm6064_vm8  ;;  %vm6066_vm13 = vcmask 138240  }
 0x9fc   : > { %v2444_v48 = vadd.f32 %v2436_v3, %v2368_v16  ;;  %v2445_v22 = vadd.f32 %v2437_v53, %v2369_v40  ;;  %v2595_v3 = vmul.f32 %v2591_v2, %v5343_v24  ;;  %vm6067_vm6 = vmmov %vm6066_vm13  ;;  %vm6081_vm14 = vcmask 924672  }
 0x9fd   : > { %v5426_v35 = vpop.permute.xlu1 %2306  ;;  %v2562_v19 = vmul.f32 %v5405_v9, %v2558_v25  ;;  %v2559_v4 = vadd.f32 -1.4531521, %v2555_v11  ;;  %v2598_v14 = vmul.f32 1.442695, %v2594_v54  ;;  %v1984_v11 = vsel %vm6065_vm11, %v1979_v17, %v1967_v44 }
 0x9fe   : > { %v5430_v45 = vadd.f32 %v2512_v0, %v2444_v48  ;;  %v5432_v23 = vadd.f32 %v2513_v21, %v2445_v22  ;;  %v5455_v12 = vpop.permute.xlu0 %2308  ;;  %v2600_v0 = vmul.f32 1.442695, %v2595_v3  ;;  %v1996_v22 = vsel %vm6064_vm8, %v1967_v44, %v1979_v17 }
 0x9ff   : > { %v2566_v26 = vadd.f32 1.4214138, %v2562_v19  ;;  %v2563_v57 = vmul.f32 %v5422_v27, %v2559_v4  ;;  %vm6068_vm8 = vcmask 121856   ;;  %vm6069_vm11 = vnez %v5908_v63 }
 0xa00   : > { %v5436_v41 = vmul.f32 0.70710677, %v5430_v45  ;;  %v5439_v52 = vmul.f32 0.70710677, %v5432_v23  ;;  %v5602_v56 = vmul.f32 0.5, %v5432_v23 }
 0xa01   : > { %v5441_v58 = vpop.permute.xlu1 %2382  ;;  %v2570_v47 = vmul.f32 %v5405_v9, %v2566_v26  ;;  %v2567_v53 = vadd.f32 1.4214138, %v2563_v57  ;;  %v2003_v26 = vsel %vm6043_vm1, %v1984_v11, 0.0  ;;  %v6073_v11 = vld [vmem:[#allocation47_spill] sm:$0xff] }
 0xa02   : > { %6063 = vst [vmem:[#allocation44_spill] sm:$0xff] %v5439_v52  ;;  %v5445_v38 = vand.u32 2147483647, %v5436_v41  ;;  %v5448_v20 = vand.u32 2147483647, %v5439_v52  ;;  %v5460_v21 = vpop.permute.xlu0 %2384 }
 0xa03   : > { %v2574_v40 = vadd.f32 -0.28449672, %v2570_v47  ;;  %v2571_v48 = vmul.f32 %v5422_v27, %v2567_v53 }
 0xa04   : > { %v2540_v33 = vmul.f32 0.3275911, %v5445_v38  ;;  %v2541_v61 = vmul.f32 0.3275911, %v5448_v20 }
 0xa05   : > { %v1883_v13 = vpop.permute.xlu1 %1882  ;;  %v2578_v24 = vmul.f32 %v5405_v9, %v2574_v40  ;;  %v2575_v44 = vadd.f32 -0.28449672, %v2571_v48  ;;  %v6072_v48 = vld [vmem:[#allocation49_spill] sm:$0xff] }
 0xa06   : > { %v2544_v31 = vadd.f32 1.0, %v2540_v33  ;;  %v2545_v15 = vadd.f32 1.0, %v2541_v61  ;;  %v1916_v39 = vsel %vm6066_vm13, %v1883_v13, %v5378_v50  ;;  %v1904_v4 = vsel %vm6067_vm6, %v5378_v50, %v1883_v13  ;;  %v5491_v57 = vpop.permute.xlu0 %2056  ;;  %vm6070_vm13 = vmmov %vm6068_vm8 }
 0xa07   : > { %v2002_v61 = vsel %vm6022_vm5, %v1996_v22, 0.0  ;;  %v1922_v32 = vsel %vm6044_vm4, %v1916_v39, 0.0  ;;  %v1923_v2 = vsel %vm6069_vm11, %v1904_v4, 0.0  ;;  %v2582_v54 = vadd.f32 0.2548296, %v2578_v24 }
 0xa08   : > { %3275 = vrcp.f32 %v2544_v31  ;;  %vm6071_vm6 = vcmask 7168   ;;  %v2026_v22 = vmul.f32 %v6072_v48, %v2002_v61  ;;  %v1950_v39 = vmul.f32 %v6073_v11, %v1922_v32 }
 0xa09   : > { %v2043_v49 = vpop.permute.xlu1 %2042  ;;  %3277 = vrcp.f32 %v2545_v15  ;;  %v2592_v15 = vsub.f32 0.0, %v5445_v38  ;;  %v1951_v61 = vmul.f32 %v6073_v11, %v1923_v2 }
 0xa0a   : > { %3279 = vpow2.f32 %v2598_v14  ;;  %v2072_v17 = vsel %vm6068_vm8, %v2043_v49, %v5395_v60  ;;  %v2060_v47 = vsel %vm6070_vm13, %v5395_v60, %v2043_v49  ;;  %vm6074_vm8 = vmmov %vm6071_vm6  ;;  %vm6076_vm13 = vnez %v5918_v34 }
 0xa0b   : > { %3281 = vpow2.f32 %v2600_v0  ;;  %v2078_v3 = vsel %vm6050_vm9, %v2072_v17, 0.0  ;;  %v2593_v0 = vsub.f32 0.0, %v5448_v20  ;;  %v2079_v60 = vsel %vm6051_vm3, %v2060_v47, 0.0 }
 0xa0c   : > { %v2102_v32 = vmul.f32 %v6075_v43, %v2078_v3  ;;  %v2586_v47 = vmul.f32 %v5405_v9, %v2582_v54  ;;  %v2034_v52 = vadd.f32 %v2026_v22, %v1950_v39  ;;  %v6078_v3 = vld [vmem:[#allocation53_spill] sm:$0xff] }
 0xa0d   : > { %v2119_v16 = vpop.permute.xlu1 %2118 }
 0xa0e   : > { %v2148_v53 = vsel %vm6071_vm6, %v2119_v16, %v5428_v29  ;;  %v2136_v4 = vsel %vm6074_vm8, %v5428_v29, %v2119_v16  ;;  %vm6077_vm6 = vnez %v5920_v10  ;;  %vm6079_vm8 = vcmask 1039360  }
 0xa0f   : > { %v2154_v29 = vsel %vm6076_vm13, %v2148_v53, 0.0  ;;  %v2155_v16 = vsel %vm6077_vm6, %v2136_v4, 0.0  ;;  %vm6080_vm15 = vmmov %vm6079_vm8 }
 0xa10   : > { %v2178_v11 = vmul.f32 %v6078_v3, %v2154_v29  ;;  %vm6082_vm6 = vmmov %vm6081_vm14 }
 0xa11   : > { %v5464_v25 = vpop.permute.xlu1 %2232 }
 0xa12   : > { %v5470_v19 = vpop.eup %3275 }
 0xa13   : > { %v5474_v33 = vpop.eup %3277  ;;  %v2556_v50 = vmul.f32 1.0614054, %v5470_v19 }
 0xa14   : > { %v2557_v13 = vmul.f32 1.0614054, %v5474_v33  ;;  %v3280_v2 = vpop.eup %3279 }
 0xa15   : > { %v5484_v31 = vpop.permute.xlu1 %1900  ;;  %v2560_v40 = vadd.f32 -1.4531521, %v2556_v50  ;;  %v2579_v50 = vmul.f32 %v5422_v27, %v2575_v44  ;;  %v2027_v44 = vmul.f32 %v6072_v48, %v2003_v26  ;;  %v2179_v26 = vmul.f32 %v6078_v3, %v2155_v16 }
 0xa16   : > { %v2561_v14 = vadd.f32 -1.4531521, %v2557_v13  ;;  %v2596_v13 = vmul.f32 %v2592_v15, %v5445_v38  ;;  %v2103_v38 = vmul.f32 %v6075_v43, %v2079_v60  ;;  %v5522_v15 = vpop.permute.xlu0 %2234  ;;  %v2240_v43 = vsel %vm6079_vm8, %v5413_v8, %v5464_v25 }
 0xa17   : > { %v2564_v24 = vmul.f32 %v5470_v19, %v2560_v40  ;;  %v2583_v54 = vadd.f32 0.2548296, %v2579_v50  ;;  %v2606_v48 = vmul.f32 %v3280_v2, %v2586_v47  ;;  %v5537_v50 = vmul.f32 0.5, %v5321_v42  ;;  %v6086_v2 = vld [vmem:[#allocation54_spill] sm:$0xff] }
 0xa18   : > { %v2565_v17 = vmul.f32 %v5474_v33, %v2561_v14  ;;  %v2597_v14 = vmul.f32 %v2593_v0, %v5448_v20  ;;  %v2035_v20 = vadd.f32 %v2027_v44, %v1951_v61  ;;  %v2110_v0 = vadd.f32 %v2102_v32, %v2034_v52 }
 0xa19   : > { %v5506_v49 = vpop.permute.xlu1 %1980  ;;  %v2568_v7 = vadd.f32 1.4214138, %v2564_v24  ;;  %v3282_v24 = vpop.eup %3281  ;;  %v2316_v52 = vsel %vm6081_vm14, %v5426_v35, %v5455_v12  ;;  %v2587_v16 = vmul.f32 %v5422_v27, %v2583_v54  ;;  %vm6084_vm14 = vcmask 916480  }
 0xa1a   : > { %v2569_v40 = vadd.f32 1.4214138, %v2565_v17  ;;  %v2602_v17 = vmul.f32 1.442695, %v2596_v13  ;;  %v2604_v60 = vmul.f32 1.442695, %v2597_v14  ;;  %v2111_v29 = vadd.f32 %v2103_v38, %v2035_v20 }
 0xa1b   : > { %v2572_v4 = vmul.f32 %v5470_v19, %v2568_v7  ;;  %v2256_v7 = vsel %vm6080_vm15, %v5464_v25, %v5413_v8  ;;  %v2332_v13 = vsel %vm6082_vm6, %v5455_v12, %v5426_v35  ;;  %v2186_v61 = vadd.f32 %v2178_v11, %v2110_v0  ;;  %vm6085_vm6 = vmmov %vm6084_vm14  ;;  %v6087_v11 = vld [vmem:[#allocation59_spill] sm:$0xff] }
 0xa1c   : > { %v2573_v9 = vmul.f32 %v5474_v33, %v2569_v40  ;;  %3283 = vpow2.f32 %v2602_v17  ;;  %v2187_v47 = vadd.f32 %v2179_v26, %v2111_v29  ;;  %v2045_v40 = vpop.permute.xlu0 %2044  ;;  %vm6083_vm15 = vnez %v5928_v46  ;;  %v6090_v0 = vld [vmem:[#allocation55_spill] sm:$0xff] }
 0xa1d   : > { %v5525_v53 = vpop.permute.xlu1 %2132  ;;  %v2576_v22 = vadd.f32 -0.28449672, %v2572_v4  ;;  %v2262_v42 = vsel %vm6083_vm15, %v2240_v43, 0.0  ;;  %v5551_v8 = vmul.f32 0.5, %v5323_v30  ;;  %v2263_v25 = vsel %vm5983_vm0, %v2256_v7, 0.0 }
 0xa1e   : > { %v2577_v39 = vadd.f32 -0.28449672, %v2573_v9  ;;  %v2610_v14 = vsub.f32 1.0, %v2606_v48  ;;  %3285 = vpow2.f32 %v2604_v60  ;;  %v2338_v27 = vsel %vm6058_vm12, %v2316_v52, 0.0 }
 0xa1f   : > { %v2580_v35 = vmul.f32 %v5470_v19, %v2576_v22  ;;  %v2339_v44 = vsel %vm4668_vm7, %v2332_v13, 0.0  ;;  %v2392_v30 = vsel %vm6084_vm14, %v5441_v58, %v5460_v21  ;;  %v2408_v38 = vsel %vm6085_vm6, %v5460_v21, %v5441_v58  ;;  %v6091_v22 = vld [vmem:[#allocation60_spill] sm:$0xff] }
 0xa20   : > { %v2581_v12 = vmul.f32 %v5474_v33, %v2577_v39  ;;  %v2218_v3 = vadd.f32 %v6086_v2, %v2186_v61  ;;  %v2286_v4 = vmul.f32 %v6087_v11, %v2262_v42  ;;  %v2607_v54 = vmul.f32 %v3282_v24, %v2587_v16  ;;  %v6095_v2 = vld [vmem:[#allocation52_spill] sm:$0xff] }
 0xa21   : > { %v5545_v32 = vpop.permute.xlu1 %2310  ;;  %vm6088_vm8 = vcmask 121856   ;;  %v2219_v26 = vadd.f32 %v6090_v0, %v2187_v47  ;;  %v2287_v43 = vmul.f32 %v6087_v11, %v2263_v25  ;;  %vm2614_vm14 = vcmp.ge.f32.partialorder %v5326_v36, 0.0 }
 0xa22   : > { %v2061_v17 = vsel %vm6088_vm8, %v5491_v57, %v2045_v40  ;;  %vm6089_vm0 = vmmov %vm6088_vm8  ;;  %v2618_v58 = vsub.f32 0.0, %v2610_v14  ;;  %v2584_v21 = vadd.f32 0.2548296, %v2580_v35  ;;  %v2585_v48 = vadd.f32 0.2548296, %v2581_v12 }
 0xa23   : > { %v2073_v20 = vsel %vm6089_vm0, %v2045_v40, %v5491_v57  ;;  %v2362_v39 = vmul.f32 %v6091_v22, %v2338_v27  ;;  %v2363_v60 = vmul.f32 %v6091_v22, %v2339_v44  ;;  %v2414_v24 = vsel %vm4727_vm2, %v2392_v30, 0.0  ;;  %v5584_v57 = vpop.permute.xlu0 %2460  ;;  %v6094_v44 = vld [vmem:[#allocation63_spill] sm:$0xff] }
 0xa24   : > { %v2415_v29 = vsel %vm4731_vm10, %v2408_v38, 0.0  ;;  %vm2615_vm0 = vcmp.ge.f32.partialorder %v5329_v28, 0.0  ;;  %v2080_v7 = vsel %vm6050_vm9, %v2073_v20, 0.0  ;;  %v2081_v52 = vsel %vm6051_vm3, %v2061_v17, 0.0  ;;  %v6105_v28 = vld [vmem:[#allocation44_spill] sm:$0xff] }
 0xa25   : > { %v5569_v9 = vpop.permute.xlu1 %2386  ;;  %v2294_v13 = vadd.f32 %v2286_v4, %v2218_v3  ;;  %v2611_v16 = vsub.f32 1.0, %v2607_v54  ;;  %v2295_v47 = vadd.f32 %v2287_v43, %v2219_v26  ;;  %vm6092_vm6 = vcmask 138240   ;;  %v6098_v43 = vld [vmem:[#allocation46_spill] sm:$0xff] }
 0xa26   : > { %vm6093_vm8 = vmmov %vm6092_vm6  ;;  %v5596_v25 = vmul.f32 0.5, %v5430_v45  ;;  %v2622_v59 = vsel %vm2614_vm14, %v2610_v14, %v2618_v58  ;;  %v2588_v35 = vmul.f32 %v5470_v19, %v2584_v21  ;;  %v2589_v12 = vmul.f32 %v5474_v33, %v2585_v48  ;;  %v3284_v27 = vpop.eup %3283  ;;  %v6099_v48 = vld [vmem:[#allocation50_spill] sm:$0xff] }
 0xa27   : > { %v2438_v30 = vmul.f32 %v6094_v44, %v2414_v24  ;;  %v2439_v38 = vmul.f32 %v6094_v44, %v2415_v29  ;;  %v2105_v45 = vmul.f32 %v6095_v2, %v2081_v52  ;;  %v2370_v3 = vadd.f32 %v2362_v39, %v2294_v13  ;;  %v2313_v4 = vpop.permute.xlu0 %2312 }
 0xa28   : > { %v2619_v14 = vsub.f32 0.0, %v2611_v16  ;;  %v3286_v11 = vpop.eup %3285  ;;  %v2371_v33 = vadd.f32 %v2363_v60, %v2295_v47  ;;  %vm6096_vm3 = vcmask 130048   ;;  %v5617_v20 = vadd.f32 1.0, %v2622_v59 }
 0xa29   : > { %v1885_v61 = vpop.permute.xlu1 %1884  ;;  %vm6097_vm9 = vmmov %vm6096_vm3  ;;  %v2608_v0 = vmul.f32 %v3284_v27, %v2588_v35  ;;  %v2609_v26 = vmul.f32 %v3286_v11, %v2589_v12  ;;  %v2446_v24 = vadd.f32 %v2438_v30, %v2370_v3  ;;  %vm6104_vm14 = vnez %v5920_v10  ;;  %v6106_v35 = vld [vmem:[#allocation51_spill] sm:$0xff] }
 0xa2a   : > { %v1905_v40 = vsel %vm6092_vm6, %v5484_v31, %v1885_v61  ;;  %v1917_v42 = vsel %vm6093_vm8, %v1885_v61, %v5484_v31  ;;  %v2104_v31 = vmul.f32 %v6095_v2, %v2080_v7  ;;  %v2623_v55 = vsel %vm2615_vm0, %v2611_v16, %v2619_v14 }
 0xa2b   : > { %v1924_v36 = vsel %vm6044_vm4, %v1917_v42, 0.0  ;;  %v1925_v19 = vsel %vm6069_vm11, %v1905_v40, 0.0  ;;  %vm6100_vm4 = vcmask 924672   ;;  %vm2616_vm6 = vcmp.ge.f32.partialorder %v5436_v41, 0.0  ;;  %v2389_v16 = vpop.permute.xlu0 %2388 }
 0xa2c   : > { %v1952_v58 = vmul.f32 %v6098_v43, %v1924_v36  ;;  %v1953_v21 = vmul.f32 %v6098_v43, %v1925_v19  ;;  %vm6101_vm11 = vmmov %vm6100_vm4  ;;  %v2613_v40 = vsub.f32 1.0, %v2609_v26  ;;  %vm2617_vm0 = vcmp.ge.f32.partialorder %v6105_v28, 0.0 }
 0xa2d   : > { %v1969_v23 = vpop.permute.xlu1 %1968  ;;  %v2333_v1 = vsel %vm6101_vm11, %v2313_v4, %v5545_v32  ;;  %v2447_v46 = vadd.f32 %v2439_v38, %v2371_v33  ;;  %v2627_v26 = vadd.f32 1.0, %v2623_v55  ;;  %v6122_v33 = vld [vmem:[#allocation65_spill] sm:$0xff]  ;;  %v2630_v5 = vmul.f32 %v5617_v20, %v5537_v50 }
 0xa2e   : > { %v1985_v54 = vsel %vm6096_vm3, %v5506_v49, %v1969_v23  ;;  %v1997_v17 = vsel %vm6097_vm9, %v1969_v23, %v5506_v49  ;;  %v2317_v49 = vsel %vm6100_vm4, %v5545_v32, %v2313_v4  ;;  %v2612_v32 = vsub.f32 1.0, %v2608_v0  ;;  %v6112_v23 = vld [vmem:[#allocation56_spill] sm:$0xff]  ;;  %v6114_v4 = vld [vmem:[#allocation58_spill] sm:$0xff] }
 0xa2f   : > { %v2004_v62 = vsel %vm6022_vm5, %v1997_v17, 0.0  ;;  %v2005_v63 = vsel %vm6043_vm1, %v1985_v54, 0.0  ;;  %vm6102_vm5 = vcmask 7168   ;;  %v2340_v34 = vsel %vm6058_vm12, %v2317_v49, 0.0 }
 0xa30   : > { %v2028_v22 = vmul.f32 %v6099_v48, %v2004_v62  ;;  %v2029_v39 = vmul.f32 %v6099_v48, %v2005_v63  ;;  %vm6103_vm1 = vmmov %vm6102_vm5  ;;  %v2341_v10 = vsel %vm4668_vm7, %v2333_v1, 0.0  ;;  %vm6109_vm3 = vcmask 1039360   ;;  %v6115_v62 = vld [vmem:[#allocation61_spill] sm:$0xff]  ;;  %v6120_v1 = vld [vmem:[#allocation42_spill] sm:$0xff] }
 0xa31   : > { %v2121_v60 = vpop.permute.xlu1 %2120  ;;  %vm6110_vm9 = vmmov %vm6109_vm3  ;;  %vm6111_vm7 = vnez %v5930_v51  ;;  %v2620_v36 = vsub.f32 0.0, %v2612_v32  ;;  %v2621_v19 = vsub.f32 0.0, %v2613_v40  ;;  %v2364_v63 = vmul.f32 %v6115_v62, %v2340_v34 }
 0xa32   : > { %v2036_v29 = vadd.f32 %v2028_v22, %v1952_v58  ;;  %v2037_v7 = vadd.f32 %v2029_v39, %v1953_v21  ;;  %v2137_v52 = vsel %vm6102_vm5, %v5525_v53, %v2121_v60  ;;  %v2149_v13 = vsel %vm6103_vm1, %v2121_v60, %v5525_v53  ;;  %v6118_v39 = vld [vmem:[#allocation41_spill] sm:$0xff] }
 0xa33   : > { %v2156_v61 = vsel %vm6076_vm13, %v2149_v13, 0.0  ;;  %v2157_v47 = vsel %vm6104_vm14, %v2137_v52, 0.0  ;;  %vm6107_vm13 = vcmask 916480   ;;  %vm6116_vm12 = vcmask 908288  }
 0xa34   : > { %v2112_v42 = vadd.f32 %v2104_v31, %v2036_v29  ;;  %v2113_v59 = vadd.f32 %v2105_v45, %v2037_v7  ;;  %v2180_v12 = vmul.f32 %v6106_v35, %v2156_v61  ;;  %v2181_v27 = vmul.f32 %v6106_v35, %v2157_v47  ;;  %vm6108_vm8 = vmmov %vm6107_vm13  ;;  %v2465_v61 = vpop.permute.xlu0 %2464  ;;  %v6123_v47 = vld [vmem:[#allocation62_spill] sm:$0xff] }
 0xa35   : > { %v2393_v53 = vsel %vm6107_vm13, %v5569_v9, %v2389_v16  ;;  %v2409_v44 = vsel %vm6108_vm8, %v2389_v16, %v5569_v9  ;;  %v2237_v30 = vpop.permute.xlu1 %2236  ;;  %v6113_v9 = vld [vmem:[#allocation57_spill] sm:$0xff]  ;;  %vm6119_vm4 = vnez %v6118_v39  ;;  %vm6121_vm11 = vnez %v6120_v1 }
 0xa36   : > { %v2188_v2 = vadd.f32 %v2180_v12, %v2112_v42  ;;  %v2189_v31 = vadd.f32 %v2181_v27, %v2113_v59  ;;  %v2241_v45 = vsel %vm6109_vm3, %v5522_v15, %v2237_v30  ;;  %v2257_v3 = vsel %vm6110_vm9, %v2237_v30, %v5522_v15 }
 0xa37   : > { %v2264_v6 = vsel %vm6083_vm15, %v2241_v45, 0.0  ;;  %v2265_v18 = vsel %vm6111_vm7, %v2257_v3, 0.0  ;;  %v2365_v15 = vmul.f32 %v6115_v62, %v2341_v10  ;;  %vm6117_vm15 = vmmov %vm6116_vm12  ;;  %v2416_v48 = vsel %vm4727_vm2, %v2393_v53, 0.0  ;;  %v6126_v10 = vld [vmem:[#allocation64_spill] sm:$0xff] }
 0xa38   : > { %v2220_v14 = vadd.f32 %v6112_v23, %v2188_v2  ;;  %v2221_v11 = vadd.f32 %v6113_v9, %v2189_v31  ;;  %v2288_v54 = vmul.f32 %v6114_v4, %v2264_v6  ;;  %v2289_v17 = vmul.f32 %v6114_v4, %v2265_v18  ;;  %v6128_v23 = vld [vmem:[#allocation40_spill] sm:$0xff] }
 0xa39   : > { %v2459_v0 = vpop.permute.xlu1 %2458  ;;  %v2417_v22 = vsel %vm4731_vm10, %v2409_v44, 0.0  ;;  %v2624_v29 = vsel %vm2616_vm6, %v2612_v32, %v2620_v36  ;;  %v2625_v37 = vsel %vm2617_vm0, %v2613_v40, %v2621_v19  ;;  %v2631_v13 = vmul.f32 %v2627_v26, %v5551_v8  ;;  %vm6124_vm10 = vmmov %vm6116_vm12  ;;  %v2634_v36 = vld [vmem:[#allocation25] sm:$0xff] }
 0xa3a   : > { %v2296_v43 = vadd.f32 %v2288_v54, %v2220_v14  ;;  %v2297_v51 = vadd.f32 %v2289_v17, %v2221_v11  ;;  %v2468_v58 = vsel %vm6116_vm12, %v2459_v0, %v5584_v57  ;;  %v2484_v21 = vsel %vm6117_vm15, %v5584_v57, %v2459_v0  ;;  %vm6125_vm2 = vmmov %vm6124_vm10 }
 0xa3b   : > { %v2490_v49 = vsel %vm6119_vm4, %v2468_v58, 0.0  ;;  %v2491_v38 = vsel %vm6121_vm11, %v2484_v21, 0.0  ;;  %v2440_v16 = vmul.f32 %v6123_v47, %v2416_v48  ;;  %v2441_v42 = vmul.f32 %v6123_v47, %v2417_v22 }
 0xa3c   : > { %v2514_v60 = vmul.f32 %v6122_v33, %v2490_v49  ;;  %v2515_v55 = vmul.f32 %v6122_v33, %v2491_v38  ;;  %v2372_v57 = vadd.f32 %v2364_v63, %v2296_v43  ;;  %v2373_v7 = vadd.f32 %v2365_v15, %v2297_v51 }
 0xa3d   : > { %v2463_v52 = vpop.permute.xlu1 %2462  ;;  %v2628_v40 = vadd.f32 1.0, %v2624_v29  ;;  %v2629_v28 = vadd.f32 1.0, %v2625_v37  ;;  %vm6127_vm5 = vcmask 130048  }
 0xa3e   : > { %v2522_v59 = vadd.f32 %v2514_v60, %v2446_v24  ;;  %v2523_v35 = vadd.f32 %v2515_v55, %v2447_v46  ;;  %v2469_v41 = vsel %vm6124_vm10, %v2463_v52, %v2465_v61  ;;  %v2485_v32 = vsel %vm6125_vm2, %v2465_v61, %v2463_v52 }
 0xa3f   : > { %v2492_v50 = vsel %vm6119_vm4, %v2469_v41, 0.0  ;;  %v2493_v8 = vsel %vm6121_vm11, %v2485_v32, 0.0  ;;  %v2448_v27 = vadd.f32 %v2440_v16, %v2372_v57  ;;  %v2449_v34 = vadd.f32 %v2441_v42, %v2373_v7 }
 0xa40   : > { %v2635_v12 = vmul.f32 %v2630_v5, %v2522_v59  ;;  %v2636_v20 = vmul.f32 %v2631_v13, %v2523_v35  ;;  %v2516_v24 = vmul.f32 %v6126_v10, %v2492_v50  ;;  %v2517_v53 = vmul.f32 %v6126_v10, %v2493_v8 }
 0xa41   : > { %v2632_v2 = vmul.f32 %v2628_v40, %v5596_v25  ;;  %v2633_v31 = vmul.f32 %v2629_v28, %v5602_v56  ;;  %v6129_v56 = vld [vmem:[#allocation43_spill] sm:$0xff] }
 0xa42   : > { %v2524_v44 = vadd.f32 %v2516_v24, %v2448_v27  ;;  %v2525_v30 = vadd.f32 %v2517_v53, %v2449_v34 }
 0xa44   : > { %v2637_v45 = vmul.f32 %v2632_v2, %v2524_v44  ;;  %v2638_v3 = vmul.f32 %v2633_v31, %v2525_v30 }
 0xa46   : > { %v2989_v6 = vpack.c.bf16 %v2638_v3, %v2636_v20  ;;  %v2991_v18 = vpack.c.bf16 %v2637_v45, %v2635_v12 }
 0xa48   : > { %2990 = vmatprep.subr.bf16.mxu1 %v2989_v6 }
 0xa49   : > { %2992 = vmatpush1.bf16.msra.mxu1 %v2991_v18 }
 0xa4c   : > { %2981 = vmatmul.mubr.msk.f32.vlgmr.msra.gmra.mrb[10].mxu1 %vm6127_vm5, %v2634_v36 }
 0xb1f   : > { %v2708_v19 = vpop.f32.mrb[10].mxu1 }
 0xb20   : > { %v2713_v25 = vadd.f32 %v2708_v19, %v6128_v23  ;;  %v2710_v14 = vpop.f32.mrb[11].mxu1 }
 0xb21   : > { %v2714_v9 = vadd.f32 %v2710_v14, %v6129_v56 }
 0xb22   : > { %2715 = vst [vmem:[%s693_s15] sm:$0xff] %v2713_v25 }
 0xb23   : > { %2716 = vst [vmem:[%s693_s15 + $0x8] sm:$0xff] %v2714_v9 }
 0xb24   : > { %3724 = shalt.err (!%p3721_p9)
}
 0xb25   : > { %s3725_s23 = scalar_lea.hbm %s5709_s29, 256  ;;  %s3729_s26 = scalar_lea.hbm %s6130_s16, 512 }
 0xb26   : > { %p3726_p12 = scmp.ne.s32.totalorder %s5709_s29, %s3725_s23  ;;  %p3730_p0 = scmp.lt.u32.totalorder %s5709_s29, %s6130_s16 }
 0xb27   : > { %p3731_p2 = scmp.lt.u32.totalorder %s3729_s26, %s3725_s23  ;;  %p3733_p10 = scmp.lt.u32.totalorder %s3725_s23, %s5709_s29 }
 0xb28   : > { %p3727_p1 = pnand %p3726_p12, %p6131_p4 }
 0xb29   : > { %p3732_p3 = por %p3731_p2, %p3730_p0 }
 0xb2a   : > { %p3728_p13 = pneg %p3727_p1 }
 0xb2b   : > { %p3734_p11 = por %p3733_p10, %p3732_p3 }
 0xb2d   : > { %p3735_p8 = pnand %p3734_p11, %p3728_p13 }
 0xb2f   : > { %3738 = shalt.err (!%p3735_p8)
}
 0xb30   : > { %3053 = dma.vmem_to_hbm [thread:$0]  (%p6131_p4), %s5711_s1, 256, %s5709_s29, %s2718_s0  }
 0xb31 PF: > { %s6132_s2 = sld [smem:[#allocation36_spill]]  ;;  %p6133_p5 = scmp.ne.s32.totalorder %s5883_s18, 0 }
 0xb32   : > { %p6134_p7 = scmp.ge.s32.totalorder %s3805_s21, 2 }
 0xb34   : > { %p3103_p6 = pnand %p6134_p7, %p6133_p5 }
 0xb37   : > { %s2744_s3 = sand.u32 1, %s6132_s2  }
 0xb38   : > { %s2745_s25 = scalar_lea.sflag [#allocation4], %s2744_s3 }
 0xb39   : > { %3788 = dma.done.wait (!%p3103_p6), %s2745_s25, 256  }
 0xb3a   : > { %3790 = vsyncadd (!%p3103_p6), %s2745_s25, 4294967040  ;;  %s6135_s18 = sld [smem:[#allocation37_spill]]  ;;  %s6136_s23 = smov %s4304_s19 }
 0xb3b   : > { %p35_p9 = scmp.ge.s32.totalorder %s4293_s24, 4   ;;  %s6137_s19 = smov %s3801_s20 }
 0xb3c   : > { %s6138_s20 = smov %s6136_s23  ;;  %s6139_s21 = smov %s4293_s24 }
 0xb3d   :  { %37 = sbr.rel (!%p35_p9) target bundleno = 18 (0x12), region = 181 }
 0xb44   :  { %2750 = vsyncpa [#allocation3], 1 }
 0xb45   :  { %2752 = vsyncpa [#allocation3 + $0x1], 1 }
 0xb46   :  { %2753 = vsyncpa [#allocation6], 1 }
 0xb47   :  { %2754 = vsyncpa [#allocation9], 1 }
 0xb48   :  { %2755 = vsyncpa [#allocation12], 1 }
 0xb49   :  { %2756 = vsyncpa [#allocation15], 1 }
 0xb4a   :  { %2757 = vsyncpa [#allocation18], 1 }
 0xb4b   :  { %2758 = vsyncpa [#allocation21], 1 }
 0xb4c   :  { %2759 = vsyncpa [#allocation24], 1 }
 0xb4d   :  { %2760 = vsyncpa [#allocation4], 1 }
 0xb4e   :  { %2762 = vsyncpa [#allocation4 + $0x1], 1 }

</bundles_post_ra>
